<compile_context>
chip_gen: v5e
topology: v5e:2x2
jax: 0.10.0
libtpu: 0.0.40
codegen_flags: <defaults>
</compile_context>

<pallas_src>
import functools

import jax
import jax.numpy as jnp
from jax.experimental import pallas as pl
from jax.experimental.pallas import tpu as pltpu

BN_EPS = 1e-5
EXPANSION = 1  # BasicBlock

TM_MAX, TN_MAX, TK_MAX = 256, 256, 512  # bf16-friendly caps, << 64 MiB VMEM


def _pick_tile(dim, max_tile, quantum):
    """Largest tile <= max_tile that divides dim (quantum-aligned); else full dim."""
    if dim <= max_tile:
        return dim  # full-extent block: no (8,128) divisibility constraint
    t = (max_tile // quantum) * quantum
    while t >= quantum:
        if dim % t == 0:
            return t
        t -= quantum
    return dim  # fallback: whole dim in one block


# ---------------- fused tiled matmul kernel ----------------
#   out = relu?( (A @ B) * scale + bias [+ residual] )
# A: (M,K) bf16, B: (K,N) bf16, sb: (2,N) f32 (row0=scale, row1=bias),
# residual: (M,N) bf16.

def _epilogue_store(acc_f32, sb_ref, res_ref, o_ref, apply_relu):
    out = acc_f32 * sb_ref[0:1, :] + sb_ref[1:2, :]      # f32 epilogue
    if res_ref is not None:
        out = out + res_ref[...].astype(jnp.float32)
    if apply_relu:
        out = jnp.maximum(out, 0.0)
    o_ref[...] = out.astype(o_ref.dtype)


def _matmul_fused_kernel(a_ref, b_ref, sb_ref, *rest,
                         apply_relu, has_res, single_k):
    if has_res:
        res_ref = rest[0]
        rest = rest[1:]
    else:
        res_ref = None

    if single_k:
        (o_ref,) = rest
        acc = jnp.dot(a_ref[...], b_ref[...],
                      preferred_element_type=jnp.float32)
        _epilogue_store(acc, sb_ref, res_ref, o_ref, apply_relu)
        return

    o_ref, acc_ref = rest
    k = pl.program_id(2)

    @pl.when(k == 0)
    def _():
        acc_ref[...] = jnp.zeros_like(acc_ref)

    acc_ref[...] += jnp.dot(a_ref[...], b_ref[...],
                            preferred_element_type=jnp.float32)

    @pl.when(k == pl.num_programs(2) - 1)
    def _():
        _epilogue_store(acc_ref[...], sb_ref, res_ref, o_ref, apply_relu)


def matmul_fused(a, b, scale, bias, *, relu, residual=None,
                 out_dtype=jnp.bfloat16):
    M, K = a.shape
    Kb, N = b.shape
    assert K == Kb, (K, Kb)

    TM = _pick_tile(M, TM_MAX, 16)
    TN = _pick_tile(N, TN_MAX, 128)
    TK = _pick_tile(K, TK_MAX, 128)
    k_blocks = K // TK
    single_k = (k_blocks == 1)
    grid = (M // TM, N // TN, k_blocks)

    sb = jnp.stack([scale.astype(jnp.float32),
                    bias.astype(jnp.float32)], axis=0)   # (2, N)

    in_specs = [
        pl.BlockSpec((TM, TK), lambda i, j, k: (i, k)),
        pl.BlockSpec((TK, TN), lambda i, j, k: (k, j)),
        pl.BlockSpec((2, TN), lambda i, j, k: (0, j)),
    ]
    args = [a.astype(jnp.bfloat16), b.astype(jnp.bfloat16), sb]
    if residual is not None:
        in_specs.append(pl.BlockSpec((TM, TN), lambda i, j, k: (i, j)))
        args.append(residual.astype(jnp.bfloat16))

    scratch = [] if single_k else [pltpu.VMEM((TM, TN), jnp.float32)]

    return pl.pallas_call(
        functools.partial(_matmul_fused_kernel, apply_relu=relu,
                          has_res=residual is not None, single_k=single_k),
        out_shape=jax.ShapeDtypeStruct((M, N), out_dtype),
        grid_spec=pltpu.PrefetchScalarGridSpec(
            num_scalar_prefetch=0,
            grid=grid,
            in_specs=in_specs,
            out_specs=pl.BlockSpec((TM, TN), lambda i, j, k: (i, j)),
            scratch_shapes=scratch,
        ),
        compiler_params=pltpu.CompilerParams(
            dimension_semantics=("parallel", "parallel", "arbitrary"),
            vmem_limit_bytes=32 * 1024 * 1024,
        ),
    )(*args)


# ---------------- conv via im2col + fused Pallas matmul ----------------

def _im2col(x, k, stride, pad):
    """NHWC -> (N*Ho*Wo, k*k*C) in (kH, kW, C) column order, bf16."""
    n, h, w, c = x.shape
    xp = jnp.pad(x, ((0, 0), (pad, pad), (pad, pad), (0, 0)))
    ho = (h + 2 * pad - k) // stride + 1
    wo = (w + 2 * pad - k) // stride + 1
    cols = []
    for di in range(k):
        for dj in range(k):
            cols.append(xp[:, di:di + stride * ho:stride,
                           dj:dj + stride * wo:stride, :])
    cols = jnp.concatenate(cols, axis=-1)              # [n, ho, wo, k*k*c]
    return cols.reshape(n * ho * wo, k * k * c), ho, wo


def conv_bn_act(x, p, k, s, pad, relu):
    n = x.shape[0]
    a, ho, wo = _im2col(x, k, s, pad)
    out = matmul_fused(a, p["w"], p["scale"], p["bias"], relu=relu)
    return out.reshape(n, ho, wo, -1)


def conv_bn_add_relu(x, p, residual_nhwc, k, s, pad):
    """conv + BN + residual-add + ReLU, all fused into one Pallas matmul."""
    n = x.shape[0]
    a, ho, wo = _im2col(x, k, s, pad)
    res2d = residual_nhwc.reshape(n * ho * wo, residual_nhwc.shape[-1])
    out = matmul_fused(a, p["w"], p["scale"], p["bias"], relu=True,
                       residual=res2d)
    return out.reshape(n, ho, wo, -1)


# ---------------- deterministic parameter construction ----------------

def make_conv_bn_params(key, c_in, c_out, k):
    fan_out = c_out * k * k
    std = (2.0 / fan_out) ** 0.5  # kaiming_normal_(mode='fan_out', relu)
    w = jax.random.normal(key, (c_out, c_in, k, k), jnp.float32) * std
    # [c_out, c_in, kH, kW] -> [kH, kW, c_in, c_out] -> [k*k*c_in, c_out]
    w2d = jnp.transpose(w, (2, 3, 1, 0)).reshape(k * k * c_in, c_out)
    # eval-mode BN folded: gamma=1, beta=0, running_mean=0, running_var=1
    scale = jnp.full((c_out,), 1.0 / (1.0 + BN_EPS) ** 0.5, jnp.float32)
    bias = jnp.zeros((c_out,), jnp.float32)
    return {"w": w2d.astype(jnp.bfloat16), "scale": scale, "bias": bias}


def make_basic_block(key, c_in, c_out, stride):
    k1, k2, k3 = jax.random.split(key, 3)
    blk = {
        "stride": stride,
        "conv1": make_conv_bn_params(k1, c_in, c_out, 3),
        "conv2": make_conv_bn_params(k2, c_out, c_out, 3),
        "down": None,
    }
    if stride != 1 or c_in != c_out * EXPANSION:
        blk["down"] = make_conv_bn_params(k3, c_in, c_out * EXPANSION, 1)
    return blk


def make_res_group(key, c_in, c_out, num_blocks, stride):
    keys = jax.random.split(key, num_blocks)
    blocks = [make_basic_block(keys[0], c_in, c_out, stride)]
    cur = c_out * EXPANSION
    for i in range(1, num_blocks):
        blocks.append(make_basic_block(keys[i], cur, c_out, 1))
    return blocks


def make_resnet_params(key, num_classes, num_blocks, conv_channels):
    # stride_times == 3 config: conv1 is k=3, s=1, p=1; maxpool is identity.
    ks = jax.random.split(key, 6)
    params = {}
    params["conv1"] = make_conv_bn_params(ks[0], 3, conv_channels[0], 3)
    params["group1"] = make_res_group(ks[1], conv_channels[0], conv_channels[0],
                                      num_blocks[0], 1)
    params["group2"] = make_res_group(ks[2], conv_channels[0] * EXPANSION,
                                      conv_channels[1], num_blocks[1], 2)
    params["group3"] = make_res_group(ks[3], conv_channels[1] * EXPANSION,
                                      conv_channels[2], num_blocks[2], 2)
    params["group4"] = make_res_group(ks[4], conv_channels[2] * EXPANSION,
                                      conv_channels[3], num_blocks[3], 2)
    c_final = conv_channels[3] * EXPANSION
    fc_w = jax.random.normal(ks[5], (num_classes, c_final), jnp.float32) * 0.01
    params["fc"] = {
        "w": jnp.transpose(fc_w).astype(jnp.bfloat16),   # [C, num_classes]
        "bias": jnp.zeros((num_classes,), jnp.float32),  # nn.Linear bias init 0
    }
    return params


# ---------------- forward ----------------

def basic_block_forward(x, blk):
    out1 = conv_bn_act(x, blk["conv1"], 3, blk["stride"], 1, relu=True)
    if blk["down"] is not None:
        sc = conv_bn_act(x, blk["down"], 1, blk["stride"], 0, relu=False)
    else:
        sc = x
    # conv2 + BN + residual add + ReLU fused into one kernel
    return conv_bn_add_relu(out1, blk["conv2"], sc, 3, 1, 1)


def resnet_forward(x_nchw, params):
    # NCHW -> NHWC once, cast to bf16 once; all internal activations stay bf16.
    x = jnp.transpose(x_nchw, (0, 2, 3, 1)).astype(jnp.bfloat16)
    x = conv_bn_act(x, params["conv1"], 3, 1, 1, relu=True)
    # maxpool is nn.Sequential() (identity) for stride_times == 3
    for g in ("group1", "group2", "group3", "group4"):
        for blk in params[g]:
            x = basic_block_forward(x, blk)

    # Fused AdaptiveAvgPool2d(1) + flatten + Linear:
    #   logits[n,o] = (1/HW) * sum_{hw,c} x[n,hw,c] * W[c,o] + b[o]
    # computed as (N, HW*C) @ tile(W, HW) with 1/(HW) folded into the epilogue scale.
    n, h, w, c = x.shape
    a = x.reshape(n, h * w * c)                        # (hw, c) order, c fastest
    num_classes = params["fc"]["w"].shape[1]
    w_tiled = jnp.tile(params["fc"]["w"], (h * w, 1))  # (HW*C, num_classes) bf16
    scale = jnp.full((num_classes,), 1.0 / (h * w), jnp.float32)
    logits = matmul_fused(a, w_tiled, scale, params["fc"]["bias"],
                          relu=False, out_dtype=jnp.float32)
    return logits


if __name__ == "__main__":
    key = jax.random.PRNGKey(0)
    pkey, xkey = jax.random.split(key)

    num_classes = 10
    num_blocks = [1, 1, 1, 1]              # small, constructor-compatible config
    conv_channels = [16, 32, 64, 128]      # final stage lane-dense (128 channels)

    params = make_resnet_params(pkey, num_classes, num_blocks, conv_channels)
    x = jax.random.normal(xkey, (2, 3, 16, 16), jnp.float32)

    fwd = jax.jit(lambda inp: resnet_forward(inp, params))
    out = fwd(x)
    jax.block_until_ready(out)
    assert out.shape == (2, num_classes), out.shape
    print("KERNEL_OK")
</pallas_src>

<mosaic_0001>
module attributes {stable_mosaic.version = 11 : i64} {
  func.func @_matmul_fused_kernel(%arg0: i32, %arg1: i32, %arg2: i32, %arg3: memref<256x27xbf16, #tpu.memory_space<vmem>>, %arg4: memref<27x16xbf16, #tpu.memory_space<vmem>>, %arg5: memref<2x16xf32, #tpu.memory_space<vmem>>, %arg6: memref<256x16xbf16, #tpu.memory_space<vmem>>) attributes {dimension_semantics = [#tpu.dimension_semantics<parallel>, #tpu.dimension_semantics<parallel>, #tpu.dimension_semantics<arbitrary>], iteration_bounds = array<i64: 2, 1, 1>, scalar_prefetch = 0 : i64, scratch_operands = 0 : i64, tpu.core_type = #tpu.core_type<tc>, window_params = [{transform_indices = @transform_0, window_bounds = array<i64: 256, 27>}, {transform_indices = @transform_1, window_bounds = array<i64: 27, 16>}, {transform_indices = @transform_2, window_bounds = array<i64: 2, 16>}, {transform_indices = @transform_3, window_bounds = array<i64: 256, 16>}]} {
    %c0 = arith.constant 0 : index
    %c0_0 = arith.constant 0 : index
    %0 = vector.load %arg3[%c0, %c0_0] : memref<256x27xbf16, #tpu.memory_space<vmem>>, vector<256x27xbf16>
    %c0_1 = arith.constant 0 : index
    %c0_2 = arith.constant 0 : index
    %1 = vector.load %arg4[%c0_1, %c0_2] : memref<27x16xbf16, #tpu.memory_space<vmem>>, vector<27x16xbf16>
    %cst = arith.constant dense<0.000000e+00> : vector<256x16xf32>
    %2 = tpu.matmul %0, %1, %cst {dimension_numbers = #tpu.dot_dimension_numbers<[1], [0], [0], [1], [0, 0, 1, 1], [], []>} : vector<256x27xbf16>, vector<27x16xbf16>, vector<256x16xf32> -> vector<256x16xf32>
    %c0_3 = arith.constant 0 : index
    %c0_4 = arith.constant 0 : index
    %3 = vector.load %arg5[%c0_3, %c0_4] : memref<2x16xf32, #tpu.memory_space<vmem>>, vector<1x16xf32>
    %4 = vector.broadcast %3 : vector<1x16xf32> to vector<256x16xf32>
    %5 = arith.mulf %2, %4 : vector<256x16xf32>
    %c1 = arith.constant 1 : index
    %c0_5 = arith.constant 0 : index
    %6 = vector.load %arg5[%c1, %c0_5] : memref<2x16xf32, #tpu.memory_space<vmem>>, vector<1x16xf32>
    %7 = vector.broadcast %6 : vector<1x16xf32> to vector<256x16xf32>
    %8 = arith.addf %5, %7 : vector<256x16xf32>
    %cst_6 = arith.constant 0.000000e+00 : f32
    %9 = vector.broadcast %cst_6 : f32 to vector<256x16xf32>
    %10 = arith.maximumf %8, %9 : vector<256x16xf32>
    %11 = arith.truncf %10 : vector<256x16xf32> to vector<256x16xbf16>
    %c0_7 = arith.constant 0 : index
    %c0_8 = arith.constant 0 : index
    %12 = vector.load %arg6[%c0_7, %c0_8] : memref<256x16xbf16, #tpu.memory_space<vmem>>, vector<256x16xbf16>
    tpu.vector_store %arg6[%c0_7, %c0_8], %11 {strides = array<i32>} : memref<256x16xbf16, #tpu.memory_space<vmem>>, vector<256x16xbf16>,
    return
  }
  func.func @transform_0(%arg0: i32, %arg1: i32, %arg2: i32) -> (i32, i32) {
    %c0_i32 = arith.constant 0 : i32
    return %arg0, %arg2 : i32, i32
  }
  func.func @transform_1(%arg0: i32, %arg1: i32, %arg2: i32) -> (i32, i32) {
    %c0_i32 = arith.constant 0 : i32
    return %arg2, %arg1 : i32, i32
  }
  func.func @transform_2(%arg0: i32, %arg1: i32, %arg2: i32) -> (i32, i32) {
    %c0_i32 = arith.constant 0 : i32
    %c0_i32_0 = arith.constant 0 : i32
    return %c0_i32, %arg1 : i32, i32
  }
  func.func @transform_3(%arg0: i32, %arg1: i32, %arg2: i32) -> (i32, i32) {
    %c0_i32 = arith.constant 0 : i32
    return %arg0, %arg1 : i32, i32
  }
}

module attributes {stable_mosaic.version = 11 : i64} {
  func.func @_matmul_fused_kernel(%arg0: i32, %arg1: i32, %arg2: i32, %arg3: memref<256x144xbf16, #tpu.memory_space<vmem>>, %arg4: memref<144x16xbf16, #tpu.memory_space<vmem>>, %arg5: memref<2x16xf32, #tpu.memory_space<vmem>>, %arg6: memref<256x16xbf16, #tpu.memory_space<vmem>>, %arg7: memref<256x16xbf16, #tpu.memory_space<vmem>>) attributes {dimension_semantics = [#tpu.dimension_semantics<parallel>, #tpu.dimension_semantics<parallel>, #tpu.dimension_semantics<arbitrary>], iteration_bounds = array<i64: 2, 1, 1>, scalar_prefetch = 0 : i64, scratch_operands = 0 : i64, tpu.core_type = #tpu.core_type<tc>, window_params = [{transform_indices = @transform_0, window_bounds = array<i64: 256, 144>}, {transform_indices = @transform_1, window_bounds = array<i64: 144, 16>}, {transform_indices = @transform_2, window_bounds = array<i64: 2, 16>}, {transform_indices = @transform_3, window_bounds = array<i64: 256, 16>}, {transform_indices = @transform_4, window_bounds = array<i64: 256, 16>}]} {
    %c0 = arith.constant 0 : index
    %c0_0 = arith.constant 0 : index
    %0 = vector.load %arg3[%c0, %c0_0] : memref<256x144xbf16, #tpu.memory_space<vmem>>, vector<256x144xbf16>
    %c0_1 = arith.constant 0 : index
    %c0_2 = arith.constant 0 : index
    %1 = vector.load %arg4[%c0_1, %c0_2] : memref<144x16xbf16, #tpu.memory_space<vmem>>, vector<144x16xbf16>
    %cst = arith.constant dense<0.000000e+00> : vector<256x16xf32>
    %2 = tpu.matmul %0, %1, %cst {dimension_numbers = #tpu.dot_dimension_numbers<[1], [0], [0], [1], [0, 0, 1, 1], [], []>} : vector<256x144xbf16>, vector<144x16xbf16>, vector<256x16xf32> -> vector<256x16xf32>
    %c0_3 = arith.constant 0 : index
    %c0_4 = arith.constant 0 : index
    %3 = vector.load %arg5[%c0_3, %c0_4] : memref<2x16xf32, #tpu.memory_space<vmem>>, vector<1x16xf32>
    %4 = vector.broadcast %3 : vector<1x16xf32> to vector<256x16xf32>
    %5 = arith.mulf %2, %4 : vector<256x16xf32>
    %c1 = arith.constant 1 : index
    %c0_5 = arith.constant 0 : index
    %6 = vector.load %arg5[%c1, %c0_5] : memref<2x16xf32, #tpu.memory_space<vmem>>, vector<1x16xf32>
    %7 = vector.broadcast %6 : vector<1x16xf32> to vector<256x16xf32>
    %8 = arith.addf %5, %7 : vector<256x16xf32>
    %c0_6 = arith.constant 0 : index
    %c0_7 = arith.constant 0 : index
    %9 = vector.load %arg6[%c0_6, %c0_7] : memref<256x16xbf16, #tpu.memory_space<vmem>>, vector<256x16xbf16>
    %10 = arith.extf %9 : vector<256x16xbf16> to vector<256x16xf32>
    %11 = arith.addf %8, %10 : vector<256x16xf32>
    %cst_8 = arith.constant 0.000000e+00 : f32
    %12 = vector.broadcast %cst_8 : f32 to vector<256x16xf32>
    %13 = arith.maximumf %11, %12 : vector<256x16xf32>
    %14 = arith.truncf %13 : vector<256x16xf32> to vector<256x16xbf16>
    %c0_9 = arith.constant 0 : index
    %c0_10 = arith.constant 0 : index
    %15 = vector.load %arg7[%c0_9, %c0_10] : memref<256x16xbf16, #tpu.memory_space<vmem>>, vector<256x16xbf16>
    tpu.vector_store %arg7[%c0_9, %c0_10], %14 {strides = array<i32>} : memref<256x16xbf16, #tpu.memory_space<vmem>>, vector<256x16xbf16>,
    return
  }
  func.func @transform_0(%arg0: i32, %arg1: i32, %arg2: i32) -> (i32, i32) {
    %c0_i32 = arith.constant 0 : i32
    return %arg0, %arg2 : i32, i32
  }
  func.func @transform_1(%arg0: i32, %arg1: i32, %arg2: i32) -> (i32, i32) {
    %c0_i32 = arith.constant 0 : i32
    return %arg2, %arg1 : i32, i32
  }
  func.func @transform_2(%arg0: i32, %arg1: i32, %arg2: i32) -> (i32, i32) {
    %c0_i32 = arith.constant 0 : i32
    %c0_i32_0 = arith.constant 0 : i32
    return %c0_i32, %arg1 : i32, i32
  }
  func.func @transform_3(%arg0: i32, %arg1: i32, %arg2: i32) -> (i32, i32) {
    %c0_i32 = arith.constant 0 : i32
    return %arg0, %arg1 : i32, i32
  }
  func.func @transform_4(%arg0: i32, %arg1: i32, %arg2: i32) -> (i32, i32) {
    %c0_i32 = arith.constant 0 : i32
    return %arg0, %arg1 : i32, i32
  }
}

module attributes {stable_mosaic.version = 11 : i64} {
  func.func @_matmul_fused_kernel(%arg0: i32, %arg1: i32, %arg2: i32, %arg3: memref<256x144xbf16, #tpu.memory_space<vmem>>, %arg4: memref<144x16xbf16, #tpu.memory_space<vmem>>, %arg5: memref<2x16xf32, #tpu.memory_space<vmem>>, %arg6: memref<256x16xbf16, #tpu.memory_space<vmem>>) attributes {dimension_semantics = [#tpu.dimension_semantics<parallel>, #tpu.dimension_semantics<parallel>, #tpu.dimension_semantics<arbitrary>], iteration_bounds = array<i64: 2, 1, 1>, scalar_prefetch = 0 : i64, scratch_operands = 0 : i64, tpu.core_type = #tpu.core_type<tc>, window_params = [{transform_indices = @transform_0, window_bounds = array<i64: 256, 144>}, {transform_indices = @transform_1, window_bounds = array<i64: 144, 16>}, {transform_indices = @transform_2, window_bounds = array<i64: 2, 16>}, {transform_indices = @transform_3, window_bounds = array<i64: 256, 16>}]} {
    %c0 = arith.constant 0 : index
    %c0_0 = arith.constant 0 : index
    %0 = vector.load %arg3[%c0, %c0_0] : memref<256x144xbf16, #tpu.memory_space<vmem>>, vector<256x144xbf16>
    %c0_1 = arith.constant 0 : index
    %c0_2 = arith.constant 0 : index
    %1 = vector.load %arg4[%c0_1, %c0_2] : memref<144x16xbf16, #tpu.memory_space<vmem>>, vector<144x16xbf16>
    %cst = arith.constant dense<0.000000e+00> : vector<256x16xf32>
    %2 = tpu.matmul %0, %1, %cst {dimension_numbers = #tpu.dot_dimension_numbers<[1], [0], [0], [1], [0, 0, 1, 1], [], []>} : vector<256x144xbf16>, vector<144x16xbf16>, vector<256x16xf32> -> vector<256x16xf32>
    %c0_3 = arith.constant 0 : index
    %c0_4 = arith.constant 0 : index
    %3 = vector.load %arg5[%c0_3, %c0_4] : memref<2x16xf32, #tpu.memory_space<vmem>>, vector<1x16xf32>
    %4 = vector.broadcast %3 : vector<1x16xf32> to vector<256x16xf32>
    %5 = arith.mulf %2, %4 : vector<256x16xf32>
    %c1 = arith.constant 1 : index
    %c0_5 = arith.constant 0 : index
    %6 = vector.load %arg5[%c1, %c0_5] : memref<2x16xf32, #tpu.memory_space<vmem>>, vector<1x16xf32>
    %7 = vector.broadcast %6 : vector<1x16xf32> to vector<256x16xf32>
    %8 = arith.addf %5, %7 : vector<256x16xf32>
    %cst_6 = arith.constant 0.000000e+00 : f32
    %9 = vector.broadcast %cst_6 : f32 to vector<256x16xf32>
    %10 = arith.maximumf %8, %9 : vector<256x16xf32>
    %11 = arith.truncf %10 : vector<256x16xf32> to vector<256x16xbf16>
    %c0_7 = arith.constant 0 : index
    %c0_8 = arith.constant 0 : index
    %12 = vector.load %arg6[%c0_7, %c0_8] : memref<256x16xbf16, #tpu.memory_space<vmem>>, vector<256x16xbf16>
    tpu.vector_store %arg6[%c0_7, %c0_8], %11 {strides = array<i32>} : memref<256x16xbf16, #tpu.memory_space<vmem>>, vector<256x16xbf16>,
    return
  }
  func.func @transform_0(%arg0: i32, %arg1: i32, %arg2: i32) -> (i32, i32) {
    %c0_i32 = arith.constant 0 : i32
    return %arg0, %arg2 : i32, i32
  }
  func.func @transform_1(%arg0: i32, %arg1: i32, %arg2: i32) -> (i32, i32) {
    %c0_i32 = arith.constant 0 : i32
    return %arg2, %arg1 : i32, i32
  }
  func.func @transform_2(%arg0: i32, %arg1: i32, %arg2: i32) -> (i32, i32) {
    %c0_i32 = arith.constant 0 : i32
    %c0_i32_0 = arith.constant 0 : i32
    return %c0_i32, %arg1 : i32, i32
  }
  func.func @transform_3(%arg0: i32, %arg1: i32, %arg2: i32) -> (i32, i32) {
    %c0_i32 = arith.constant 0 : i32
    return %arg0, %arg1 : i32, i32
  }
}

module attributes {stable_mosaic.version = 11 : i64} {
  func.func @_matmul_fused_kernel(%arg0: i32, %arg1: i32, %arg2: i32, %arg3: memref<128x144xbf16, #tpu.memory_space<vmem>>, %arg4: memref<144x32xbf16, #tpu.memory_space<vmem>>, %arg5: memref<2x32xf32, #tpu.memory_space<vmem>>, %arg6: memref<128x32xbf16, #tpu.memory_space<vmem>>) attributes {dimension_semantics = [#tpu.dimension_semantics<parallel>, #tpu.dimension_semantics<parallel>, #tpu.dimension_semantics<arbitrary>], iteration_bounds = array<i64: 1, 1, 1>, scalar_prefetch = 0 : i64, scratch_operands = 0 : i64, tpu.core_type = #tpu.core_type<tc>, window_params = [{transform_indices = @transform_0, window_bounds = array<i64: 128, 144>}, {transform_indices = @transform_1, window_bounds = array<i64: 144, 32>}, {transform_indices = @transform_2, window_bounds = array<i64: 2, 32>}, {transform_indices = @transform_3, window_bounds = array<i64: 128, 32>}]} {
    %c0 = arith.constant 0 : index
    %c0_0 = arith.constant 0 : index
    %0 = vector.load %arg3[%c0, %c0_0] : memref<128x144xbf16, #tpu.memory_space<vmem>>, vector<128x144xbf16>
    %c0_1 = arith.constant 0 : index
    %c0_2 = arith.constant 0 : index
    %1 = vector.load %arg4[%c0_1, %c0_2] : memref<144x32xbf16, #tpu.memory_space<vmem>>, vector<144x32xbf16>
    %cst = arith.constant dense<0.000000e+00> : vector<128x32xf32>
    %2 = tpu.matmul %0, %1, %cst {dimension_numbers = #tpu.dot_dimension_numbers<[1], [0], [0], [1], [0, 0, 1, 1], [], []>} : vector<128x144xbf16>, vector<144x32xbf16>, vector<128x32xf32> -> vector<128x32xf32>
    %c0_3 = arith.constant 0 : index
    %c0_4 = arith.constant 0 : index
    %3 = vector.load %arg5[%c0_3, %c0_4] : memref<2x32xf32, #tpu.memory_space<vmem>>, vector<1x32xf32>
    %4 = vector.broadcast %3 : vector<1x32xf32> to vector<128x32xf32>
    %5 = arith.mulf %2, %4 : vector<128x32xf32>
    %c1 = arith.constant 1 : index
    %c0_5 = arith.constant 0 : index
    %6 = vector.load %arg5[%c1, %c0_5] : memref<2x32xf32, #tpu.memory_space<vmem>>, vector<1x32xf32>
    %7 = vector.broadcast %6 : vector<1x32xf32> to vector<128x32xf32>
    %8 = arith.addf %5, %7 : vector<128x32xf32>
    %cst_6 = arith.constant 0.000000e+00 : f32
    %9 = vector.broadcast %cst_6 : f32 to vector<128x32xf32>
    %10 = arith.maximumf %8, %9 : vector<128x32xf32>
    %11 = arith.truncf %10 : vector<128x32xf32> to vector<128x32xbf16>
    %c0_7 = arith.constant 0 : index
    %c0_8 = arith.constant 0 : index
    %12 = vector.load %arg6[%c0_7, %c0_8] : memref<128x32xbf16, #tpu.memory_space<vmem>>, vector<128x32xbf16>
    tpu.vector_store %arg6[%c0_7, %c0_8], %11 {strides = array<i32>} : memref<128x32xbf16, #tpu.memory_space<vmem>>, vector<128x32xbf16>,
    return
  }
  func.func @transform_0(%arg0: i32, %arg1: i32, %arg2: i32) -> (i32, i32) {
    %c0_i32 = arith.constant 0 : i32
    return %arg0, %arg2 : i32, i32
  }
  func.func @transform_1(%arg0: i32, %arg1: i32, %arg2: i32) -> (i32, i32) {
    %c0_i32 = arith.constant 0 : i32
    return %arg2, %arg1 : i32, i32
  }
  func.func @transform_2(%arg0: i32, %arg1: i32, %arg2: i32) -> (i32, i32) {
    %c0_i32 = arith.constant 0 : i32
    %c0_i32_0 = arith.constant 0 : i32
    return %c0_i32, %arg1 : i32, i32
  }
  func.func @transform_3(%arg0: i32, %arg1: i32, %arg2: i32) -> (i32, i32) {
    %c0_i32 = arith.constant 0 : i32
    return %arg0, %arg1 : i32, i32
  }
}

module attributes {stable_mosaic.version = 11 : i64} {
  func.func @_matmul_fused_kernel(%arg0: i32, %arg1: i32, %arg2: i32, %arg3: memref<128x16xbf16, #tpu.memory_space<vmem>>, %arg4: memref<16x32xbf16, #tpu.memory_space<vmem>>, %arg5: memref<2x32xf32, #tpu.memory_space<vmem>>, %arg6: memref<128x32xbf16, #tpu.memory_space<vmem>>) attributes {dimension_semantics = [#tpu.dimension_semantics<parallel>, #tpu.dimension_semantics<parallel>, #tpu.dimension_semantics<arbitrary>], iteration_bounds = array<i64: 1, 1, 1>, scalar_prefetch = 0 : i64, scratch_operands = 0 : i64, tpu.core_type = #tpu.core_type<tc>, window_params = [{transform_indices = @transform_0, window_bounds = array<i64: 128, 16>}, {transform_indices = @transform_1, window_bounds = array<i64: 16, 32>}, {transform_indices = @transform_2, window_bounds = array<i64: 2, 32>}, {transform_indices = @transform_3, window_bounds = array<i64: 128, 32>}]} {
    %c0 = arith.constant 0 : index
    %c0_0 = arith.constant 0 : index
    %0 = vector.load %arg3[%c0, %c0_0] : memref<128x16xbf16, #tpu.memory_space<vmem>>, vector<128x16xbf16>
    %c0_1 = arith.constant 0 : index
    %c0_2 = arith.constant 0 : index
    %1 = vector.load %arg4[%c0_1, %c0_2] : memref<16x32xbf16, #tpu.memory_space<vmem>>, vector<16x32xbf16>
    %cst = arith.constant dense<0.000000e+00> : vector<128x32xf32>
    %2 = tpu.matmul %0, %1, %cst {dimension_numbers = #tpu.dot_dimension_numbers<[1], [0], [0], [1], [0, 0, 1, 1], [], []>} : vector<128x16xbf16>, vector<16x32xbf16>, vector<128x32xf32> -> vector<128x32xf32>
    %c0_3 = arith.constant 0 : index
    %c0_4 = arith.constant 0 : index
    %3 = vector.load %arg5[%c0_3, %c0_4] : memref<2x32xf32, #tpu.memory_space<vmem>>, vector<1x32xf32>
    %4 = vector.broadcast %3 : vector<1x32xf32> to vector<128x32xf32>
    %5 = arith.mulf %2, %4 : vector<128x32xf32>
    %c1 = arith.constant 1 : index
    %c0_5 = arith.constant 0 : index
    %6 = vector.load %arg5[%c1, %c0_5] : memref<2x32xf32, #tpu.memory_space<vmem>>, vector<1x32xf32>
    %7 = vector.broadcast %6 : vector<1x32xf32> to vector<128x32xf32>
    %8 = arith.addf %5, %7 : vector<128x32xf32>
    %9 = arith.truncf %8 : vector<128x32xf32> to vector<128x32xbf16>
    %c0_6 = arith.constant 0 : index
    %c0_7 = arith.constant 0 : index
    %10 = vector.load %arg6[%c0_6, %c0_7] : memref<128x32xbf16, #tpu.memory_space<vmem>>, vector<128x32xbf16>
    tpu.vector_store %arg6[%c0_6, %c0_7], %9 {strides = array<i32>} : memref<128x32xbf16, #tpu.memory_space<vmem>>, vector<128x32xbf16>,
    return
  }
  func.func @transform_0(%arg0: i32, %arg1: i32, %arg2: i32) -> (i32, i32) {
    %c0_i32 = arith.constant 0 : i32
    return %arg0, %arg2 : i32, i32
  }
  func.func @transform_1(%arg0: i32, %arg1: i32, %arg2: i32) -> (i32, i32) {
    %c0_i32 = arith.constant 0 : i32
    return %arg2, %arg1 : i32, i32
  }
  func.func @transform_2(%arg0: i32, %arg1: i32, %arg2: i32) -> (i32, i32) {
    %c0_i32 = arith.constant 0 : i32
    %c0_i32_0 = arith.constant 0 : i32
    return %c0_i32, %arg1 : i32, i32
  }
  func.func @transform_3(%arg0: i32, %arg1: i32, %arg2: i32) -> (i32, i32) {
    %c0_i32 = arith.constant 0 : i32
    return %arg0, %arg1 : i32, i32
  }
}

module attributes {stable_mosaic.version = 11 : i64} {
  func.func @_matmul_fused_kernel(%arg0: i32, %arg1: i32, %arg2: i32, %arg3: memref<128x288xbf16, #tpu.memory_space<vmem>>, %arg4: memref<288x32xbf16, #tpu.memory_space<vmem>>, %arg5: memref<2x32xf32, #tpu.memory_space<vmem>>, %arg6: memref<128x32xbf16, #tpu.memory_space<vmem>>, %arg7: memref<128x32xbf16, #tpu.memory_space<vmem>>) attributes {dimension_semantics = [#tpu.dimension_semantics<parallel>, #tpu.dimension_semantics<parallel>, #tpu.dimension_semantics<arbitrary>], iteration_bounds = array<i64: 1, 1, 1>, scalar_prefetch = 0 : i64, scratch_operands = 0 : i64, tpu.core_type = #tpu.core_type<tc>, window_params = [{transform_indices = @transform_0, window_bounds = array<i64: 128, 288>}, {transform_indices = @transform_1, window_bounds = array<i64: 288, 32>}, {transform_indices = @transform_2, window_bounds = array<i64: 2, 32>}, {transform_indices = @transform_3, window_bounds = array<i64: 128, 32>}, {transform_indices = @transform_4, window_bounds = array<i64: 128, 32>}]} {
    %c0 = arith.constant 0 : index
    %c0_0 = arith.constant 0 : index
    %0 = vector.load %arg3[%c0, %c0_0] : memref<128x288xbf16, #tpu.memory_space<vmem>>, vector<128x288xbf16>
    %c0_1 = arith.constant 0 : index
    %c0_2 = arith.constant 0 : index
    %1 = vector.load %arg4[%c0_1, %c0_2] : memref<288x32xbf16, #tpu.memory_space<vmem>>, vector<288x32xbf16>
    %cst = arith.constant dense<0.000000e+00> : vector<128x32xf32>
    %2 = tpu.matmul %0, %1, %cst {dimension_numbers = #tpu.dot_dimension_numbers<[1], [0], [0], [1], [0, 0, 1, 1], [], []>} : vector<128x288xbf16>, vector<288x32xbf16>, vector<128x32xf32> -> vector<128x32xf32>
    %c0_3 = arith.constant 0 : index
    %c0_4 = arith.constant 0 : index
    %3 = vector.load %arg5[%c0_3, %c0_4] : memref<2x32xf32, #tpu.memory_space<vmem>>, vector<1x32xf32>
    %4 = vector.broadcast %3 : vector<1x32xf32> to vector<128x32xf32>
    %5 = arith.mulf %2, %4 : vector<128x32xf32>
    %c1 = arith.constant 1 : index
    %c0_5 = arith.constant 0 : index
    %6 = vector.load %arg5[%c1, %c0_5] : memref<2x32xf32, #tpu.memory_space<vmem>>, vector<1x32xf32>
    %7 = vector.broadcast %6 : vector<1x32xf32> to vector<128x32xf32>
    %8 = arith.addf %5, %7 : vector<128x32xf32>
    %c0_6 = arith.constant 0 : index
    %c0_7 = arith.constant 0 : index
    %9 = vector.load %arg6[%c0_6, %c0_7] : memref<128x32xbf16, #tpu.memory_space<vmem>>, vector<128x32xbf16>
    %10 = arith.extf %9 : vector<128x32xbf16> to vector<128x32xf32>
    %11 = arith.addf %8, %10 : vector<128x32xf32>
    %cst_8 = arith.constant 0.000000e+00 : f32
    %12 = vector.broadcast %cst_8 : f32 to vector<128x32xf32>
    %13 = arith.maximumf %11, %12 : vector<128x32xf32>
    %14 = arith.truncf %13 : vector<128x32xf32> to vector<128x32xbf16>
    %c0_9 = arith.constant 0 : index
    %c0_10 = arith.constant 0 : index
    %15 = vector.load %arg7[%c0_9, %c0_10] : memref<128x32xbf16, #tpu.memory_space<vmem>>, vector<128x32xbf16>
    tpu.vector_store %arg7[%c0_9, %c0_10], %14 {strides = array<i32>} : memref<128x32xbf16, #tpu.memory_space<vmem>>, vector<128x32xbf16>,
    return
  }
  func.func @transform_0(%arg0: i32, %arg1: i32, %arg2: i32) -> (i32, i32) {
    %c0_i32 = arith.constant 0 : i32
    return %arg0, %arg2 : i32, i32
  }
  func.func @transform_1(%arg0: i32, %arg1: i32, %arg2: i32) -> (i32, i32) {
    %c0_i32 = arith.constant 0 : i32
    return %arg2, %arg1 : i32, i32
  }
  func.func @transform_2(%arg0: i32, %arg1: i32, %arg2: i32) -> (i32, i32) {
    %c0_i32 = arith.constant 0 : i32
    %c0_i32_0 = arith.constant 0 : i32
    return %c0_i32, %arg1 : i32, i32
  }
  func.func @transform_3(%arg0: i32, %arg1: i32, %arg2: i32) -> (i32, i32) {
    %c0_i32 = arith.constant 0 : i32
    return %arg0, %arg1 : i32, i32
  }
  func.func @transform_4(%arg0: i32, %arg1: i32, %arg2: i32) -> (i32, i32) {
    %c0_i32 = arith.constant 0 : i32
    return %arg0, %arg1 : i32, i32
  }
}

module attributes {stable_mosaic.version = 11 : i64} {
  func.func @_matmul_fused_kernel(%arg0: i32, %arg1: i32, %arg2: i32, %arg3: memref<32x288xbf16, #tpu.memory_space<vmem>>, %arg4: memref<288x64xbf16, #tpu.memory_space<vmem>>, %arg5: memref<2x64xf32, #tpu.memory_space<vmem>>, %arg6: memref<32x64xbf16, #tpu.memory_space<vmem>>) attributes {dimension_semantics = [#tpu.dimension_semantics<parallel>, #tpu.dimension_semantics<parallel>, #tpu.dimension_semantics<arbitrary>], iteration_bounds = array<i64: 1, 1, 1>, scalar_prefetch = 0 : i64, scratch_operands = 0 : i64, tpu.core_type = #tpu.core_type<tc>, window_params = [{transform_indices = @transform_0, window_bounds = array<i64: 32, 288>}, {transform_indices = @transform_1, window_bounds = array<i64: 288, 64>}, {transform_indices = @transform_2, window_bounds = array<i64: 2, 64>}, {transform_indices = @transform_3, window_bounds = array<i64: 32, 64>}]} {
    %c0 = arith.constant 0 : index
    %c0_0 = arith.constant 0 : index
    %0 = vector.load %arg3[%c0, %c0_0] : memref<32x288xbf16, #tpu.memory_space<vmem>>, vector<32x288xbf16>
    %c0_1 = arith.constant 0 : index
    %c0_2 = arith.constant 0 : index
    %1 = vector.load %arg4[%c0_1, %c0_2] : memref<288x64xbf16, #tpu.memory_space<vmem>>, vector<288x64xbf16>
    %cst = arith.constant dense<0.000000e+00> : vector<32x64xf32>
    %2 = tpu.matmul %0, %1, %cst {dimension_numbers = #tpu.dot_dimension_numbers<[1], [0], [0], [1], [0, 0, 1, 1], [], []>} : vector<32x288xbf16>, vector<288x64xbf16>, vector<32x64xf32> -> vector<32x64xf32>
    %c0_3 = arith.constant 0 : index
    %c0_4 = arith.constant 0 : index
    %3 = vector.load %arg5[%c0_3, %c0_4] : memref<2x64xf32, #tpu.memory_space<vmem>>, vector<1x64xf32>
    %4 = vector.broadcast %3 : vector<1x64xf32> to vector<32x64xf32>
    %5 = arith.mulf %2, %4 : vector<32x64xf32>
    %c1 = arith.constant 1 : index
    %c0_5 = arith.constant 0 : index
    %6 = vector.load %arg5[%c1, %c0_5] : memref<2x64xf32, #tpu.memory_space<vmem>>, vector<1x64xf32>
    %7 = vector.broadcast %6 : vector<1x64xf32> to vector<32x64xf32>
    %8 = arith.addf %5, %7 : vector<32x64xf32>
    %cst_6 = arith.constant 0.000000e+00 : f32
    %9 = vector.broadcast %cst_6 : f32 to vector<32x64xf32>
    %10 = arith.maximumf %8, %9 : vector<32x64xf32>
    %11 = arith.truncf %10 : vector<32x64xf32> to vector<32x64xbf16>
    %c0_7 = arith.constant 0 : index
    %c0_8 = arith.constant 0 : index
    %12 = vector.load %arg6[%c0_7, %c0_8] : memref<32x64xbf16, #tpu.memory_space<vmem>>, vector<32x64xbf16>
    tpu.vector_store %arg6[%c0_7, %c0_8], %11 {strides = array<i32>} : memref<32x64xbf16, #tpu.memory_space<vmem>>, vector<32x64xbf16>,
    return
  }
  func.func @transform_0(%arg0: i32, %arg1: i32, %arg2: i32) -> (i32, i32) {
    %c0_i32 = arith.constant 0 : i32
    return %arg0, %arg2 : i32, i32
  }
  func.func @transform_1(%arg0: i32, %arg1: i32, %arg2: i32) -> (i32, i32) {
    %c0_i32 = arith.constant 0 : i32
    return %arg2, %arg1 : i32, i32
  }
  func.func @transform_2(%arg0: i32, %arg1: i32, %arg2: i32) -> (i32, i32) {
    %c0_i32 = arith.constant 0 : i32
    %c0_i32_0 = arith.constant 0 : i32
    return %c0_i32, %arg1 : i32, i32
  }
  func.func @transform_3(%arg0: i32, %arg1: i32, %arg2: i32) -> (i32, i32) {
    %c0_i32 = arith.constant 0 : i32
    return %arg0, %arg1 : i32, i32
  }
}

module attributes {stable_mosaic.version = 11 : i64} {
  func.func @_matmul_fused_kernel(%arg0: i32, %arg1: i32, %arg2: i32, %arg3: memref<32x32xbf16, #tpu.memory_space<vmem>>, %arg4: memref<32x64xbf16, #tpu.memory_space<vmem>>, %arg5: memref<2x64xf32, #tpu.memory_space<vmem>>, %arg6: memref<32x64xbf16, #tpu.memory_space<vmem>>) attributes {dimension_semantics = [#tpu.dimension_semantics<parallel>, #tpu.dimension_semantics<parallel>, #tpu.dimension_semantics<arbitrary>], iteration_bounds = array<i64: 1, 1, 1>, scalar_prefetch = 0 : i64, scratch_operands = 0 : i64, tpu.core_type = #tpu.core_type<tc>, window_params = [{transform_indices = @transform_0, window_bounds = array<i64: 32, 32>}, {transform_indices = @transform_1, window_bounds = array<i64: 32, 64>}, {transform_indices = @transform_2, window_bounds = array<i64: 2, 64>}, {transform_indices = @transform_3, window_bounds = array<i64: 32, 64>}]} {
    %c0 = arith.constant 0 : index
    %c0_0 = arith.constant 0 : index
    %0 = vector.load %arg3[%c0, %c0_0] : memref<32x32xbf16, #tpu.memory_space<vmem>>, vector<32x32xbf16>
    %c0_1 = arith.constant 0 : index
    %c0_2 = arith.constant 0 : index
    %1 = vector.load %arg4[%c0_1, %c0_2] : memref<32x64xbf16, #tpu.memory_space<vmem>>, vector<32x64xbf16>
    %cst = arith.constant dense<0.000000e+00> : vector<32x64xf32>
    %2 = tpu.matmul %0, %1, %cst {dimension_numbers = #tpu.dot_dimension_numbers<[1], [0], [0], [1], [0, 0, 1, 1], [], []>} : vector<32x32xbf16>, vector<32x64xbf16>, vector<32x64xf32> -> vector<32x64xf32>
    %c0_3 = arith.constant 0 : index
    %c0_4 = arith.constant 0 : index
    %3 = vector.load %arg5[%c0_3, %c0_4] : memref<2x64xf32, #tpu.memory_space<vmem>>, vector<1x64xf32>
    %4 = vector.broadcast %3 : vector<1x64xf32> to vector<32x64xf32>
    %5 = arith.mulf %2, %4 : vector<32x64xf32>
    %c1 = arith.constant 1 : index
    %c0_5 = arith.constant 0 : index
    %6 = vector.load %arg5[%c1, %c0_5] : memref<2x64xf32, #tpu.memory_space<vmem>>, vector<1x64xf32>
    %7 = vector.broadcast %6 : vector<1x64xf32> to vector<32x64xf32>
    %8 = arith.addf %5, %7 : vector<32x64xf32>
    %9 = arith.truncf %8 : vector<32x64xf32> to vector<32x64xbf16>
    %c0_6 = arith.constant 0 : index
    %c0_7 = arith.constant 0 : index
    %10 = vector.load %arg6[%c0_6, %c0_7] : memref<32x64xbf16, #tpu.memory_space<vmem>>, vector<32x64xbf16>
    tpu.vector_store %arg6[%c0_6, %c0_7], %9 {strides = array<i32>} : memref<32x64xbf16, #tpu.memory_space<vmem>>, vector<32x64xbf16>,
    return
  }
  func.func @transform_0(%arg0: i32, %arg1: i32, %arg2: i32) -> (i32, i32) {
    %c0_i32 = arith.constant 0 : i32
    return %arg0, %arg2 : i32, i32
  }
  func.func @transform_1(%arg0: i32, %arg1: i32, %arg2: i32) -> (i32, i32) {
    %c0_i32 = arith.constant 0 : i32
    return %arg2, %arg1 : i32, i32
  }
  func.func @transform_2(%arg0: i32, %arg1: i32, %arg2: i32) -> (i32, i32) {
    %c0_i32 = arith.constant 0 : i32
    %c0_i32_0 = arith.constant 0 : i32
    return %c0_i32, %arg1 : i32, i32
  }
  func.func @transform_3(%arg0: i32, %arg1: i32, %arg2: i32) -> (i32, i32) {
    %c0_i32 = arith.constant 0 : i32
    return %arg0, %arg1 : i32, i32
  }
}

module attributes {stable_mosaic.version = 11 : i64} {
  func.func @_matmul_fused_kernel(%arg0: i32, %arg1: i32, %arg2: i32, %arg3: memref<32x576xbf16, #tpu.memory_space<vmem>>, %arg4: memref<576x64xbf16, #tpu.memory_space<vmem>>, %arg5: memref<2x64xf32, #tpu.memory_space<vmem>>, %arg6: memref<32x64xbf16, #tpu.memory_space<vmem>>, %arg7: memref<32x64xbf16, #tpu.memory_space<vmem>>) attributes {dimension_semantics = [#tpu.dimension_semantics<parallel>, #tpu.dimension_semantics<parallel>, #tpu.dimension_semantics<arbitrary>], iteration_bounds = array<i64: 1, 1, 1>, scalar_prefetch = 0 : i64, scratch_operands = 0 : i64, tpu.core_type = #tpu.core_type<tc>, window_params = [{transform_indices = @transform_0, window_bounds = array<i64: 32, 576>}, {transform_indices = @transform_1, window_bounds = array<i64: 576, 64>}, {transform_indices = @transform_2, window_bounds = array<i64: 2, 64>}, {transform_indices = @transform_3, window_bounds = array<i64: 32, 64>}, {transform_indices = @transform_4, window_bounds = array<i64: 32, 64>}]} {
    %c0 = arith.constant 0 : index
    %c0_0 = arith.constant 0 : index
    %0 = vector.load %arg3[%c0, %c0_0] : memref<32x576xbf16, #tpu.memory_space<vmem>>, vector<32x576xbf16>
    %c0_1 = arith.constant 0 : index
    %c0_2 = arith.constant 0 : index
    %1 = vector.load %arg4[%c0_1, %c0_2] : memref<576x64xbf16, #tpu.memory_space<vmem>>, vector<576x64xbf16>
    %cst = arith.constant dense<0.000000e+00> : vector<32x64xf32>
    %2 = tpu.matmul %0, %1, %cst {dimension_numbers = #tpu.dot_dimension_numbers<[1], [0], [0], [1], [0, 0, 1, 1], [], []>} : vector<32x576xbf16>, vector<576x64xbf16>, vector<32x64xf32> -> vector<32x64xf32>
    %c0_3 = arith.constant 0 : index
    %c0_4 = arith.constant 0 : index
    %3 = vector.load %arg5[%c0_3, %c0_4] : memref<2x64xf32, #tpu.memory_space<vmem>>, vector<1x64xf32>
    %4 = vector.broadcast %3 : vector<1x64xf32> to vector<32x64xf32>
    %5 = arith.mulf %2, %4 : vector<32x64xf32>
    %c1 = arith.constant 1 : index
    %c0_5 = arith.constant 0 : index
    %6 = vector.load %arg5[%c1, %c0_5] : memref<2x64xf32, #tpu.memory_space<vmem>>, vector<1x64xf32>
    %7 = vector.broadcast %6 : vector<1x64xf32> to vector<32x64xf32>
    %8 = arith.addf %5, %7 : vector<32x64xf32>
    %c0_6 = arith.constant 0 : index
    %c0_7 = arith.constant 0 : index
    %9 = vector.load %arg6[%c0_6, %c0_7] : memref<32x64xbf16, #tpu.memory_space<vmem>>, vector<32x64xbf16>
    %10 = arith.extf %9 : vector<32x64xbf16> to vector<32x64xf32>
    %11 = arith.addf %8, %10 : vector<32x64xf32>
    %cst_8 = arith.constant 0.000000e+00 : f32
    %12 = vector.broadcast %cst_8 : f32 to vector<32x64xf32>
    %13 = arith.maximumf %11, %12 : vector<32x64xf32>
    %14 = arith.truncf %13 : vector<32x64xf32> to vector<32x64xbf16>
    %c0_9 = arith.constant 0 : index
    %c0_10 = arith.constant 0 : index
    %15 = vector.load %arg7[%c0_9, %c0_10] : memref<32x64xbf16, #tpu.memory_space<vmem>>, vector<32x64xbf16>
    tpu.vector_store %arg7[%c0_9, %c0_10], %14 {strides = array<i32>} : memref<32x64xbf16, #tpu.memory_space<vmem>>, vector<32x64xbf16>,
    return
  }
  func.func @transform_0(%arg0: i32, %arg1: i32, %arg2: i32) -> (i32, i32) {
    %c0_i32 = arith.constant 0 : i32
    return %arg0, %arg2 : i32, i32
  }
  func.func @transform_1(%arg0: i32, %arg1: i32, %arg2: i32) -> (i32, i32) {
    %c0_i32 = arith.constant 0 : i32
    return %arg2, %arg1 : i32, i32
  }
  func.func @transform_2(%arg0: i32, %arg1: i32, %arg2: i32) -> (i32, i32) {
    %c0_i32 = arith.constant 0 : i32
    %c0_i32_0 = arith.constant 0 : i32
    return %c0_i32, %arg1 : i32, i32
  }
  func.func @transform_3(%arg0: i32, %arg1: i32, %arg2: i32) -> (i32, i32) {
    %c0_i32 = arith.constant 0 : i32
    return %arg0, %arg1 : i32, i32
  }
  func.func @transform_4(%arg0: i32, %arg1: i32, %arg2: i32) -> (i32, i32) {
    %c0_i32 = arith.constant 0 : i32
    return %arg0, %arg1 : i32, i32
  }
}

module attributes {stable_mosaic.version = 11 : i64} {
  func.func @_matmul_fused_kernel(%arg0: i32, %arg1: i32, %arg2: i32, %arg3: memref<8x576xbf16, #tpu.memory_space<vmem>>, %arg4: memref<576x128xbf16, #tpu.memory_space<vmem>>, %arg5: memref<2x128xf32, #tpu.memory_space<vmem>>, %arg6: memref<8x128xbf16, #tpu.memory_space<vmem>>) attributes {dimension_semantics = [#tpu.dimension_semantics<parallel>, #tpu.dimension_semantics<parallel>, #tpu.dimension_semantics<arbitrary>], iteration_bounds = array<i64: 1, 1, 1>, scalar_prefetch = 0 : i64, scratch_operands = 0 : i64, tpu.core_type = #tpu.core_type<tc>, window_params = [{transform_indices = @transform_0, window_bounds = array<i64: 8, 576>}, {transform_indices = @transform_1, window_bounds = array<i64: 576, 128>}, {transform_indices = @transform_2, window_bounds = array<i64: 2, 128>}, {transform_indices = @transform_3, window_bounds = array<i64: 8, 128>}]} {
    %c0 = arith.constant 0 : index
    %c0_0 = arith.constant 0 : index
    %0 = vector.load %arg3[%c0, %c0_0] : memref<8x576xbf16, #tpu.memory_space<vmem>>, vector<8x576xbf16>
    %c0_1 = arith.constant 0 : index
    %c0_2 = arith.constant 0 : index
    %1 = vector.load %arg4[%c0_1, %c0_2] : memref<576x128xbf16, #tpu.memory_space<vmem>>, vector<576x128xbf16>
    %cst = arith.constant dense<0.000000e+00> : vector<8x128xf32>
    %2 = tpu.matmul %0, %1, %cst {dimension_numbers = #tpu.dot_dimension_numbers<[1], [0], [0], [1], [0, 0, 1, 1], [], []>} : vector<8x576xbf16>, vector<576x128xbf16>, vector<8x128xf32> -> vector<8x128xf32>
    %c0_3 = arith.constant 0 : index
    %c0_4 = arith.constant 0 : index
    %3 = vector.load %arg5[%c0_3, %c0_4] : memref<2x128xf32, #tpu.memory_space<vmem>>, vector<1x128xf32>
    %4 = vector.broadcast %3 : vector<1x128xf32> to vector<8x128xf32>
    %5 = arith.mulf %2, %4 : vector<8x128xf32>
    %c1 = arith.constant 1 : index
    %c0_5 = arith.constant 0 : index
    %6 = vector.load %arg5[%c1, %c0_5] : memref<2x128xf32, #tpu.memory_space<vmem>>, vector<1x128xf32>
    %7 = vector.broadcast %6 : vector<1x128xf32> to vector<8x128xf32>
    %8 = arith.addf %5, %7 : vector<8x128xf32>
    %cst_6 = arith.constant 0.000000e+00 : f32
    %9 = vector.broadcast %cst_6 : f32 to vector<8x128xf32>
    %10 = arith.maximumf %8, %9 : vector<8x128xf32>
    %11 = arith.truncf %10 : vector<8x128xf32> to vector<8x128xbf16>
    %c0_7 = arith.constant 0 : index
    %c0_8 = arith.constant 0 : index
    %12 = vector.load %arg6[%c0_7, %c0_8] : memref<8x128xbf16, #tpu.memory_space<vmem>>, vector<8x128xbf16>
    tpu.vector_store %arg6[%c0_7, %c0_8], %11 {strides = array<i32>} : memref<8x128xbf16, #tpu.memory_space<vmem>>, vector<8x128xbf16>,
    return
  }
  func.func @transform_0(%arg0: i32, %arg1: i32, %arg2: i32) -> (i32, i32) {
    %c0_i32 = arith.constant 0 : i32
    return %arg0, %arg2 : i32, i32
  }
  func.func @transform_1(%arg0: i32, %arg1: i32, %arg2: i32) -> (i32, i32) {
    %c0_i32 = arith.constant 0 : i32
    return %arg2, %arg1 : i32, i32
  }
  func.func @transform_2(%arg0: i32, %arg1: i32, %arg2: i32) -> (i32, i32) {
    %c0_i32 = arith.constant 0 : i32
    %c0_i32_0 = arith.constant 0 : i32
    return %c0_i32, %arg1 : i32, i32
  }
  func.func @transform_3(%arg0: i32, %arg1: i32, %arg2: i32) -> (i32, i32) {
    %c0_i32 = arith.constant 0 : i32
    return %arg0, %arg1 : i32, i32
  }
}

module attributes {stable_mosaic.version = 11 : i64} {
  func.func @_matmul_fused_kernel(%arg0: i32, %arg1: i32, %arg2: i32, %arg3: memref<8x64xbf16, #tpu.memory_space<vmem>>, %arg4: memref<64x128xbf16, #tpu.memory_space<vmem>>, %arg5: memref<2x128xf32, #tpu.memory_space<vmem>>, %arg6: memref<8x128xbf16, #tpu.memory_space<vmem>>) attributes {dimension_semantics = [#tpu.dimension_semantics<parallel>, #tpu.dimension_semantics<parallel>, #tpu.dimension_semantics<arbitrary>], iteration_bounds = array<i64: 1, 1, 1>, scalar_prefetch = 0 : i64, scratch_operands = 0 : i64, tpu.core_type = #tpu.core_type<tc>, window_params = [{transform_indices = @transform_0, window_bounds = array<i64: 8, 64>}, {transform_indices = @transform_1, window_bounds = array<i64: 64, 128>}, {transform_indices = @transform_2, window_bounds = array<i64: 2, 128>}, {transform_indices = @transform_3, window_bounds = array<i64: 8, 128>}]} {
    %c0 = arith.constant 0 : index
    %c0_0 = arith.constant 0 : index
    %0 = vector.load %arg3[%c0, %c0_0] : memref<8x64xbf16, #tpu.memory_space<vmem>>, vector<8x64xbf16>
    %c0_1 = arith.constant 0 : index
    %c0_2 = arith.constant 0 : index
    %1 = vector.load %arg4[%c0_1, %c0_2] : memref<64x128xbf16, #tpu.memory_space<vmem>>, vector<64x128xbf16>
    %cst = arith.constant dense<0.000000e+00> : vector<8x128xf32>
    %2 = tpu.matmul %0, %1, %cst {dimension_numbers = #tpu.dot_dimension_numbers<[1], [0], [0], [1], [0, 0, 1, 1], [], []>} : vector<8x64xbf16>, vector<64x128xbf16>, vector<8x128xf32> -> vector<8x128xf32>
    %c0_3 = arith.constant 0 : index
    %c0_4 = arith.constant 0 : index
    %3 = vector.load %arg5[%c0_3, %c0_4] : memref<2x128xf32, #tpu.memory_space<vmem>>, vector<1x128xf32>
    %4 = vector.broadcast %3 : vector<1x128xf32> to vector<8x128xf32>
    %5 = arith.mulf %2, %4 : vector<8x128xf32>
    %c1 = arith.constant 1 : index
    %c0_5 = arith.constant 0 : index
    %6 = vector.load %arg5[%c1, %c0_5] : memref<2x128xf32, #tpu.memory_space<vmem>>, vector<1x128xf32>
    %7 = vector.broadcast %6 : vector<1x128xf32> to vector<8x128xf32>
    %8 = arith.addf %5, %7 : vector<8x128xf32>
    %9 = arith.truncf %8 : vector<8x128xf32> to vector<8x128xbf16>
    %c0_6 = arith.constant 0 : index
    %c0_7 = arith.constant 0 : index
    %10 = vector.load %arg6[%c0_6, %c0_7] : memref<8x128xbf16, #tpu.memory_space<vmem>>, vector<8x128xbf16>
    tpu.vector_store %arg6[%c0_6, %c0_7], %9 {strides = array<i32>} : memref<8x128xbf16, #tpu.memory_space<vmem>>, vector<8x128xbf16>,
    return
  }
  func.func @transform_0(%arg0: i32, %arg1: i32, %arg2: i32) -> (i32, i32) {
    %c0_i32 = arith.constant 0 : i32
    return %arg0, %arg2 : i32, i32
  }
  func.func @transform_1(%arg0: i32, %arg1: i32, %arg2: i32) -> (i32, i32) {
    %c0_i32 = arith.constant 0 : i32
    return %arg2, %arg1 : i32, i32
  }
  func.func @transform_2(%arg0: i32, %arg1: i32, %arg2: i32) -> (i32, i32) {
    %c0_i32 = arith.constant 0 : i32
    %c0_i32_0 = arith.constant 0 : i32
    return %c0_i32, %arg1 : i32, i32
  }
  func.func @transform_3(%arg0: i32, %arg1: i32, %arg2: i32) -> (i32, i32) {
    %c0_i32 = arith.constant 0 : i32
    return %arg0, %arg1 : i32, i32
  }
}

module attributes {stable_mosaic.version = 11 : i64} {
  func.func @_matmul_fused_kernel(%arg0: i32, %arg1: i32, %arg2: i32, %arg3: memref<8x384xbf16, #tpu.memory_space<vmem>>, %arg4: memref<384x128xbf16, #tpu.memory_space<vmem>>, %arg5: memref<2x128xf32, #tpu.memory_space<vmem>>, %arg6: memref<8x128xbf16, #tpu.memory_space<vmem>>, %arg7: memref<8x128xbf16, #tpu.memory_space<vmem>>, %arg8: memref<8x128xf32, #tpu.memory_space<vmem>>) attributes {dimension_semantics = [#tpu.dimension_semantics<parallel>, #tpu.dimension_semantics<parallel>, #tpu.dimension_semantics<arbitrary>], iteration_bounds = array<i64: 1, 1, 3>, scalar_prefetch = 0 : i64, scratch_operands = 1 : i64, tpu.core_type = #tpu.core_type<tc>, window_params = [{transform_indices = @transform_0, window_bounds = array<i64: 8, 384>}, {transform_indices = @transform_1, window_bounds = array<i64: 384, 128>}, {transform_indices = @transform_2, window_bounds = array<i64: 2, 128>}, {transform_indices = @transform_3, window_bounds = array<i64: 8, 128>}, {transform_indices = @transform_4, window_bounds = array<i64: 8, 128>}]} {
    %c0_i32 = arith.constant 0 : i32
    %0 = arith.cmpi eq, %arg2, %c0_i32 : i32
    %1 = arith.extui %0 : i1 to i32
    %c0_i32_0 = arith.constant 0 : i32
    %2 = arith.cmpi ne, %1, %c0_i32_0 : i32
    scf.if %2 {
      %cst_9 = arith.constant 0.000000e+00 : f32
      %12 = vector.broadcast %cst_9 : f32 to vector<8x128xf32>
      %c0_10 = arith.constant 0 : index
      %c0_11 = arith.constant 0 : index
      %13 = vector.load %arg8[%c0_10, %c0_11] : memref<8x128xf32, #tpu.memory_space<vmem>>, vector<8x128xf32>
      tpu.vector_store %arg8[%c0_10, %c0_11], %12 {strides = array<i32>} : memref<8x128xf32, #tpu.memory_space<vmem>>, vector<8x128xf32>,
    } else {
    }
    %c0 = arith.constant 0 : index
    %c0_1 = arith.constant 0 : index
    %3 = vector.load %arg8[%c0, %c0_1] : memref<8x128xf32, #tpu.memory_space<vmem>>, vector<8x128xf32>
    %c0_2 = arith.constant 0 : index
    %c0_3 = arith.constant 0 : index
    %4 = vector.load %arg3[%c0_2, %c0_3] : memref<8x384xbf16, #tpu.memory_space<vmem>>, vector<8x384xbf16>
    %c0_4 = arith.constant 0 : index
    %c0_5 = arith.constant 0 : index
    %5 = vector.load %arg4[%c0_4, %c0_5] : memref<384x128xbf16, #tpu.memory_space<vmem>>, vector<384x128xbf16>
    %cst = arith.constant dense<0.000000e+00> : vector<8x128xf32>
    %6 = tpu.matmul %4, %5, %cst {dimension_numbers = #tpu.dot_dimension_numbers<[1], [0], [0], [1], [0, 0, 1, 1], [], []>} : vector<8x384xbf16>, vector<384x128xbf16>, vector<8x128xf32> -> vector<8x128xf32>
    %7 = arith.addf %3, %6 : vector<8x128xf32>
    %c0_6 = arith.constant 0 : index
    %c0_7 = arith.constant 0 : index
    %8 = vector.load %arg8[%c0_6, %c0_7] : memref<8x128xf32, #tpu.memory_space<vmem>>, vector<8x128xf32>
    tpu.vector_store %arg8[%c0_6, %c0_7], %7 {strides = array<i32>} : memref<8x128xf32, #tpu.memory_space<vmem>>, vector<8x128xf32>,
    %c2_i32 = arith.constant 2 : i32
    %9 = arith.cmpi eq, %arg2, %c2_i32 : i32
    %10 = arith.extui %9 : i1 to i32
    %c0_i32_8 = arith.constant 0 : i32
    %11 = arith.cmpi ne, %10, %c0_i32_8 : i32
    scf.if %11 {
      %c0_9 = arith.constant 0 : index
      %c0_10 = arith.constant 0 : index
      %12 = vector.load %arg8[%c0_9, %c0_10] : memref<8x128xf32, #tpu.memory_space<vmem>>, vector<8x128xf32>
      %c0_11 = arith.constant 0 : index
      %c0_12 = arith.constant 0 : index
      %13 = vector.load %arg5[%c0_11, %c0_12] : memref<2x128xf32, #tpu.memory_space<vmem>>, vector<1x128xf32>
      %14 = vector.broadcast %13 : vector<1x128xf32> to vector<8x128xf32>
      %15 = arith.mulf %12, %14 : vector<8x128xf32>
      %c1 = arith.constant 1 : index
      %c0_13 = arith.constant 0 : index
      %16 = vector.load %arg5[%c1, %c0_13] : memref<2x128xf32, #tpu.memory_space<vmem>>, vector<1x128xf32>
      %17 = vector.broadcast %16 : vector<1x128xf32> to vector<8x128xf32>
      %18 = arith.addf %15, %17 : vector<8x128xf32>
      %c0_14 = arith.constant 0 : index
      %c0_15 = arith.constant 0 : index
      %19 = vector.load %arg6[%c0_14, %c0_15] : memref<8x128xbf16, #tpu.memory_space<vmem>>, vector<8x128xbf16>
      %20 = arith.extf %19 : vector<8x128xbf16> to vector<8x128xf32>
      %21 = arith.addf %18, %20 : vector<8x128xf32>
      %cst_16 = arith.constant 0.000000e+00 : f32
      %22 = vector.broadcast %cst_16 : f32 to vector<8x128xf32>
      %23 = arith.maximumf %21, %22 : vector<8x128xf32>
      %24 = arith.truncf %23 : vector<8x128xf32> to vector<8x128xbf16>
      %c0_17 = arith.constant 0 : index
      %c0_18 = arith.constant 0 : index
      %25 = vector.load %arg7[%c0_17, %c0_18] : memref<8x128xbf16, #tpu.memory_space<vmem>>, vector<8x128xbf16>
      tpu.vector_store %arg7[%c0_17, %c0_18], %24 {strides = array<i32>} : memref<8x128xbf16, #tpu.memory_space<vmem>>, vector<8x128xbf16>,
    } else {
    }
    return
  }
  func.func @transform_0(%arg0: i32, %arg1: i32, %arg2: i32) -> (i32, i32) {
    %c0_i32 = arith.constant 0 : i32
    return %arg0, %arg2 : i32, i32
  }
  func.func @transform_1(%arg0: i32, %arg1: i32, %arg2: i32) -> (i32, i32) {
    %c0_i32 = arith.constant 0 : i32
    return %arg2, %arg1 : i32, i32
  }
  func.func @transform_2(%arg0: i32, %arg1: i32, %arg2: i32) -> (i32, i32) {
    %c0_i32 = arith.constant 0 : i32
    %c0_i32_0 = arith.constant 0 : i32
    return %c0_i32, %arg1 : i32, i32
  }
  func.func @transform_3(%arg0: i32, %arg1: i32, %arg2: i32) -> (i32, i32) {
    %c0_i32 = arith.constant 0 : i32
    return %arg0, %arg1 : i32, i32
  }
  func.func @transform_4(%arg0: i32, %arg1: i32, %arg2: i32) -> (i32, i32) {
    %c0_i32 = arith.constant 0 : i32
    return %arg0, %arg1 : i32, i32
  }
}

module attributes {stable_mosaic.version = 11 : i64} {
  func.func @_matmul_fused_kernel(%arg0: i32, %arg1: i32, %arg2: i32, %arg3: memref<2x512xbf16, #tpu.memory_space<vmem>>, %arg4: memref<512x10xbf16, #tpu.memory_space<vmem>>, %arg5: memref<2x10xf32, #tpu.memory_space<vmem>>, %arg6: memref<2x10xf32, #tpu.memory_space<vmem>>) attributes {dimension_semantics = [#tpu.dimension_semantics<parallel>, #tpu.dimension_semantics<parallel>, #tpu.dimension_semantics<arbitrary>], iteration_bounds = array<i64: 1, 1, 1>, scalar_prefetch = 0 : i64, scratch_operands = 0 : i64, tpu.core_type = #tpu.core_type<tc>, window_params = [{transform_indices = @transform_0, window_bounds = array<i64: 2, 512>}, {transform_indices = @transform_1, window_bounds = array<i64: 512, 10>}, {transform_indices = @transform_2, window_bounds = array<i64: 2, 10>}, {transform_indices = @transform_3, window_bounds = array<i64: 2, 10>}]} {
    %c0 = arith.constant 0 : index
    %c0_0 = arith.constant 0 : index
    %0 = vector.load %arg3[%c0, %c0_0] : memref<2x512xbf16, #tpu.memory_space<vmem>>, vector<2x512xbf16>
    %c0_1 = arith.constant 0 : index
    %c0_2 = arith.constant 0 : index
    %1 = vector.load %arg4[%c0_1, %c0_2] : memref<512x10xbf16, #tpu.memory_space<vmem>>, vector<512x10xbf16>
    %cst = arith.constant dense<0.000000e+00> : vector<2x10xf32>
    %2 = tpu.matmul %0, %1, %cst {dimension_numbers = #tpu.dot_dimension_numbers<[1], [0], [0], [1], [0, 0, 1, 1], [], []>} : vector<2x512xbf16>, vector<512x10xbf16>, vector<2x10xf32> -> vector<2x10xf32>
    %c0_3 = arith.constant 0 : index
    %c0_4 = arith.constant 0 : index
    %3 = vector.load %arg5[%c0_3, %c0_4] : memref<2x10xf32, #tpu.memory_space<vmem>>, vector<1x10xf32>
    %4 = vector.broadcast %3 : vector<1x10xf32> to vector<2x10xf32>
    %5 = arith.mulf %2, %4 : vector<2x10xf32>
    %c1 = arith.constant 1 : index
    %c0_5 = arith.constant 0 : index
    %6 = vector.load %arg5[%c1, %c0_5] : memref<2x10xf32, #tpu.memory_space<vmem>>, vector<1x10xf32>
    %7 = vector.broadcast %6 : vector<1x10xf32> to vector<2x10xf32>
    %8 = arith.addf %5, %7 : vector<2x10xf32>
    %c0_6 = arith.constant 0 : index
    %c0_7 = arith.constant 0 : index
    %9 = vector.load %arg6[%c0_6, %c0_7] : memref<2x10xf32, #tpu.memory_space<vmem>>, vector<2x10xf32>
    tpu.vector_store %arg6[%c0_6, %c0_7], %8 {strides = array<i32>} : memref<2x10xf32, #tpu.memory_space<vmem>>, vector<2x10xf32>,
    return
  }
  func.func @transform_0(%arg0: i32, %arg1: i32, %arg2: i32) -> (i32, i32) {
    %c0_i32 = arith.constant 0 : i32
    return %arg0, %arg2 : i32, i32
  }
  func.func @transform_1(%arg0: i32, %arg1: i32, %arg2: i32) -> (i32, i32) {
    %c0_i32 = arith.constant 0 : i32
    return %arg2, %arg1 : i32, i32
  }
  func.func @transform_2(%arg0: i32, %arg1: i32, %arg2: i32) -> (i32, i32) {
    %c0_i32 = arith.constant 0 : i32
    %c0_i32_0 = arith.constant 0 : i32
    return %c0_i32, %arg1 : i32, i32
  }
  func.func @transform_3(%arg0: i32, %arg1: i32, %arg2: i32) -> (i32, i32) {
    %c0_i32 = arith.constant 0 : i32
    return %arg0, %arg1 : i32, i32
  }
}

</mosaic_0001>

<bundles_post_ra>
// kernel: _lambda_.13
= control target key start
LH: loop header
LB: loop body
LE: loop exit
PB: predicated region body
PF: predicated region fallthrough
CT: control target
= control target key end

     0   :  { %s1011_s12 = smov 0   ;;  %s1013_s13 = smov 0   ;;  %s1234_s0 = inlined_call_operand.vmem [shape: bf16[512,27], index: 0, kind: input, shape index: {}]   ;;  %s1235_s1 = inlined_call_operand.vmem [shape: bf16[27,16], index: 1, kind: input, shape index: {}]   ;;  %s1236_s2 = inlined_call_operand.vmem [shape: f32[2,16], index: 2, kind: input, shape index: {}]   ;;  %s1237_s3 = inlined_call_operand.vmem [shape: bf16[512,16], index: 3, kind: output, shape index: {}]  }
   0x1   :  { %s1015_s14 = smov 0  }
   0x2 LB: > { %s32_s15 = sadd.s32 1, %s984_s13  ;;  %p820_p0 = scmp.ge.s32.totalorder %s988_s14, 1  ;;  %s988_s14 = sphi %s1015_s14, %s13_s14   ;;  %s984_s13 = sphi %s1013_s13, %s1239_s13   ;;  %s980_s12 = sphi %s1011_s12, %s1238_s12  }
   0x3   : > { %p34_p1 = scmp.ge.s32.totalorder %s32_s15, 2  ;;  %p189_p2 = scmp.lt.s32.totalorder %s988_s14, 3 }
   0x5   : > { %s1241_s15 = smov (%p34_p1, %s32_s15), 0  ;;  %p190_p3 = pnand %p820_p0, %p189_p2 }
   0x6   : > { %s821_s20 = sshll.u32 (!%p190_p3), %s980_s12, 5 }
   0x7   : > { %193 = sbr.rel (%p190_p3) target bundleno = 224 (0xe0), region = 32  ;;  %p232_p4 = scmp.lt.s32.totalorder (!%p190_p3), %s821_s20, 63 }
   0xc   : > { %v895_v0 = vld [vmem:[%s1235_s1 + $0x8] sm:$0xf]  ;;  %v932_v1 = vld [vmem:[%s1235_s1 + $0x8] sm:$0x30]  ;;  %vm439_vm0 = vcmask 1044480   ;;  %vm440_vm1 = vcmask 1045504  }
   0xd   : > { %v896_v2 = vor.u32 %v932_v1, %v895_v0  ;;  %v990_v3 = vmov 65535   ;;  %s1243_s20 = smov (!%p232_p4, %s821_s20), 63  ;;  %v931_v7 = vld [vmem:[%s1235_s1] sm:$0xff]  ;;  %vm390_vm2 = vcmask 220160   ;;  %vm667_vm3 = vcmask 125952  }
   0xe   : > { %v441_v4 = vsel %vm439_vm0, 4294967295, %v990_v3  ;;  %s822_s23 = sshll.u32 %s1243_s20, 2  ;;  %v1083_v24 = vld [vmem:[%s1236_s2] ss:$0 sm:$0xff]  ;;  %v1088_v25 = vld [vmem:[%s1236_s2 + $0x1] ss:$0 sm:$0xff] }
   0xf   : > { %v442_v5 = vsel %vm440_vm1, %v441_v4, 0  ;;  %s1046_s26 = scalar_lea.vmem %s1234_s0, %s822_s23  ;;  %s1099_s6 = scalar_lea.vmem %s1237_s3, %s822_s23 }
  0x10   : > { %v444_v6 = vand.u32 %v896_v2, %v442_v5  ;;  %v915_v8 = vld [vmem:[%s1046_s26] sm:$0xff]  ;;  %v916_v12 = vld [vmem:[%s1046_s26 + $0x8] sm:$0xff]  ;;  %v917_v16 = vld [vmem:[%s1046_s26 + $0x10] sm:$0xff] }
  0x11   : > { %v919_v9 = vld [vmem:[%s1046_s26 + $0x20] sm:$0xff]  ;;  %v920_v13 = vld [vmem:[%s1046_s26 + $0x28] sm:$0xff]  ;;  %v921_v17 = vld [vmem:[%s1046_s26 + $0x30] sm:$0xff] }
  0x12   : > { %452 = vmatpush.bf16.msra.mxu0 %v444_v6  ;;  %933 = vmatpush.bf16.msra.mxu1 %v444_v6  ;;  %v923_v10 = vld [vmem:[%s1046_s26 + $0x40] sm:$0xff]  ;;  %v924_v14 = vld [vmem:[%s1046_s26 + $0x48] sm:$0xff]  ;;  %v925_v18 = vld [vmem:[%s1046_s26 + $0x50] sm:$0xff] }
  0x13   : > { %934 = vmatpush.bf16.msra.mxu2 %v444_v6  ;;  %935 = vmatpush.bf16.msra.mxu3 %v444_v6  ;;  %v927_v11 = vld [vmem:[%s1046_s26 + $0x60] sm:$0xff]  ;;  %v928_v15 = vld [vmem:[%s1046_s26 + $0x68] sm:$0xff]  ;;  %v929_v19 = vld [vmem:[%s1046_s26 + $0x70] sm:$0xff] }
  0x14   : > { %v918_v20 = vld [vmem:[%s1046_s26 + $0x18] sm:$0xff] }
  0x15   : > { %v922_v21 = vld [vmem:[%s1046_s26 + $0x38] sm:$0xff] }
  0x16   : > { %453 = vmatpush.bf16.msra.mxu0 %v931_v7  ;;  %936 = vmatpush.bf16.msra.mxu1 %v931_v7  ;;  %v926_v22 = vld [vmem:[%s1046_s26 + $0x58] sm:$0xff] }
  0x17   : > { %937 = vmatpush.bf16.msra.mxu2 %v931_v7  ;;  %938 = vmatpush.bf16.msra.mxu3 %v931_v7  ;;  %v930_v23 = vld [vmem:[%s1046_s26 + $0x78] sm:$0xff] }
  0x19   : > { %897 = vmatmul.msk.bf16.vlgmr.msra.gmra.mxu0 %vm390_vm2, %v915_v8  ;;  %901 = vmatmul.msk.bf16.vlgmr.msra.gmra.mxu1 %vm390_vm2, %v919_v9 }
  0x1a   : > { %905 = vmatmul.msk.bf16.vlgmr.msra.gmra.mxu2 %vm390_vm2, %v923_v10  ;;  %909 = vmatmul.msk.bf16.vlgmr.msra.gmra.mxu3 %vm390_vm2, %v927_v11 }
  0x29   : > { %898 = vmatmul.msk.bf16.gmra.mxu0 %vm390_vm2, %v916_v12  ;;  %902 = vmatmul.msk.bf16.gmra.mxu1 %vm390_vm2, %v920_v13 }
  0x2a   : > { %906 = vmatmul.msk.bf16.gmra.mxu2 %vm390_vm2, %v924_v14  ;;  %910 = vmatmul.msk.bf16.gmra.mxu3 %vm390_vm2, %v928_v15 }
  0x39   : > { %899 = vmatmul.msk.bf16.gmra.mxu0 %vm390_vm2, %v917_v16  ;;  %903 = vmatmul.msk.bf16.gmra.mxu1 %vm390_vm2, %v921_v17 }
  0x3a   : > { %907 = vmatmul.msk.bf16.gmra.mxu2 %vm390_vm2, %v925_v18  ;;  %911 = vmatmul.msk.bf16.gmra.mxu3 %vm390_vm2, %v929_v19 }
  0x49   : > { %900 = vmatmul.msk.bf16.gmra.mxu0 %vm390_vm2, %v918_v20  ;;  %904 = vmatmul.msk.bf16.gmra.mxu1 %vm390_vm2, %v922_v21 }
  0x4a   : > { %908 = vmatmul.msk.bf16.gmra.mxu2 %vm390_vm2, %v926_v22  ;;  %912 = vmatmul.msk.bf16.gmra.mxu3 %vm390_vm2, %v930_v23 }
  0x96   : > { %v455_v26 = vpop.f32.mrf.mxu0  ;;  %v475_v27 = vpop.f32.mrf.mxu1 }
  0x97   : > { %v537_v28 = vmul.f32 %v1083_v24, %v455_v26  ;;  %v545_v29 = vmul.f32 %v1083_v24, %v475_v27 }
  0x99   : > { %v571_v30 = vadd.f32 %v1088_v25, %v537_v28  ;;  %v579_v31 = vadd.f32 %v1088_v25, %v545_v29 }
  0x9b   : > { %v603_v32 = vmax.f32 %v571_v30, 0.0  ;;  %v611_v33 = vmax.f32 %v579_v31, 0.0 }
  0x9d   : > { %v635_v34 = vpack.c.bf16 %v603_v32, %v603_v32  ;;  %v643_v35 = vpack.c.bf16 %v611_v33, %v611_v33  ;;  %v495_v36 = vpop.f32.mrf.mxu2  ;;  %v515_v37 = vpop.f32.mrf.mxu3 }
  0x9e   : > { %v553_v38 = vmul.f32 %v1083_v24, %v495_v36  ;;  %v561_v39 = vmul.f32 %v1083_v24, %v515_v37  ;;  %v457_v40 = vpop.f32.mrf.mxu0  ;;  %v477_v41 = vpop.f32.mrf.mxu1 }
  0x9f   : > { %668 = vst.msk [vmem:[%s1099_s6] sm:$0xf] %vm667_vm3, %v635_v34  ;;  %v538_v42 = vmul.f32 %v1083_v24, %v457_v40  ;;  %v546_v43 = vmul.f32 %v1083_v24, %v477_v41 }
  0xa0   : > { %676 = vst.msk [vmem:[%s1099_s6 + $0x20] sm:$0xf] %vm667_vm3, %v643_v35  ;;  %v587_v44 = vadd.f32 %v1088_v25, %v553_v38  ;;  %v595_v45 = vadd.f32 %v1088_v25, %v561_v39 }
  0xa1   : > { %v572_v46 = vadd.f32 %v1088_v25, %v538_v42  ;;  %v580_v47 = vadd.f32 %v1088_v25, %v546_v43 }
  0xa2   : > { %v619_v48 = vmax.f32 %v587_v44, 0.0  ;;  %v627_v49 = vmax.f32 %v595_v45, 0.0 }
  0xa3   : > { %v604_v50 = vmax.f32 %v572_v46, 0.0  ;;  %v612_v51 = vmax.f32 %v580_v47, 0.0 }
  0xa4   : > { %v651_v52 = vpack.c.bf16 %v619_v48, %v619_v48  ;;  %v659_v53 = vpack.c.bf16 %v627_v49, %v627_v49 }
  0xa5   : > { %v636_v54 = vpack.c.bf16 %v604_v50, %v604_v50  ;;  %v644_v55 = vpack.c.bf16 %v612_v51, %v612_v51  ;;  %v497_v56 = vpop.f32.mrf.mxu2  ;;  %v517_v57 = vpop.f32.mrf.mxu3 }
  0xa6   : > { %684 = vst.msk [vmem:[%s1099_s6 + $0x40] sm:$0xf] %vm667_vm3, %v651_v52  ;;  %v554_v58 = vmul.f32 %v1083_v24, %v497_v56  ;;  %v562_v59 = vmul.f32 %v1083_v24, %v517_v57  ;;  %v460_v60 = vpop.f32.mrf.mxu0  ;;  %v480_v61 = vpop.f32.mrf.mxu1 }
  0xa7   : > { %692 = vst.msk [vmem:[%s1099_s6 + $0x60] sm:$0xf] %vm667_vm3, %v659_v53  ;;  %v539_v62 = vmul.f32 %v1083_v24, %v460_v60  ;;  %v547_v63 = vmul.f32 %v1083_v24, %v480_v61 }
  0xa8   : > { %669 = vst.msk [vmem:[%s1099_s6 + $0x4] sm:$0xf] %vm667_vm3, %v636_v54  ;;  %v588_v0 = vadd.f32 %v1088_v25, %v554_v58  ;;  %v596_v1 = vadd.f32 %v1088_v25, %v562_v59 }
  0xa9   : > { %677 = vst.msk [vmem:[%s1099_s6 + $0x24] sm:$0xf] %vm667_vm3, %v644_v55  ;;  %v573_v2 = vadd.f32 %v1088_v25, %v539_v62  ;;  %v581_v3 = vadd.f32 %v1088_v25, %v547_v63 }
  0xaa   : > { %v620_v4 = vmax.f32 %v588_v0, 0.0  ;;  %v628_v5 = vmax.f32 %v596_v1, 0.0 }
  0xab   : > { %v605_v6 = vmax.f32 %v573_v2, 0.0  ;;  %v613_v7 = vmax.f32 %v581_v3, 0.0 }
  0xac   : > { %v652_v8 = vpack.c.bf16 %v620_v4, %v620_v4  ;;  %v660_v9 = vpack.c.bf16 %v628_v5, %v628_v5 }
  0xad   : > { %v637_v10 = vpack.c.bf16 %v605_v6, %v605_v6  ;;  %v645_v11 = vpack.c.bf16 %v613_v7, %v613_v7  ;;  %v500_v12 = vpop.f32.mrf.mxu2  ;;  %v520_v13 = vpop.f32.mrf.mxu3 }
  0xae   : > { %685 = vst.msk [vmem:[%s1099_s6 + $0x44] sm:$0xf] %vm667_vm3, %v652_v8  ;;  %v555_v14 = vmul.f32 %v1083_v24, %v500_v12  ;;  %v563_v15 = vmul.f32 %v1083_v24, %v520_v13  ;;  %v462_v16 = vpop.f32.mrf.mxu0  ;;  %v482_v17 = vpop.f32.mrf.mxu1 }
  0xaf   : > { %693 = vst.msk [vmem:[%s1099_s6 + $0x64] sm:$0xf] %vm667_vm3, %v660_v9  ;;  %v540_v18 = vmul.f32 %v1083_v24, %v462_v16  ;;  %v548_v19 = vmul.f32 %v1083_v24, %v482_v17 }
  0xb0   : > { %670 = vst.msk [vmem:[%s1099_s6 + $0x8] sm:$0xf] %vm667_vm3, %v637_v10  ;;  %v589_v20 = vadd.f32 %v1088_v25, %v555_v14  ;;  %v597_v21 = vadd.f32 %v1088_v25, %v563_v15 }
  0xb1   : > { %678 = vst.msk [vmem:[%s1099_s6 + $0x28] sm:$0xf] %vm667_vm3, %v645_v11  ;;  %v574_v22 = vadd.f32 %v1088_v25, %v540_v18  ;;  %v582_v23 = vadd.f32 %v1088_v25, %v548_v19 }
  0xb2   : > { %v621_v26 = vmax.f32 %v589_v20, 0.0  ;;  %v629_v27 = vmax.f32 %v597_v21, 0.0 }
  0xb3   : > { %v606_v28 = vmax.f32 %v574_v22, 0.0  ;;  %v614_v29 = vmax.f32 %v582_v23, 0.0 }
  0xb4   : > { %v653_v30 = vpack.c.bf16 %v621_v26, %v621_v26  ;;  %v661_v31 = vpack.c.bf16 %v629_v27, %v629_v27 }
  0xb5   : > { %v638_v32 = vpack.c.bf16 %v606_v28, %v606_v28  ;;  %v646_v33 = vpack.c.bf16 %v614_v29, %v614_v29  ;;  %v502_v34 = vpop.f32.mrf.mxu2  ;;  %v522_v35 = vpop.f32.mrf.mxu3 }
  0xb6   : > { %686 = vst.msk [vmem:[%s1099_s6 + $0x48] sm:$0xf] %vm667_vm3, %v653_v30  ;;  %v556_v36 = vmul.f32 %v1083_v24, %v502_v34  ;;  %v564_v37 = vmul.f32 %v1083_v24, %v522_v35  ;;  %v465_v38 = vpop.f32.mrf.mxu0  ;;  %v485_v39 = vpop.f32.mrf.mxu1 }
  0xb7   : > { %694 = vst.msk [vmem:[%s1099_s6 + $0x68] sm:$0xf] %vm667_vm3, %v661_v31  ;;  %v541_v40 = vmul.f32 %v1083_v24, %v465_v38  ;;  %v549_v41 = vmul.f32 %v1083_v24, %v485_v39 }
  0xb8   : > { %671 = vst.msk [vmem:[%s1099_s6 + $0xc] sm:$0xf] %vm667_vm3, %v638_v32  ;;  %v590_v42 = vadd.f32 %v1088_v25, %v556_v36  ;;  %v598_v43 = vadd.f32 %v1088_v25, %v564_v37 }
  0xb9   : > { %679 = vst.msk [vmem:[%s1099_s6 + $0x2c] sm:$0xf] %vm667_vm3, %v646_v33  ;;  %v575_v44 = vadd.f32 %v1088_v25, %v541_v40  ;;  %v583_v45 = vadd.f32 %v1088_v25, %v549_v41 }
  0xba   : > { %v622_v46 = vmax.f32 %v590_v42, 0.0  ;;  %v630_v47 = vmax.f32 %v598_v43, 0.0 }
  0xbb   : > { %v607_v48 = vmax.f32 %v575_v44, 0.0  ;;  %v615_v49 = vmax.f32 %v583_v45, 0.0 }
  0xbc   : > { %v654_v50 = vpack.c.bf16 %v622_v46, %v622_v46  ;;  %v662_v51 = vpack.c.bf16 %v630_v47, %v630_v47 }
  0xbd   : > { %v639_v52 = vpack.c.bf16 %v607_v48, %v607_v48  ;;  %v647_v53 = vpack.c.bf16 %v615_v49, %v615_v49  ;;  %v505_v54 = vpop.f32.mrf.mxu2  ;;  %v525_v55 = vpop.f32.mrf.mxu3 }
  0xbe   : > { %687 = vst.msk [vmem:[%s1099_s6 + $0x4c] sm:$0xf] %vm667_vm3, %v654_v50  ;;  %v557_v56 = vmul.f32 %v1083_v24, %v505_v54  ;;  %v565_v57 = vmul.f32 %v1083_v24, %v525_v55  ;;  %v467_v58 = vpop.f32.mrf.mxu0  ;;  %v487_v59 = vpop.f32.mrf.mxu1 }
  0xbf   : > { %695 = vst.msk [vmem:[%s1099_s6 + $0x6c] sm:$0xf] %vm667_vm3, %v662_v51  ;;  %v542_v60 = vmul.f32 %v1083_v24, %v467_v58  ;;  %v550_v61 = vmul.f32 %v1083_v24, %v487_v59 }
  0xc0   : > { %672 = vst.msk [vmem:[%s1099_s6 + $0x10] sm:$0xf] %vm667_vm3, %v639_v52  ;;  %v591_v62 = vadd.f32 %v1088_v25, %v557_v56  ;;  %v599_v63 = vadd.f32 %v1088_v25, %v565_v57 }
  0xc1   : > { %680 = vst.msk [vmem:[%s1099_s6 + $0x30] sm:$0xf] %vm667_vm3, %v647_v53  ;;  %v576_v0 = vadd.f32 %v1088_v25, %v542_v60  ;;  %v584_v1 = vadd.f32 %v1088_v25, %v550_v61 }
  0xc2   : > { %v623_v2 = vmax.f32 %v591_v62, 0.0  ;;  %v631_v3 = vmax.f32 %v599_v63, 0.0 }
  0xc3   : > { %v608_v4 = vmax.f32 %v576_v0, 0.0  ;;  %v616_v5 = vmax.f32 %v584_v1, 0.0 }
  0xc4   : > { %v655_v6 = vpack.c.bf16 %v623_v2, %v623_v2  ;;  %v663_v7 = vpack.c.bf16 %v631_v3, %v631_v3 }
  0xc5   : > { %v640_v8 = vpack.c.bf16 %v608_v4, %v608_v4  ;;  %v648_v9 = vpack.c.bf16 %v616_v5, %v616_v5  ;;  %v507_v10 = vpop.f32.mrf.mxu2  ;;  %v527_v11 = vpop.f32.mrf.mxu3 }
  0xc6   : > { %688 = vst.msk [vmem:[%s1099_s6 + $0x50] sm:$0xf] %vm667_vm3, %v655_v6  ;;  %v558_v12 = vmul.f32 %v1083_v24, %v507_v10  ;;  %v566_v13 = vmul.f32 %v1083_v24, %v527_v11  ;;  %v470_v14 = vpop.f32.mrf.mxu0  ;;  %v490_v15 = vpop.f32.mrf.mxu1 }
  0xc7   : > { %696 = vst.msk [vmem:[%s1099_s6 + $0x70] sm:$0xf] %vm667_vm3, %v663_v7  ;;  %v543_v16 = vmul.f32 %v1083_v24, %v470_v14  ;;  %v551_v17 = vmul.f32 %v1083_v24, %v490_v15 }
  0xc8   : > { %673 = vst.msk [vmem:[%s1099_s6 + $0x14] sm:$0xf] %vm667_vm3, %v640_v8  ;;  %v592_v18 = vadd.f32 %v1088_v25, %v558_v12  ;;  %v600_v19 = vadd.f32 %v1088_v25, %v566_v13 }
  0xc9   : > { %681 = vst.msk [vmem:[%s1099_s6 + $0x34] sm:$0xf] %vm667_vm3, %v648_v9  ;;  %v577_v20 = vadd.f32 %v1088_v25, %v543_v16  ;;  %v585_v21 = vadd.f32 %v1088_v25, %v551_v17 }
  0xca   : > { %v624_v22 = vmax.f32 %v592_v18, 0.0  ;;  %v632_v23 = vmax.f32 %v600_v19, 0.0 }
  0xcb   : > { %v609_v26 = vmax.f32 %v577_v20, 0.0  ;;  %v617_v27 = vmax.f32 %v585_v21, 0.0 }
  0xcc   : > { %v656_v28 = vpack.c.bf16 %v624_v22, %v624_v22  ;;  %v664_v29 = vpack.c.bf16 %v632_v23, %v632_v23 }
  0xcd   : > { %v641_v30 = vpack.c.bf16 %v609_v26, %v609_v26  ;;  %v649_v31 = vpack.c.bf16 %v617_v27, %v617_v27  ;;  %v510_v32 = vpop.f32.mrf.mxu2  ;;  %v530_v33 = vpop.f32.mrf.mxu3 }
  0xce   : > { %689 = vst.msk [vmem:[%s1099_s6 + $0x54] sm:$0xf] %vm667_vm3, %v656_v28  ;;  %v559_v34 = vmul.f32 %v1083_v24, %v510_v32  ;;  %v567_v35 = vmul.f32 %v1083_v24, %v530_v33  ;;  %v472_v36 = vpop.f32.mrf.mxu0  ;;  %v492_v37 = vpop.f32.mrf.mxu1 }
  0xcf   : > { %697 = vst.msk [vmem:[%s1099_s6 + $0x74] sm:$0xf] %vm667_vm3, %v664_v29  ;;  %v544_v38 = vmul.f32 %v1083_v24, %v472_v36  ;;  %v552_v39 = vmul.f32 %v1083_v24, %v492_v37 }
  0xd0   : > { %674 = vst.msk [vmem:[%s1099_s6 + $0x18] sm:$0xf] %vm667_vm3, %v641_v30  ;;  %v593_v40 = vadd.f32 %v1088_v25, %v559_v34  ;;  %v601_v41 = vadd.f32 %v1088_v25, %v567_v35 }
  0xd1   : > { %682 = vst.msk [vmem:[%s1099_s6 + $0x38] sm:$0xf] %vm667_vm3, %v649_v31  ;;  %v578_v42 = vadd.f32 %v1088_v25, %v544_v38  ;;  %v586_v43 = vadd.f32 %v1088_v25, %v552_v39 }
  0xd2   : > { %v625_v44 = vmax.f32 %v593_v40, 0.0  ;;  %v633_v45 = vmax.f32 %v601_v41, 0.0 }
  0xd3   : > { %v610_v46 = vmax.f32 %v578_v42, 0.0  ;;  %v618_v47 = vmax.f32 %v586_v43, 0.0 }
  0xd4   : > { %v657_v48 = vpack.c.bf16 %v625_v44, %v625_v44  ;;  %v665_v49 = vpack.c.bf16 %v633_v45, %v633_v45 }
  0xd5   : > { %v642_v50 = vpack.c.bf16 %v610_v46, %v610_v46  ;;  %v650_v51 = vpack.c.bf16 %v618_v47, %v618_v47  ;;  %v512_v52 = vpop.f32.mrf.mxu2  ;;  %v532_v53 = vpop.f32.mrf.mxu3 }
  0xd6   : > { %690 = vst.msk [vmem:[%s1099_s6 + $0x58] sm:$0xf] %vm667_vm3, %v657_v48  ;;  %v560_v54 = vmul.f32 %v1083_v24, %v512_v52  ;;  %v568_v55 = vmul.f32 %v1083_v24, %v532_v53 }
  0xd7   : > { %698 = vst.msk [vmem:[%s1099_s6 + $0x78] sm:$0xf] %vm667_vm3, %v665_v49 }
  0xd8   : > { %675 = vst.msk [vmem:[%s1099_s6 + $0x1c] sm:$0xf] %vm667_vm3, %v642_v50  ;;  %v594_v56 = vadd.f32 %v1088_v25, %v560_v54  ;;  %v602_v57 = vadd.f32 %v1088_v25, %v568_v55 }
  0xd9   : > { %683 = vst.msk [vmem:[%s1099_s6 + $0x3c] sm:$0xf] %vm667_vm3, %v650_v51 }
  0xda   : > { %v626_v58 = vmax.f32 %v594_v56, 0.0  ;;  %v634_v59 = vmax.f32 %v602_v57, 0.0 }
  0xdc   : > { %v658_v60 = vpack.c.bf16 %v626_v58, %v626_v58  ;;  %v666_v61 = vpack.c.bf16 %v634_v59, %v634_v59 }
  0xde   : > { %691 = vst.msk [vmem:[%s1099_s6 + $0x5c] sm:$0xf] %vm667_vm3, %v658_v60 }
  0xdf   : > { %699 = vst.msk [vmem:[%s1099_s6 + $0x7c] sm:$0xf] %vm667_vm3, %v666_v61 }
  0xe0 PF: > { %s13_s14 = sadd.s32 1, %s988_s14   ;;  %s1238_s12 = smov %s984_s13 }
  0xe1   : > { %p10_p5 = scmp.ge.s32.totalorder %s13_s14, 4   ;;  %s1239_s13 = smov %s1241_s15 }
  0xe3   :  { %12 = sbr.rel (!%p10_p5) target bundleno = 2 (0x2), region = 68 }

// kernel: _lambda_.15
= control target key start
LH: loop header
LB: loop body
LE: loop exit
PB: predicated region body
PF: predicated region fallthrough
CT: control target
= control target key end

     0   :  { %s1600_s15 = smov 0   ;;  %s1602_s16 = smov 0   ;;  %s1919_s0 = inlined_call_operand.vmem [shape: bf16[512,144], index: 0, kind: input, shape index: {}]   ;;  %s1920_s1 = inlined_call_operand.vmem [shape: bf16[144,16], index: 1, kind: input, shape index: {}]   ;;  %s1921_s2 = inlined_call_operand.vmem [shape: f32[2,16], index: 2, kind: input, shape index: {}]   ;;  %s1922_s3 = inlined_call_operand.vmem [shape: bf16[512,16], index: 3, kind: input, shape index: {}]   ;;  %s1923_s4 = inlined_call_operand.vmem [shape: bf16[512,16], index: 4, kind: output, shape index: {}]  }
   0x1   :  { %s1604_s17 = smov 0  }
   0x2 LB: > { %s33_s18 = sadd.s32 1, %s1569_s16  ;;  %p1205_p0 = scmp.ge.s32.totalorder %s1573_s17, 1  ;;  %s1573_s17 = sphi %s1604_s17, %s14_s17   ;;  %s1569_s16 = sphi %s1602_s16, %s1925_s16   ;;  %s1565_s15 = sphi %s1600_s15, %s1924_s15  }
   0x3   : > { %p35_p1 = scmp.ge.s32.totalorder %s33_s18, 2  ;;  %p233_p2 = scmp.lt.s32.totalorder %s1573_s17, 3 }
   0x5   : > { %s1927_s18 = smov (%p35_p1, %s33_s18), 0  ;;  %p234_p3 = pnand %p1205_p0, %p233_p2 }
   0x6   : > { %s1206_s23 = sshll.u32 (!%p234_p3), %s1565_s15, 5 }
   0x7   : > { %237 = sbr.rel (%p234_p3) target bundleno = 309 (0x135), region = 36  ;;  %p289_p4 = scmp.lt.s32.totalorder (!%p234_p3), %s1206_s23, 63 }
   0xc   : > { %v1435_v0 = vld [vmem:[%s1920_s1 + $0x38] sm:$0xff]  ;;  %v1436_v1 = vld [vmem:[%s1920_s1 + $0x40] sm:$0xff]  ;;  %v1434_v2 = vld [vmem:[%s1920_s1 + $0x30] sm:$0xff]  ;;  %s1929_s23 = smov (!%p289_p4, %s1206_s23), 63  ;;  %vm579_vm0 = vcmask 130048   ;;  %vm1034_vm1 = vcmask 125952  }
   0xd   : > { %628 = vmatpush.bf16.msra.mxu0 %v1435_v0  ;;  %1516 = vmatpush.bf16.msra.mxu2 %v1435_v0  ;;  %s1395_s26 = sshll.u32 %s1929_s23, 3  ;;  %v1433_v3 = vld [vmem:[%s1920_s1 + $0x28] sm:$0xff]  ;;  %v1432_v7 = vld [vmem:[%s1920_s1 + $0x20] sm:$0xff]  ;;  %v1431_v11 = vld [vmem:[%s1920_s1 + $0x18] sm:$0xff]  ;;  %s1210_s19 = sshll.u32 %s1929_s23, 2 }
   0xe   : > { %724 = vmatpush.bf16.msra.mxu1 %v1436_v1  ;;  %1524 = vmatpush.bf16.msra.mxu3 %v1436_v1  ;;  %s1633_s29 = scalar_lea.vmem %s1919_s0, %s1395_s26  ;;  %v1430_v12 = vld [vmem:[%s1920_s1 + $0x10] sm:$0xff]  ;;  %v1429_v16 = vld [vmem:[%s1920_s1 + $0x8] sm:$0xff]  ;;  %v1428_v20 = vld [vmem:[%s1920_s1] sm:$0xff]  ;;  %s1737_s22 = scalar_lea.vmem %s1922_s3, %s1210_s19 }
   0xf   : > { %v1396_v4 = vld [vmem:[%s1633_s29 + $0x4] sm:$0xf]  ;;  %v1217_v5 = vld [vmem:[%s1633_s29 + $0x8] sm:$0xf0]  ;;  %v1414_v8 = vld [vmem:[%s1633_s29 + $0x94] sm:$0xf] }
  0x10   : > { %v1220_v6 = vor.u32 %v1396_v4, %v1217_v5  ;;  %v1289_v9 = vld [vmem:[%s1633_s29 + $0x98] sm:$0xf0]  ;;  %v1398_v13 = vld [vmem:[%s1633_s29 + $0x14] sm:$0xf]  ;;  %v1416_v17 = vld [vmem:[%s1633_s29 + $0xa4] sm:$0xf] }
  0x11   : > { %629 = vmatpush.bf16.msra.mxu0 %v1434_v2  ;;  %1517 = vmatpush.bf16.msra.mxu2 %v1434_v2  ;;  %v1292_v10 = vor.u32 %v1414_v8, %v1289_v9  ;;  %v1225_v14 = vld [vmem:[%s1633_s29 + $0x18] sm:$0xf0]  ;;  %v1297_v18 = vld [vmem:[%s1633_s29 + $0xa8] sm:$0xf0]  ;;  %v1215_v21 = vld [vmem:[%s1633_s29] sm:$0xf] }
  0x12   : > { %1377 = vmatmul.msk.bf16.vlgmr.msra.gmra.mxu1 %vm579_vm0, %v1220_v6  ;;  %v1228_v15 = vor.u32 %v1398_v13, %v1225_v14  ;;  %v1300_v19 = vor.u32 %v1416_v17, %v1297_v18  ;;  %v1397_v22 = vld [vmem:[%s1633_s29 + $0x4] sm:$0xf0]  ;;  %v1279_v23 = vld [vmem:[%s1633_s29 + $0x80] sm:$0xf]  ;;  %v1400_v27 = vld [vmem:[%s1633_s29 + $0x24] sm:$0xf] }
  0x13   : > { %1386 = vmatmul.msk.bf16.vlgmr.msra.gmra.mxu3 %vm579_vm0, %v1292_v10  ;;  %v1413_v24 = vld [vmem:[%s1633_s29 + $0x84] sm:$0xf0]  ;;  %v1216_v25 = vor.u32 %v1397_v22, %v1215_v21  ;;  %v1233_v28 = vld [vmem:[%s1633_s29 + $0x28] sm:$0xf0]  ;;  %v1418_v30 = vld [vmem:[%s1633_s29 + $0xb4] sm:$0xf] }
  0x14   : > { %v1280_v26 = vor.u32 %v1413_v24, %v1279_v23  ;;  %v1236_v29 = vor.u32 %v1400_v27, %v1233_v28  ;;  %v1305_v31 = vld [vmem:[%s1633_s29 + $0xb8] sm:$0xf0]  ;;  %v1223_v33 = vld [vmem:[%s1633_s29 + $0x10] sm:$0xf]  ;;  %v1399_v34 = vld [vmem:[%s1633_s29 + $0x14] sm:$0xf0] }
  0x15   : > { %630 = vmatpush.bf16.msra.mxu0 %v1433_v3  ;;  %1518 = vmatpush.bf16.msra.mxu2 %v1433_v3  ;;  %v1308_v32 = vor.u32 %v1418_v30, %v1305_v31  ;;  %v1287_v35 = vld [vmem:[%s1633_s29 + $0x90] sm:$0xf]  ;;  %v1415_v36 = vld [vmem:[%s1633_s29 + $0x94] sm:$0xf0]  ;;  %v1224_v37 = vor.u32 %v1399_v34, %v1223_v33  ;;  %v1402_v39 = vld [vmem:[%s1633_s29 + $0x34] sm:$0xf] }
  0x16   : > { %v1288_v38 = vor.u32 %v1415_v36, %v1287_v35  ;;  %v1241_v40 = vld [vmem:[%s1633_s29 + $0x38] sm:$0xf0]  ;;  %v1420_v42 = vld [vmem:[%s1633_s29 + $0xc4] sm:$0xf]  ;;  %v1313_v43 = vld [vmem:[%s1633_s29 + $0xc8] sm:$0xf0] }
  0x17   : > { %v1244_v41 = vor.u32 %v1402_v39, %v1241_v40  ;;  %v1316_v44 = vor.u32 %v1420_v42, %v1313_v43  ;;  %v1231_v45 = vld [vmem:[%s1633_s29 + $0x20] sm:$0xf]  ;;  %v1401_v46 = vld [vmem:[%s1633_s29 + $0x24] sm:$0xf0]  ;;  %v1404_v51 = vld [vmem:[%s1633_s29 + $0x44] sm:$0xf] }
  0x18   : > { %v1295_v47 = vld [vmem:[%s1633_s29 + $0xa0] sm:$0xf]  ;;  %v1417_v48 = vld [vmem:[%s1633_s29 + $0xa4] sm:$0xf0]  ;;  %v1232_v49 = vor.u32 %v1401_v46, %v1231_v45  ;;  %v1249_v52 = vld [vmem:[%s1633_s29 + $0x48] sm:$0xf0] }
  0x19   : > { %631 = vmatpush.bf16.msra.mxu0 %v1432_v7  ;;  %1519 = vmatpush.bf16.msra.mxu2 %v1432_v7  ;;  %v1296_v50 = vor.u32 %v1417_v48, %v1295_v47  ;;  %v1252_v53 = vor.u32 %v1404_v51, %v1249_v52  ;;  %v1422_v54 = vld [vmem:[%s1633_s29 + $0xd4] sm:$0xf]  ;;  %v1321_v55 = vld [vmem:[%s1633_s29 + $0xd8] sm:$0xf0]  ;;  %v1239_v57 = vld [vmem:[%s1633_s29 + $0x30] sm:$0xf] }
  0x1a   : > { %v1324_v56 = vor.u32 %v1422_v54, %v1321_v55  ;;  %v1403_v58 = vld [vmem:[%s1633_s29 + $0x34] sm:$0xf0]  ;;  %v1303_v59 = vld [vmem:[%s1633_s29 + $0xb0] sm:$0xf]  ;;  %v1406_v63 = vld [vmem:[%s1633_s29 + $0x54] sm:$0xf] }
  0x1b   : > { %v1419_v60 = vld [vmem:[%s1633_s29 + $0xb4] sm:$0xf0]  ;;  %v1240_v61 = vor.u32 %v1403_v58, %v1239_v57  ;;  %v1257_v0 = vld [vmem:[%s1633_s29 + $0x58] sm:$0xf0]  ;;  %v1424_v2 = vld [vmem:[%s1633_s29 + $0xe4] sm:$0xf] }
  0x1c   : > { %v1304_v62 = vor.u32 %v1419_v60, %v1303_v59  ;;  %v1260_v1 = vor.u32 %v1406_v63, %v1257_v0  ;;  %v1329_v3 = vld [vmem:[%s1633_s29 + $0xe8] sm:$0xf0]  ;;  %v1247_v5 = vld [vmem:[%s1633_s29 + $0x40] sm:$0xf]  ;;  %v1405_v6 = vld [vmem:[%s1633_s29 + $0x44] sm:$0xf0] }
  0x1d   : > { %632 = vmatpush.bf16.msra.mxu0 %v1431_v11  ;;  %1520 = vmatpush.bf16.msra.mxu2 %v1431_v11  ;;  %v1332_v4 = vor.u32 %v1424_v2, %v1329_v3  ;;  %v1311_v7 = vld [vmem:[%s1633_s29 + $0xc0] sm:$0xf]  ;;  %v1421_v8 = vld [vmem:[%s1633_s29 + $0xc4] sm:$0xf0]  ;;  %v1248_v9 = vor.u32 %v1405_v6, %v1247_v5  ;;  %v1408_v11 = vld [vmem:[%s1633_s29 + $0x64] sm:$0xf] }
  0x1e   : > { %v1312_v10 = vor.u32 %v1421_v8, %v1311_v7  ;;  %v1426_v14 = vld [vmem:[%s1633_s29 + $0xf4] sm:$0xf]  ;;  %v1255_v17 = vld [vmem:[%s1633_s29 + $0x50] sm:$0xf]  ;;  %v1407_v18 = vld [vmem:[%s1633_s29 + $0x54] sm:$0xf0] }
  0x1f   : > { %v1256_v21 = vor.u32 %v1407_v18, %v1255_v17  ;;  %v1410_v23 = vld [vmem:[%s1633_s29 + $0x74] sm:$0xf]  ;;  %v1273_v24 = vld [vmem:[%s1633_s29 + $0x78] sm:$0xf0]  ;;  %v1409_v27 = vld [vmem:[%s1633_s29 + $0x64] sm:$0xf0] }
  0x20   : > { %v1327_v28 = vld [vmem:[%s1633_s29 + $0xe0] sm:$0xf]  ;;  %v1281_v33 = vld [vmem:[%s1633_s29 + $0x88] sm:$0xf0]  ;;  %v1271_v36 = vld [vmem:[%s1633_s29 + $0x70] sm:$0xf] }
  0x21   : > { %633 = vmatpush.bf16.msra.mxu0 %v1430_v12  ;;  %1521 = vmatpush.bf16.msra.mxu2 %v1430_v12  ;;  %v1265_v12 = vld [vmem:[%s1633_s29 + $0x68] sm:$0xf0]  ;;  %v1427_v39 = vld [vmem:[%s1633_s29 + $0xf4] sm:$0xf0]  ;;  %v1742_v45 = vld [vmem:[%s1921_s2] ss:$0 sm:$0xff] }
  0x22   : > { %1378 = vmatmul.msk.bf16.gmra.mxu1 %vm579_vm0, %v1228_v15  ;;  %v1268_v13 = vor.u32 %v1408_v11, %v1265_v12  ;;  %v1337_v15 = vld [vmem:[%s1633_s29 + $0xf8] sm:$0xf0]  ;;  %v1438_v47 = vld [vmem:[%s1737_s22] sm:$0xff]  }
  0x23   : > { %1387 = vmatmul.msk.bf16.gmra.mxu3 %vm579_vm0, %v1300_v19  ;;  %v1319_v19 = vld [vmem:[%s1633_s29 + $0xd0] sm:$0xf]  ;;  %v1439_v52 = vunpack.c.l.bf16 %v1438_v47  ;;  %v1440_v63 = vunpack.c.h.bf16 %v1438_v47 }
  0x25   : > { %634 = vmatpush.bf16.msra.mxu0 %v1429_v16  ;;  %1522 = vmatpush.bf16.msra.mxu2 %v1429_v16  ;;  %v1340_v16 = vor.u32 %v1426_v14, %v1337_v15  ;;  %v1509_v15 = vld [vmem:[%s1737_s22 + $0x48] sm:$0xff]  }
  0x29   : > { %635 = vmatpush.bf16.msra.mxu0 %v1428_v20  ;;  %1523 = vmatpush.bf16.msra.mxu2 %v1428_v20  ;;  %v1423_v20 = vld [vmem:[%s1633_s29 + $0xd4] sm:$0xf0] }
  0x2a   : > { %v1320_v22 = vor.u32 %v1423_v20, %v1319_v19 }
  0x2c   : > { %636 = vmatmul.bf16.vlgmr.msra.gmra.mxu0 %v1216_v25  ;;  %676 = vmatmul.bf16.vlgmr.msra.gmra.mxu2 %v1280_v26  ;;  %v1276_v25 = vor.u32 %v1410_v23, %v1273_v24  ;;  %v1263_v26 = vld [vmem:[%s1633_s29 + $0x60] sm:$0xf] }
  0x2d   : > { %v1264_v30 = vor.u32 %v1409_v27, %v1263_v26 }
  0x32   : > { %1379 = vmatmul.msk.bf16.gmra.mxu1 %vm579_vm0, %v1236_v29  ;;  %v1425_v29 = vld [vmem:[%s1633_s29 + $0xe4] sm:$0xf0] }
  0x33   : > { %1388 = vmatmul.msk.bf16.gmra.mxu3 %vm579_vm0, %v1308_v32  ;;  %v1328_v31 = vor.u32 %v1425_v29, %v1327_v28  ;;  %v1412_v32 = vld [vmem:[%s1633_s29 + $0x84] sm:$0xf] }
  0x34   : > { %v1284_v34 = vor.u32 %v1412_v32, %v1281_v33 }
  0x3c   : > { %641 = vmatmul.bf16.gmra.mxu0 %v1224_v37  ;;  %681 = vmatmul.bf16.gmra.mxu2 %v1288_v38  ;;  %v1411_v37 = vld [vmem:[%s1633_s29 + $0x74] sm:$0xf0]  ;;  %v1335_v38 = vld [vmem:[%s1633_s29 + $0xf0] sm:$0xf]  ;;  %s1757_s29 = scalar_lea.vmem %s1923_s4, %s1210_s19 }
  0x3d   : > { %v1272_v40 = vor.u32 %v1411_v37, %v1271_v36 }
  0x42   : > { %1380 = vmatmul.msk.bf16.gmra.mxu1 %vm579_vm0, %v1244_v41  ;;  %v1336_v41 = vor.u32 %v1427_v39, %v1335_v38 }
  0x43   : > { %1389 = vmatmul.msk.bf16.gmra.mxu3 %vm579_vm0, %v1316_v44 }
  0x4c   : > { %646 = vmatmul.bf16.gmra.mxu0 %v1232_v49  ;;  %686 = vmatmul.bf16.gmra.mxu2 %v1296_v50  ;;  %v1748_v49 = vld [vmem:[%s1921_s2 + $0x1] ss:$0 sm:$0xff] }
  0x52   : > { %1381 = vmatmul.msk.bf16.gmra.mxu1 %vm579_vm0, %v1252_v53 }
  0x53   : > { %1390 = vmatmul.msk.bf16.gmra.mxu3 %vm579_vm0, %v1324_v56 }
  0x5c   : > { %651 = vmatmul.bf16.gmra.mxu0 %v1240_v61  ;;  %691 = vmatmul.bf16.gmra.mxu2 %v1304_v62 }
  0x62   : > { %1382 = vmatmul.msk.bf16.gmra.mxu1 %vm579_vm0, %v1260_v1 }
  0x63   : > { %1391 = vmatmul.msk.bf16.gmra.mxu3 %vm579_vm0, %v1332_v4  ;;  %v1501_v4 = vld [vmem:[%s1737_s22 + $0x8] sm:$0xff]  }
  0x64   : > { %v1443_v11 = vunpack.c.l.bf16 %v1501_v4 }
  0x6c   : > { %656 = vmatmul.bf16.gmra.mxu0 %v1248_v9  ;;  %696 = vmatmul.bf16.gmra.mxu2 %v1312_v10 }
  0x72   : > { %1383 = vmatmul.msk.bf16.gmra.mxu1 %vm579_vm0, %v1268_v13 }
  0x73   : > { %1392 = vmatmul.msk.bf16.gmra.mxu3 %vm579_vm0, %v1340_v16 }
  0x7c   : > { %661 = vmatmul.bf16.gmra.mxu0 %v1256_v21  ;;  %701 = vmatmul.bf16.gmra.mxu2 %v1320_v22  ;;  %v1475_v22 = vunpack.c.l.bf16 %v1509_v15 }
  0x82   : > { %1384 = vmatmul.msk.bf16.gmra.mxu1 %vm579_vm0, %v1276_v25  ;;  %v1444_v25 = vunpack.c.h.bf16 %v1501_v4 }
  0x8c   : > { %666 = vmatmul.bf16.gmra.mxu0 %v1264_v30  ;;  %706 = vmatmul.bf16.gmra.mxu2 %v1328_v31 }
  0x8f   : > { %v726_v35 = vpop.f32.mrf.mxu1 }
  0x92   : > { %1385 = vmatmul.msk.bf16.gmra.mxu1 %vm579_vm0, %v1284_v34 }
  0x96   : > { %v771_v44 = vpop.f32.mrf.mxu3 }
  0x97   : > { %v728_v42 = vpop.f32.mrf.mxu1 }
  0x9c   : > { %671 = vmatmul.bf16.gmra.mxu0 %v1272_v40  ;;  %711 = vmatmul.bf16.gmra.mxu2 %v1336_v41  ;;  %v1476_v41 = vunpack.c.h.bf16 %v1509_v15 }
  0x9e   : > { %v773_v56 = vpop.f32.mrf.mxu3 }
  0x9f   : > { %v731_v43 = vpop.f32.mrf.mxu1 }
  0xa6   : > { %v776_v8 = vpop.f32.mrf.mxu3 }
  0xa7   : > { %v733_v50 = vpop.f32.mrf.mxu1 }
  0xa9   : > { %v637_v46 = vpop.f32.mrf.mxu0 }
  0xaa   : > { %v727_v48 = vadd.f32 %v726_v35, %v637_v46  ;;  %v1502_v35 = vld [vmem:[%s1737_s22 + $0x10] sm:$0xff]  }
  0xac   : > { %v808_v51 = vmul.f32 %v1742_v45, %v727_v48 }
  0xae   : > { %v842_v53 = vadd.f32 %v1748_v49, %v808_v51  ;;  %v778_v26 = vpop.f32.mrf.mxu3 }
  0xaf   : > { %v1752_v55 = vpop.f32.mrf.mxu2  ;;  %v736_v60 = vpop.f32.mrf.mxu1 }
  0xb0   : > { %v938_v54 = vadd.f32 %v1439_v52, %v842_v53  ;;  %v1510_v53 = vld [vmem:[%s1737_s22 + $0x50] sm:$0xff]  }
  0xb1   : > { %v639_v57 = vpop.f32.mrf.mxu0 }
  0xb2   : > { %v970_v58 = vmax.f32 %v938_v54, 0.0  ;;  %v729_v59 = vadd.f32 %v728_v42, %v639_v57 }
  0xb4   : > { %v1002_v61 = vpack.c.bf16 %v970_v58, %v970_v58  ;;  %v809_v62 = vmul.f32 %v1742_v45, %v729_v59 }
  0xb6   : > { %1035 = vst.msk [vmem:[%s1757_s29] sm:$0xf] %vm1034_vm1, %v1002_v61  ;;  %v843_v0 = vadd.f32 %v1748_v49, %v809_v62  ;;  %v781_v48 = vpop.f32.mrf.mxu3 }
  0xb7   : > { %v1763_v2 = vpop.f32.mrf.mxu2  ;;  %v738_v7 = vpop.f32.mrf.mxu1 }
  0xb8   : > { %v939_v1 = vadd.f32 %v1440_v63, %v843_v0  ;;  %v1479_v63 = vunpack.c.l.bf16 %v1510_v53 }
  0xb9   : > { %v642_v3 = vpop.f32.mrf.mxu0 }
  0xba   : > { %v971_v5 = vmax.f32 %v939_v1, 0.0  ;;  %v732_v6 = vadd.f32 %v731_v43, %v642_v3  ;;  %v1448_v3 = vunpack.c.h.bf16 %v1502_v35 }
  0xbc   : > { %v1003_v9 = vpack.c.bf16 %v971_v5, %v971_v5  ;;  %v810_v10 = vmul.f32 %v1742_v45, %v732_v6 }
  0xbe   : > { %1036 = vst.msk [vmem:[%s1757_s29 + $0x4] sm:$0xf] %vm1034_vm1, %v1003_v9  ;;  %v844_v12 = vadd.f32 %v1748_v49, %v810_v10  ;;  %v783_v9 = vpop.f32.mrf.mxu3 }
  0xbf   : > { %v682_v14 = vpop.f32.mrf.mxu2  ;;  %v741_v20 = vpop.f32.mrf.mxu1 }
  0xc0   : > { %v940_v13 = vadd.f32 %v1443_v11, %v844_v12  ;;  %v772_v16 = vadd.f32 %v771_v44, %v682_v14  ;;  %v1447_v44 = vunpack.c.l.bf16 %v1502_v35 }
  0xc1   : > { %v644_v17 = vpop.f32.mrf.mxu0 }
  0xc2   : > { %v972_v18 = vmax.f32 %v940_v13, 0.0  ;;  %v734_v19 = vadd.f32 %v733_v50, %v644_v17  ;;  %v826_v21 = vmul.f32 %v1742_v45, %v772_v16  ;;  %v1503_v13 = vld [vmem:[%s1737_s22 + $0x18] sm:$0xff]  }
  0xc4   : > { %v1004_v23 = vpack.c.bf16 %v972_v18, %v972_v18  ;;  %v811_v24 = vmul.f32 %v1742_v45, %v734_v19  ;;  %v860_v27 = vadd.f32 %v1748_v49, %v826_v21  ;;  %v1480_v19 = vunpack.c.h.bf16 %v1510_v53 }
  0xc6   : > { %1037 = vst.msk [vmem:[%s1757_s29 + $0x8] sm:$0xf] %vm1034_vm1, %v1004_v23  ;;  %v845_v28 = vadd.f32 %v1748_v49, %v811_v24  ;;  %v956_v29 = vadd.f32 %v1475_v22, %v860_v27  ;;  %v1451_v23 = vunpack.c.l.bf16 %v1503_v13  ;;  %v786_v35 = vpop.f32.mrf.mxu3 }
  0xc7   : > { %v684_v31 = vpop.f32.mrf.mxu2  ;;  %v743_v38 = vpop.f32.mrf.mxu1 }
  0xc8   : > { %v941_v30 = vadd.f32 %v1444_v25, %v845_v28  ;;  %v988_v32 = vmax.f32 %v956_v29, 0.0  ;;  %v774_v33 = vadd.f32 %v773_v56, %v684_v31  ;;  %v1511_v28 = vld [vmem:[%s1737_s22 + $0x58] sm:$0xff]  }
  0xc9   : > { %v647_v34 = vpop.f32.mrf.mxu0 }
  0xca   : > { %v973_v36 = vmax.f32 %v941_v30, 0.0  ;;  %v737_v37 = vadd.f32 %v736_v60, %v647_v34  ;;  %v1020_v39 = vpack.c.bf16 %v988_v32, %v988_v32  ;;  %v827_v40 = vmul.f32 %v1742_v45, %v774_v33 }
  0xcc   : > { %v1005_v42 = vpack.c.bf16 %v973_v36, %v973_v36  ;;  %v812_v43 = vmul.f32 %v1742_v45, %v737_v37  ;;  %1053 = vst.msk [vmem:[%s1757_s29 + $0x48] sm:$0xf] %vm1034_vm1, %v1020_v39  ;;  %v861_v46 = vadd.f32 %v1748_v49, %v827_v40  ;;  %v1483_v39 = vunpack.c.l.bf16 %v1511_v28 }
  0xce   : > { %1038 = vst.msk [vmem:[%s1757_s29 + $0xc] sm:$0xf] %vm1034_vm1, %v1005_v42  ;;  %v846_v47 = vadd.f32 %v1748_v49, %v812_v43  ;;  %v957_v50 = vadd.f32 %v1476_v41, %v861_v46  ;;  %v1452_v42 = vunpack.c.h.bf16 %v1503_v13 }
  0xcf   : > { %v687_v52 = vpop.f32.mrf.mxu2  ;;  %v746_v60 = vpop.f32.mrf.mxu1 }
  0xd0   : > { %v942_v51 = vadd.f32 %v1447_v44, %v846_v47  ;;  %v989_v54 = vmax.f32 %v957_v50, 0.0  ;;  %v777_v56 = vadd.f32 %v776_v8, %v687_v52  ;;  %v1504_v52 = vld [vmem:[%s1737_s22 + $0x20] sm:$0xff]  }
  0xd1   : > { %v649_v57 = vpop.f32.mrf.mxu0 }
  0xd2   : > { %v974_v58 = vmax.f32 %v942_v51, 0.0  ;;  %v739_v59 = vadd.f32 %v738_v7, %v649_v57  ;;  %v1021_v61 = vpack.c.bf16 %v989_v54, %v989_v54  ;;  %v828_v62 = vmul.f32 %v1742_v45, %v777_v56 }
  0xd4   : > { %v1006_v0 = vpack.c.bf16 %v974_v58, %v974_v58  ;;  %v813_v1 = vmul.f32 %v1742_v45, %v739_v59  ;;  %1054 = vst.msk [vmem:[%s1757_s29 + $0x4c] sm:$0xf] %vm1034_vm1, %v1021_v61  ;;  %v862_v4 = vadd.f32 %v1748_v49, %v828_v62  ;;  %v1484_v59 = vunpack.c.h.bf16 %v1511_v28  ;;  %v1505_v28 = vld [vmem:[%s1737_s22 + $0x28] sm:$0xff]  }
  0xd6   : > { %1039 = vst.msk [vmem:[%s1757_s29 + $0x10] sm:$0xf] %vm1034_vm1, %v1006_v0  ;;  %v847_v5 = vadd.f32 %v1748_v49, %v813_v1  ;;  %v958_v6 = vadd.f32 %v1479_v63, %v862_v4  ;;  %v1455_v63 = vunpack.c.l.bf16 %v1504_v52  ;;  %v788_v0 = vpop.f32.mrf.mxu3 }
  0xd7   : > { %v689_v8 = vpop.f32.mrf.mxu2  ;;  %v748_v16 = vpop.f32.mrf.mxu1 }
  0xd8   : > { %v943_v7 = vadd.f32 %v1448_v3, %v847_v5  ;;  %v990_v10 = vmax.f32 %v958_v6, 0.0  ;;  %v779_v11 = vadd.f32 %v778_v26, %v689_v8  ;;  %v1512_v6 = vld [vmem:[%s1737_s22 + $0x60] sm:$0xff]  }
  0xd9   : > { %v652_v12 = vpop.f32.mrf.mxu0 }
  0xda   : > { %v975_v14 = vmax.f32 %v943_v7, 0.0  ;;  %v742_v15 = vadd.f32 %v741_v20, %v652_v12  ;;  %v1022_v17 = vpack.c.bf16 %v990_v10, %v990_v10  ;;  %v829_v18 = vmul.f32 %v1742_v45, %v779_v11 }
  0xdc   : > { %v1007_v21 = vpack.c.bf16 %v975_v14, %v975_v14  ;;  %v814_v22 = vmul.f32 %v1742_v45, %v742_v15  ;;  %1055 = vst.msk [vmem:[%s1757_s29 + $0x50] sm:$0xf] %vm1034_vm1, %v1022_v17  ;;  %v863_v24 = vadd.f32 %v1748_v49, %v829_v18  ;;  %v1487_v15 = vunpack.c.l.bf16 %v1512_v6 }
  0xde   : > { %1040 = vst.msk [vmem:[%s1757_s29 + $0x14] sm:$0xf] %vm1034_vm1, %v1007_v21  ;;  %v848_v25 = vadd.f32 %v1748_v49, %v814_v22  ;;  %v959_v26 = vadd.f32 %v1480_v19, %v863_v24  ;;  %v1456_v19 = vunpack.c.h.bf16 %v1504_v52 }
  0xdf   : > { %v692_v20 = vpop.f32.mrf.mxu2  ;;  %v751_v34 = vpop.f32.mrf.mxu1 }
  0xe0   : > { %v944_v27 = vadd.f32 %v1451_v23, %v848_v25  ;;  %v991_v29 = vmax.f32 %v959_v26, 0.0  ;;  %v782_v30 = vadd.f32 %v781_v48, %v692_v20  ;;  %v791_v23 = vpop.f32.mrf.mxu3 }
  0xe1   : > { %v654_v31 = vpop.f32.mrf.mxu0 }
  0xe2   : > { %v976_v32 = vmax.f32 %v944_v27, 0.0  ;;  %v744_v33 = vadd.f32 %v743_v38, %v654_v31  ;;  %v1023_v36 = vpack.c.bf16 %v991_v29, %v991_v29  ;;  %v830_v37 = vmul.f32 %v1742_v45, %v782_v30 }
  0xe4   : > { %v1008_v40 = vpack.c.bf16 %v976_v32, %v976_v32  ;;  %v815_v41 = vmul.f32 %v1742_v45, %v744_v33  ;;  %1056 = vst.msk [vmem:[%s1757_s29 + $0x54] sm:$0xf] %vm1034_vm1, %v1023_v36  ;;  %v864_v43 = vadd.f32 %v1748_v49, %v830_v37 }
  0xe6   : > { %1041 = vst.msk [vmem:[%s1757_s29 + $0x18] sm:$0xf] %vm1034_vm1, %v1008_v40  ;;  %v849_v44 = vadd.f32 %v1748_v49, %v815_v41  ;;  %v960_v38 = vadd.f32 %v1483_v39, %v864_v43  ;;  %v1459_v39 = vunpack.c.l.bf16 %v1505_v28 }
  0xe7   : > { %v694_v47 = vpop.f32.mrf.mxu2  ;;  %v753_v56 = vpop.f32.mrf.mxu1 }
  0xe8   : > { %v945_v46 = vadd.f32 %v1452_v42, %v849_v44  ;;  %v992_v48 = vmax.f32 %v960_v38, 0.0  ;;  %v784_v50 = vadd.f32 %v783_v9, %v694_v47  ;;  %v1513_v44 = vld [vmem:[%s1737_s22 + $0x68] sm:$0xff]   ;;  %v793_v38 = vpop.f32.mrf.mxu3 }
  0xe9   : > { %v657_v51 = vpop.f32.mrf.mxu0 }
  0xea   : > { %v977_v53 = vmax.f32 %v945_v46, 0.0  ;;  %v747_v54 = vadd.f32 %v746_v60, %v657_v51  ;;  %v1024_v57 = vpack.c.bf16 %v992_v48, %v992_v48  ;;  %v831_v58 = vmul.f32 %v1742_v45, %v784_v50 }
  0xec   : > { %v1009_v61 = vpack.c.bf16 %v977_v53, %v977_v53  ;;  %v816_v62 = vmul.f32 %v1742_v45, %v747_v54  ;;  %1057 = vst.msk [vmem:[%s1757_s29 + $0x58] sm:$0xf] %vm1034_vm1, %v1024_v57  ;;  %v865_v1 = vadd.f32 %v1748_v49, %v831_v58  ;;  %v1491_v57 = vunpack.c.l.bf16 %v1513_v44 }
  0xee   : > { %1042 = vst.msk [vmem:[%s1757_s29 + $0x1c] sm:$0xf] %vm1034_vm1, %v1009_v61  ;;  %v850_v3 = vadd.f32 %v1748_v49, %v816_v62  ;;  %v961_v60 = vadd.f32 %v1484_v59, %v865_v1  ;;  %v1460_v61 = vunpack.c.h.bf16 %v1505_v28  ;;  %v1508_v28 = vld [vmem:[%s1737_s22 + $0x40] sm:$0xff]  }
  0xef   : > { %v697_v5 = vpop.f32.mrf.mxu2  ;;  %v756_v12 = vpop.f32.mrf.mxu1 }
  0xf0   : > { %v946_v4 = vadd.f32 %v1455_v63, %v850_v3  ;;  %v993_v7 = vmax.f32 %v961_v60, 0.0  ;;  %v787_v8 = vadd.f32 %v786_v35, %v697_v5  ;;  %v1488_v35 = vunpack.c.h.bf16 %v1512_v6  ;;  %v1506_v5 = vld [vmem:[%s1737_s22 + $0x30] sm:$0xff]  }
  0xf1   : > { %v659_v9 = vpop.f32.mrf.mxu0 }
  0xf2   : > { %v978_v10 = vmax.f32 %v946_v4, 0.0  ;;  %v749_v11 = vadd.f32 %v748_v16, %v659_v9  ;;  %v1025_v13 = vpack.c.bf16 %v993_v7, %v993_v7  ;;  %v832_v14 = vmul.f32 %v1742_v45, %v787_v8  ;;  %v796_v7 = vpop.f32.mrf.mxu3 }
  0xf4   : > { %v1010_v17 = vpack.c.bf16 %v978_v10, %v978_v10  ;;  %v817_v18 = vmul.f32 %v1742_v45, %v749_v11  ;;  %1058 = vst.msk [vmem:[%s1757_s29 + $0x5c] sm:$0xf] %vm1034_vm1, %v1025_v13  ;;  %v866_v21 = vadd.f32 %v1748_v49, %v832_v14  ;;  %v1492_v13 = vunpack.c.h.bf16 %v1513_v44 }
  0xf6   : > { %1043 = vst.msk [vmem:[%s1757_s29 + $0x20] sm:$0xf] %vm1034_vm1, %v1010_v17  ;;  %v851_v22 = vadd.f32 %v1748_v49, %v817_v18  ;;  %v962_v16 = vadd.f32 %v1487_v15, %v866_v21  ;;  %v1463_v17 = vunpack.c.l.bf16 %v1506_v5 }
  0xf7   : > { %v699_v25 = vpop.f32.mrf.mxu2  ;;  %v758_v31 = vpop.f32.mrf.mxu1 }
  0xf8   : > { %v947_v24 = vadd.f32 %v1456_v19, %v851_v22  ;;  %v994_v26 = vmax.f32 %v962_v16, 0.0  ;;  %v789_v27 = vadd.f32 %v788_v0, %v699_v25 }
  0xf9   : > { %v662_v20 = vpop.f32.mrf.mxu0 }
  0xfa   : > { %v979_v29 = vmax.f32 %v947_v24, 0.0  ;;  %v752_v30 = vadd.f32 %v751_v34, %v662_v20  ;;  %v1026_v32 = vpack.c.bf16 %v994_v26, %v994_v26  ;;  %v833_v33 = vmul.f32 %v1742_v45, %v789_v27 }
  0xfc   : > { %v1011_v36 = vpack.c.bf16 %v979_v29, %v979_v29  ;;  %v818_v37 = vmul.f32 %v1742_v45, %v752_v30  ;;  %1059 = vst.msk [vmem:[%s1757_s29 + $0x60] sm:$0xf] %vm1034_vm1, %v1026_v32  ;;  %v867_v40 = vadd.f32 %v1748_v49, %v833_v33 }
  0xfe   : > { %1044 = vst.msk [vmem:[%s1757_s29 + $0x24] sm:$0xf] %vm1034_vm1, %v1011_v36  ;;  %v852_v41 = vadd.f32 %v1748_v49, %v818_v37  ;;  %v963_v42 = vadd.f32 %v1488_v35, %v867_v40  ;;  %v798_v36 = vpop.f32.mrf.mxu3 }
  0xff   : > { %v702_v34 = vpop.f32.mrf.mxu2  ;;  %v1841_v52 = vpop.f32.mrf.mxu1 }
 0x100   : > { %v948_v43 = vadd.f32 %v1459_v39, %v852_v41  ;;  %v995_v46 = vmax.f32 %v963_v42, 0.0  ;;  %v792_v47 = vadd.f32 %v791_v23, %v702_v34  ;;  %v1514_v23 = vld [vmem:[%s1737_s22 + $0x70] sm:$0xff]   ;;  %v1464_v39 = vunpack.c.h.bf16 %v1506_v5 }
 0x101   : > { %v664_v48 = vpop.f32.mrf.mxu0  ;;  %v1495_v32 = vunpack.c.l.bf16 %v1514_v23  ;;  %v1471_v41 = vunpack.c.l.bf16 %v1508_v28 }
 0x102   : > { %v980_v50 = vmax.f32 %v948_v43, 0.0  ;;  %v754_v51 = vadd.f32 %v753_v56, %v664_v48  ;;  %v1027_v53 = vpack.c.bf16 %v995_v46, %v995_v46  ;;  %v834_v54 = vmul.f32 %v1742_v45, %v792_v47 }
 0x104   : > { %v1012_v58 = vpack.c.bf16 %v980_v50, %v980_v50  ;;  %v819_v59 = vmul.f32 %v1742_v45, %v754_v51  ;;  %1060 = vst.msk [vmem:[%s1757_s29 + $0x64] sm:$0xf] %vm1034_vm1, %v1027_v53  ;;  %v868_v62 = vadd.f32 %v1748_v49, %v834_v54  ;;  %v1507_v50 = vld [vmem:[%s1737_s22 + $0x38] sm:$0xff]   ;;  %v1496_v53 = vunpack.c.h.bf16 %v1514_v23 }
 0x106   : > { %1045 = vst.msk [vmem:[%s1757_s29 + $0x28] sm:$0xf] %vm1034_vm1, %v1012_v58  ;;  %v853_v63 = vadd.f32 %v1748_v49, %v819_v59  ;;  %v964_v56 = vadd.f32 %v1491_v57, %v868_v62 }
 0x107   : > { %v704_v1 = vpop.f32.mrf.mxu2  ;;  %v1852_v9 = vpop.f32.mrf.mxu1 }
 0x108   : > { %v949_v0 = vadd.f32 %v1460_v61, %v853_v63  ;;  %v996_v3 = vmax.f32 %v964_v56, 0.0  ;;  %v794_v60 = vadd.f32 %v793_v38, %v704_v1 }
 0x109   : > { %v667_v4 = vpop.f32.mrf.mxu0 }
 0x10a   : > { %v981_v6 = vmax.f32 %v949_v0, 0.0  ;;  %v757_v8 = vadd.f32 %v756_v12, %v667_v4  ;;  %v1028_v10 = vpack.c.bf16 %v996_v3, %v996_v3  ;;  %v835_v11 = vmul.f32 %v1742_v45, %v794_v60  ;;  %v801_v4 = vpop.f32.mrf.mxu3 }
 0x10b   : > { %v1467_v0 = vunpack.c.l.bf16 %v1507_v50  ;;  %v1472_v60 = vunpack.c.h.bf16 %v1508_v28 }
 0x10c   : > { %v1013_v14 = vpack.c.bf16 %v981_v6, %v981_v6  ;;  %v820_v15 = vmul.f32 %v1742_v45, %v757_v8  ;;  %1061 = vst.msk [vmem:[%s1757_s29 + $0x68] sm:$0xf] %vm1034_vm1, %v1028_v10  ;;  %v869_v18 = vadd.f32 %v1748_v49, %v835_v11  ;;  %v1515_v10 = vld [vmem:[%s1737_s22 + $0x78] sm:$0xff]  }
 0x10e   : > { %1046 = vst.msk [vmem:[%s1757_s29 + $0x2c] sm:$0xf] %vm1034_vm1, %v1013_v14  ;;  %v854_v19 = vadd.f32 %v1748_v49, %v820_v15  ;;  %v965_v12 = vadd.f32 %v1492_v13, %v869_v18 }
 0x10f   : > { %v707_v22 = vpop.f32.mrf.mxu2  ;;  %v766_v20 = vpop.f32.mrf.mxu1 }
 0x110   : > { %v950_v21 = vadd.f32 %v1463_v17, %v854_v19  ;;  %v997_v16 = vmax.f32 %v965_v12, 0.0  ;;  %v797_v24 = vadd.f32 %v796_v7, %v707_v22  ;;  %v767_v33 = vadd.f32 %v766_v20, %v1752_v55 }
 0x111   : > { %v669_v25 = vpop.f32.mrf.mxu0  ;;  %v1499_v22 = vunpack.c.l.bf16 %v1515_v10 }
 0x112   : > { %v982_v26 = vmax.f32 %v950_v21, 0.0  ;;  %v759_v27 = vadd.f32 %v758_v31, %v669_v25  ;;  %v1029_v29 = vpack.c.bf16 %v997_v16, %v997_v16  ;;  %v836_v30 = vmul.f32 %v1742_v45, %v797_v24  ;;  %v803_v20 = vpop.f32.mrf.mxu3 }
 0x113   : > { %v824_v31 = vmul.f32 %v1742_v45, %v767_v33  ;;  %v1468_v24 = vunpack.c.h.bf16 %v1507_v50 }
 0x114   : > { %v1014_v35 = vpack.c.bf16 %v982_v26, %v982_v26  ;;  %v821_v37 = vmul.f32 %v1742_v45, %v759_v27  ;;  %1062 = vst.msk [vmem:[%s1757_s29 + $0x6c] sm:$0xf] %vm1034_vm1, %v1029_v29  ;;  %v870_v40 = vadd.f32 %v1748_v49, %v836_v30 }
 0x115   : > { %v858_v55 = vadd.f32 %v1748_v49, %v824_v31 }
 0x116   : > { %1047 = vst.msk [vmem:[%s1757_s29 + $0x30] sm:$0xf] %vm1034_vm1, %v1014_v35  ;;  %v855_v42 = vadd.f32 %v1748_v49, %v821_v37  ;;  %v966_v43 = vadd.f32 %v1495_v32, %v870_v40  ;;  %v1500_v37 = vunpack.c.h.bf16 %v1515_v10 }
 0x117   : > { %v709_v44 = vpop.f32.mrf.mxu2  ;;  %v954_v46 = vadd.f32 %v1471_v41, %v858_v55  ;;  %v768_v57 = vpop.f32.mrf.mxu1 }
 0x118   : > { %v951_v34 = vadd.f32 %v1464_v39, %v855_v42  ;;  %v998_v38 = vmax.f32 %v966_v43, 0.0  ;;  %v799_v47 = vadd.f32 %v798_v36, %v709_v44  ;;  %v769_v62 = vadd.f32 %v768_v57, %v1763_v2 }
 0x119   : > { %v672_v48 = vpop.f32.mrf.mxu0  ;;  %v986_v59 = vmax.f32 %v954_v46, 0.0 }
 0x11a   : > { %v983_v51 = vmax.f32 %v951_v34, 0.0  ;;  %v762_v54 = vadd.f32 %v1841_v52, %v672_v48  ;;  %v1030_v58 = vpack.c.bf16 %v998_v38, %v998_v38  ;;  %v837_v61 = vmul.f32 %v1742_v45, %v799_v47 }
 0x11b   : > { %v1018_v1 = vpack.c.bf16 %v986_v59, %v986_v59  ;;  %v825_v52 = vmul.f32 %v1742_v45, %v769_v62 }
 0x11c   : > { %v1015_v63 = vpack.c.bf16 %v983_v51, %v983_v51  ;;  %v822_v56 = vmul.f32 %v1742_v45, %v762_v54  ;;  %1063 = vst.msk [vmem:[%s1757_s29 + $0x70] sm:$0xf] %vm1034_vm1, %v1030_v58  ;;  %v871_v3 = vadd.f32 %v1748_v49, %v837_v61 }
 0x11d   : > { %1051 = vst.msk [vmem:[%s1757_s29 + $0x40] sm:$0xf] %vm1034_vm1, %v1018_v1  ;;  %v859_v6 = vadd.f32 %v1748_v49, %v825_v52 }
 0x11e   : > { %1048 = vst.msk [vmem:[%s1757_s29 + $0x34] sm:$0xf] %vm1034_vm1, %v1015_v63  ;;  %v856_v5 = vadd.f32 %v1748_v49, %v822_v56  ;;  %v967_v2 = vadd.f32 %v1496_v53, %v871_v3 }
 0x11f   : > { %v712_v8 = vpop.f32.mrf.mxu2  ;;  %v955_v13 = vadd.f32 %v1472_v60, %v859_v6 }
 0x120   : > { %v952_v7 = vadd.f32 %v1467_v0, %v856_v5  ;;  %v999_v11 = vmax.f32 %v967_v2, 0.0  ;;  %v802_v14 = vadd.f32 %v801_v4, %v712_v8 }
 0x121   : > { %v674_v15 = vpop.f32.mrf.mxu0  ;;  %v987_v12 = vmax.f32 %v955_v13, 0.0 }
 0x122   : > { %v984_v17 = vmax.f32 %v952_v7, 0.0  ;;  %v764_v18 = vadd.f32 %v1852_v9, %v674_v15  ;;  %v1031_v19 = vpack.c.bf16 %v999_v11, %v999_v11  ;;  %v838_v21 = vmul.f32 %v1742_v45, %v802_v14 }
 0x123   : > { %v1019_v25 = vpack.c.bf16 %v987_v12, %v987_v12 }
 0x124   : > { %v1016_v23 = vpack.c.bf16 %v984_v17, %v984_v17  ;;  %v823_v16 = vmul.f32 %v1742_v45, %v764_v18  ;;  %1064 = vst.msk [vmem:[%s1757_s29 + $0x74] sm:$0xf] %vm1034_vm1, %v1031_v19  ;;  %v872_v26 = vadd.f32 %v1748_v49, %v838_v21 }
 0x125   : > { %1052 = vst.msk [vmem:[%s1757_s29 + $0x44] sm:$0xf] %vm1034_vm1, %v1019_v25 }
 0x126   : > { %1049 = vst.msk [vmem:[%s1757_s29 + $0x38] sm:$0xf] %vm1034_vm1, %v1016_v23  ;;  %v857_v9 = vadd.f32 %v1748_v49, %v823_v16  ;;  %v968_v27 = vadd.f32 %v1499_v22, %v872_v26 }
 0x127   : > { %v714_v29 = vpop.f32.mrf.mxu2 }
 0x128   : > { %v953_v28 = vadd.f32 %v1468_v24, %v857_v9  ;;  %v1000_v30 = vmax.f32 %v968_v27, 0.0  ;;  %v804_v32 = vadd.f32 %v803_v20, %v714_v29 }
 0x12a   : > { %v985_v33 = vmax.f32 %v953_v28, 0.0  ;;  %v1032_v35 = vpack.c.bf16 %v1000_v30, %v1000_v30  ;;  %v839_v36 = vmul.f32 %v1742_v45, %v804_v32 }
 0x12c   : > { %v1017_v39 = vpack.c.bf16 %v985_v33, %v985_v33  ;;  %1065 = vst.msk [vmem:[%s1757_s29 + $0x78] sm:$0xf] %vm1034_vm1, %v1032_v35  ;;  %v873_v40 = vadd.f32 %v1748_v49, %v839_v36 }
 0x12e   : > { %1050 = vst.msk [vmem:[%s1757_s29 + $0x3c] sm:$0xf] %vm1034_vm1, %v1017_v39  ;;  %v969_v31 = vadd.f32 %v1500_v37, %v873_v40 }
 0x130   : > { %v1001_v41 = vmax.f32 %v969_v31, 0.0 }
 0x132   : > { %v1033_v42 = vpack.c.bf16 %v1001_v41, %v1001_v41 }
 0x134   : > { %1066 = vst.msk [vmem:[%s1757_s29 + $0x7c] sm:$0xf] %vm1034_vm1, %v1033_v42 }
 0x135 PF: > { %s14_s17 = sadd.s32 1, %s1573_s17   ;;  %s1924_s15 = smov %s1569_s16 }
 0x136   : > { %p11_p5 = scmp.ge.s32.totalorder %s14_s17, 4   ;;  %s1925_s16 = smov %s1927_s18 }
 0x138   :  { %13 = sbr.rel (!%p11_p5) target bundleno = 2 (0x2), region = 75 }

// kernel: _lambda_.16
= control target key start
LH: loop header
LB: loop body
LE: loop exit
PB: predicated region body
PF: predicated region fallthrough
CT: control target
= control target key end

     0   :  { %vm175_vm0 = vcmask 130048   ;;  %vm366_vm1 = vcmask 257024   ;;  %s791_s1 = inlined_call_operand.vmem [shape: bf16[144,32], index: 1, kind: input, shape index: {}]   ;;  %s792_s0 = inlined_call_operand.vmem [shape: bf16[128,144], index: 0, kind: input, shape index: {}]   ;;  %s793_s2 = inlined_call_operand.vmem [shape: f32[2,32], index: 2, kind: input, shape index: {}]   ;;  %s794_s3 = inlined_call_operand.vmem [shape: bf16[128,32], index: 3, kind: output, shape index: {}]  }
   0x1   :  { %v518_v0 = vld [vmem:[%s791_s1 + $0x38] sm:$0xff]  ;;  %v519_v1 = vld [vmem:[%s791_s1 + $0x40] sm:$0xff]  ;;  %v391_v3 = vld [vmem:[%s792_s0 + $0x8] sm:$0xf0] }
   0x2   :  { %v495_v2 = vld [vmem:[%s792_s0 + $0x4] sm:$0xf]  ;;  %200 = vmatpush.bf16.msra.mxu0 %v518_v0  ;;  %520 = vmatpush.bf16.msra.mxu2 %v518_v0  ;;  %v517_v5 = vld [vmem:[%s791_s1 + $0x30] sm:$0xff]  ;;  %v516_v6 = vld [vmem:[%s791_s1 + $0x28] sm:$0xff] }
   0x3   :  { %v394_v4 = vor.u32 %v495_v2, %v391_v3  ;;  %256 = vmatpush.bf16.msra.mxu1 %v519_v1  ;;  %528 = vmatpush.bf16.msra.mxu3 %v519_v1  ;;  %v505_v7 = vld [vmem:[%s792_s0 + $0x54] sm:$0xf]  ;;  %v431_v8 = vld [vmem:[%s792_s0 + $0x58] sm:$0xf0]  ;;  %v515_v10 = vld [vmem:[%s791_s1 + $0x20] sm:$0xff] }
   0x4   :  { %v434_v9 = vor.u32 %v505_v7, %v431_v8  ;;  %v514_v11 = vld [vmem:[%s791_s1 + $0x18] sm:$0xff]  ;;  %v497_v12 = vld [vmem:[%s792_s0 + $0x14] sm:$0xf]  ;;  %v512_v16 = vld [vmem:[%s791_s1 + $0x8] sm:$0xff] }
   0x5   :  { %v399_v13 = vld [vmem:[%s792_s0 + $0x18] sm:$0xf0]  ;;  %v513_v15 = vld [vmem:[%s791_s1 + $0x10] sm:$0xff]  ;;  %v507_v17 = vld [vmem:[%s792_s0 + $0x64] sm:$0xf] }
   0x6   :  { %487 = vmatmul.msk.bf16.vlgmr.msra.gmra.mxu1 %vm175_vm0, %v394_v4  ;;  %201 = vmatpush.bf16.msra.mxu0 %v517_v5  ;;  %v402_v14 = vor.u32 %v497_v12, %v399_v13  ;;  %v439_v18 = vld [vmem:[%s792_s0 + $0x68] sm:$0xf0]  ;;  %v511_v20 = vld [vmem:[%s791_s1] sm:$0xff]  ;;  %v496_v22 = vld [vmem:[%s792_s0 + $0x4] sm:$0xf0] }
   0x7   :  { %521 = vmatpush.bf16.msra.mxu2 %v517_v5  ;;  %492 = vmatmul.msk.bf16.vlgmr.msra.gmra.mxu3 %vm175_vm0, %v434_v9  ;;  %v442_v19 = vor.u32 %v507_v17, %v439_v18  ;;  %v389_v21 = vld [vmem:[%s792_s0] sm:$0xf]  ;;  %v504_v24 = vld [vmem:[%s792_s0 + $0x44] sm:$0xf0]  ;;  %v499_v27 = vld [vmem:[%s792_s0 + $0x24] sm:$0xf] }
   0x8   :  { %v421_v23 = vld [vmem:[%s792_s0 + $0x40] sm:$0xf]  ;;  %v390_v25 = vor.u32 %v496_v22, %v389_v21  ;;  %v407_v28 = vld [vmem:[%s792_s0 + $0x28] sm:$0xf0]  ;;  %v509_v30 = vld [vmem:[%s792_s0 + $0x74] sm:$0xf] }
   0x9   :  { %v422_v26 = vor.u32 %v504_v24, %v421_v23  ;;  %v410_v29 = vor.u32 %v499_v27, %v407_v28  ;;  %v447_v31 = vld [vmem:[%s792_s0 + $0x78] sm:$0xf0]  ;;  %v397_v33 = vld [vmem:[%s792_s0 + $0x10] sm:$0xf]  ;;  %v498_v34 = vld [vmem:[%s792_s0 + $0x14] sm:$0xf0] }
   0xa   :  { %202 = vmatpush.bf16.msra.mxu0 %v516_v6  ;;  %v450_v32 = vor.u32 %v509_v30, %v447_v31  ;;  %v429_v35 = vld [vmem:[%s792_s0 + $0x50] sm:$0xf]  ;;  %v506_v36 = vld [vmem:[%s792_s0 + $0x54] sm:$0xf0]  ;;  %v398_v37 = vor.u32 %v498_v34, %v397_v33  ;;  %v501_v39 = vld [vmem:[%s792_s0 + $0x34] sm:$0xf] }
   0xb   :  { %522 = vmatpush.bf16.msra.mxu2 %v516_v6  ;;  %v430_v38 = vor.u32 %v506_v36, %v429_v35  ;;  %v415_v40 = vld [vmem:[%s792_s0 + $0x38] sm:$0xf0]  ;;  %v405_v42 = vld [vmem:[%s792_s0 + $0x20] sm:$0xf]  ;;  %v500_v43 = vld [vmem:[%s792_s0 + $0x24] sm:$0xf0] }
   0xc   :  { %v418_v41 = vor.u32 %v501_v39, %v415_v40  ;;  %v437_v44 = vld [vmem:[%s792_s0 + $0x60] sm:$0xf]  ;;  %v508_v45 = vld [vmem:[%s792_s0 + $0x64] sm:$0xf0]  ;;  %v406_v46 = vor.u32 %v500_v43, %v405_v42  ;;  %v503_v48 = vld [vmem:[%s792_s0 + $0x44] sm:$0xf] }
   0xd   :  { %v438_v47 = vor.u32 %v508_v45, %v437_v44  ;;  %v423_v49 = vld [vmem:[%s792_s0 + $0x48] sm:$0xf0]  ;;  %v413_v51 = vld [vmem:[%s792_s0 + $0x30] sm:$0xf]  ;;  %v502_v52 = vld [vmem:[%s792_s0 + $0x34] sm:$0xf0] }
   0xe   :  { %203 = vmatpush.bf16.msra.mxu0 %v515_v10  ;;  %v426_v50 = vor.u32 %v503_v48, %v423_v49  ;;  %v445_v53 = vld [vmem:[%s792_s0 + $0x70] sm:$0xf]  ;;  %v510_v54 = vld [vmem:[%s792_s0 + $0x74] sm:$0xf0]  ;;  %v414_v55 = vor.u32 %v502_v52, %v413_v51  ;;  %v685_v61 = vld [vmem:[%s793_s2] ss:$0 sm:$0xff] }
   0xf   :  { %523 = vmatpush.bf16.msra.mxu2 %v515_v10  ;;  %v446_v56 = vor.u32 %v510_v54, %v445_v53  ;;  %v690_v0 = vld [vmem:[%s793_s2 + $0x1] ss:$0 sm:$0xff] }
  0x12   :  { %204 = vmatpush.bf16.msra.mxu0 %v514_v11 }
  0x13   :  { %524 = vmatpush.bf16.msra.mxu2 %v514_v11 }
  0x16   :  { %488 = vmatmul.msk.bf16.gmra.mxu1 %vm175_vm0, %v402_v14  ;;  %205 = vmatpush.bf16.msra.mxu0 %v513_v15 }
  0x17   :  { %525 = vmatpush.bf16.msra.mxu2 %v513_v15  ;;  %493 = vmatmul.msk.bf16.gmra.mxu3 %vm175_vm0, %v442_v19 }
  0x1a   :  { %206 = vmatpush.bf16.msra.mxu0 %v512_v16 }
  0x1b   :  { %526 = vmatpush.bf16.msra.mxu2 %v512_v16 }
  0x1e   :  { %207 = vmatpush.bf16.msra.mxu0 %v511_v20 }
  0x1f   :  { %527 = vmatpush.bf16.msra.mxu2 %v511_v20 }
  0x21   :  { %208 = vmatmul.bf16.vlgmr.msra.gmra.mxu0 %v390_v25 }
  0x22   :  { %228 = vmatmul.bf16.vlgmr.msra.gmra.mxu2 %v422_v26 }
  0x26   :  { %489 = vmatmul.msk.bf16.gmra.mxu1 %vm175_vm0, %v410_v29 }
  0x27   :  { %494 = vmatmul.msk.bf16.gmra.mxu3 %vm175_vm0, %v450_v32 }
  0x31   :  { %213 = vmatmul.bf16.gmra.mxu0 %v398_v37 }
  0x32   :  { %233 = vmatmul.bf16.gmra.mxu2 %v430_v38 }
  0x36   :  { %490 = vmatmul.msk.bf16.gmra.mxu1 %vm175_vm0, %v418_v41 }
  0x41   :  { %218 = vmatmul.bf16.gmra.mxu0 %v406_v46 }
  0x42   :  { %238 = vmatmul.bf16.gmra.mxu2 %v438_v47 }
  0x46   :  { %491 = vmatmul.msk.bf16.gmra.mxu1 %vm175_vm0, %v426_v50 }
  0x51   :  { %223 = vmatmul.bf16.gmra.mxu0 %v414_v55 }
  0x52   :  { %243 = vmatmul.bf16.gmra.mxu2 %v446_v56 }
  0x83   :  { %v258_v57 = vpop.f32.mrf.mxu1 }
  0x8a   :  { %v283_v12 = vpop.f32.mrf.mxu3 }
  0x8b   :  { %v260_v58 = vpop.f32.mrf.mxu1 }
  0x92   :  { %v285_v23 = vpop.f32.mrf.mxu3 }
  0x93   :  { %v263_v59 = vpop.f32.mrf.mxu1 }
  0x9a   :  { %v288_v40 = vpop.f32.mrf.mxu3 }
  0x9b   :  { %v265_v60 = vpop.f32.mrf.mxu1 }
  0x9e   :  { %v209_v62 = vpop.f32.mrf.mxu0 }
  0x9f   :  { %v259_v63 = vadd.f32 %v258_v57, %v209_v62 }
  0xa1   :  { %v300_v1 = vmul.f32 %v685_v61, %v259_v63 }
  0xa3   :  { %v318_v2 = vadd.f32 %v690_v0, %v300_v1  ;;  %v268_v3 = vpop.f32.mrf.mxu1 }
  0xa5   :  { %v334_v4 = vmax.f32 %v318_v2, 0.0  ;;  %v229_v5 = vpop.f32.mrf.mxu2 }
  0xa6   :  { %v211_v6 = vpop.f32.mrf.mxu0 }
  0xa7   :  { %v350_v7 = vpack.c.bf16 %v334_v4, %v334_v4  ;;  %v261_v8 = vadd.f32 %v260_v58, %v211_v6 }
  0xa9   :  { %367 = vst.msk [vmem:[%s794_s3] sm:$0xf] %vm366_vm1, %v350_v7  ;;  %v301_v9 = vmul.f32 %v685_v61, %v261_v8 }
  0xab   :  { %v319_v10 = vadd.f32 %v690_v0, %v301_v9  ;;  %v270_v11 = vpop.f32.mrf.mxu1 }
  0xad   :  { %v335_v13 = vmax.f32 %v319_v10, 0.0  ;;  %v231_v14 = vpop.f32.mrf.mxu2 }
  0xae   :  { %v214_v15 = vpop.f32.mrf.mxu0 }
  0xaf   :  { %v351_v16 = vpack.c.bf16 %v335_v13, %v335_v13  ;;  %v264_v17 = vadd.f32 %v263_v59, %v214_v15  ;;  %v290_v59 = vpop.f32.mrf.mxu3 }
  0xb1   :  { %368 = vst.msk [vmem:[%s794_s3 + $0x4] sm:$0xf] %vm366_vm1, %v351_v16  ;;  %v302_v18 = vmul.f32 %v685_v61, %v264_v17 }
  0xb3   :  { %v320_v19 = vadd.f32 %v690_v0, %v302_v18  ;;  %v273_v20 = vpop.f32.mrf.mxu1 }
  0xb5   :  { %v336_v21 = vmax.f32 %v320_v19, 0.0  ;;  %v234_v22 = vpop.f32.mrf.mxu2 }
  0xb6   :  { %v284_v24 = vadd.f32 %v283_v12, %v234_v22  ;;  %v216_v25 = vpop.f32.mrf.mxu0 }
  0xb7   :  { %v352_v26 = vpack.c.bf16 %v336_v21, %v336_v21  ;;  %v266_v27 = vadd.f32 %v265_v60, %v216_v25  ;;  %v293_v19 = vpop.f32.mrf.mxu3 }
  0xb8   :  { %v310_v28 = vmul.f32 %v685_v61, %v284_v24 }
  0xb9   :  { %369 = vst.msk [vmem:[%s794_s3 + $0x8] sm:$0xf] %vm366_vm1, %v352_v26  ;;  %v303_v29 = vmul.f32 %v685_v61, %v266_v27 }
  0xba   :  { %v328_v30 = vadd.f32 %v690_v0, %v310_v28 }
  0xbb   :  { %v321_v31 = vadd.f32 %v690_v0, %v303_v29  ;;  %v714_v32 = vpop.f32.mrf.mxu1 }
  0xbc   :  { %v344_v33 = vmax.f32 %v328_v30, 0.0 }
  0xbd   :  { %v337_v34 = vmax.f32 %v321_v31, 0.0  ;;  %v236_v35 = vpop.f32.mrf.mxu2 }
  0xbe   :  { %v360_v36 = vpack.c.bf16 %v344_v33, %v344_v33  ;;  %v286_v37 = vadd.f32 %v285_v23, %v236_v35  ;;  %v219_v38 = vpop.f32.mrf.mxu0 }
  0xbf   :  { %v353_v39 = vpack.c.bf16 %v337_v34, %v337_v34  ;;  %v269_v41 = vadd.f32 %v268_v3, %v219_v38 }
  0xc0   :  { %377 = vst.msk [vmem:[%s794_s3 + $0x28] sm:$0xf] %vm366_vm1, %v360_v36  ;;  %v311_v42 = vmul.f32 %v685_v61, %v286_v37 }
  0xc1   :  { %370 = vst.msk [vmem:[%s794_s3 + $0xc] sm:$0xf] %vm366_vm1, %v353_v39  ;;  %v304_v43 = vmul.f32 %v685_v61, %v269_v41 }
  0xc2   :  { %v329_v44 = vadd.f32 %v690_v0, %v311_v42 }
  0xc3   :  { %v322_v45 = vadd.f32 %v690_v0, %v304_v43  ;;  %v278_v46 = vpop.f32.mrf.mxu1 }
  0xc4   :  { %v345_v47 = vmax.f32 %v329_v44, 0.0  ;;  %v279_v48 = vadd.f32 %v278_v46, %v229_v5 }
  0xc5   :  { %v338_v49 = vmax.f32 %v322_v45, 0.0  ;;  %v239_v50 = vpop.f32.mrf.mxu2 }
  0xc6   :  { %v361_v51 = vpack.c.bf16 %v345_v47, %v345_v47  ;;  %v308_v52 = vmul.f32 %v685_v61, %v279_v48  ;;  %v289_v53 = vadd.f32 %v288_v40, %v239_v50  ;;  %v221_v54 = vpop.f32.mrf.mxu0 }
  0xc7   :  { %v354_v55 = vpack.c.bf16 %v338_v49, %v338_v49  ;;  %v271_v56 = vadd.f32 %v270_v11, %v221_v54 }
  0xc8   :  { %378 = vst.msk [vmem:[%s794_s3 + $0x2c] sm:$0xf] %vm366_vm1, %v361_v51  ;;  %v326_v57 = vadd.f32 %v690_v0, %v308_v52  ;;  %v312_v58 = vmul.f32 %v685_v61, %v289_v53 }
  0xc9   :  { %371 = vst.msk [vmem:[%s794_s3 + $0x10] sm:$0xf] %vm366_vm1, %v354_v55  ;;  %v305_v60 = vmul.f32 %v685_v61, %v271_v56 }
  0xca   :  { %v342_v62 = vmax.f32 %v326_v57, 0.0  ;;  %v330_v63 = vadd.f32 %v690_v0, %v312_v58 }
  0xcb   :  { %v323_v1 = vadd.f32 %v690_v0, %v305_v60  ;;  %v280_v2 = vpop.f32.mrf.mxu1 }
  0xcc   :  { %v358_v3 = vpack.c.bf16 %v342_v62, %v342_v62  ;;  %v346_v4 = vmax.f32 %v330_v63, 0.0  ;;  %v281_v5 = vadd.f32 %v280_v2, %v231_v14 }
  0xcd   :  { %v339_v6 = vmax.f32 %v323_v1, 0.0  ;;  %v241_v7 = vpop.f32.mrf.mxu2 }
  0xce   :  { %375 = vst.msk [vmem:[%s794_s3 + $0x20] sm:$0xf] %vm366_vm1, %v358_v3  ;;  %v362_v8 = vpack.c.bf16 %v346_v4, %v346_v4  ;;  %v309_v9 = vmul.f32 %v685_v61, %v281_v5  ;;  %v291_v10 = vadd.f32 %v290_v59, %v241_v7  ;;  %v224_v11 = vpop.f32.mrf.mxu0 }
  0xcf   :  { %v355_v12 = vpack.c.bf16 %v339_v6, %v339_v6  ;;  %v274_v13 = vadd.f32 %v273_v20, %v224_v11 }
  0xd0   :  { %379 = vst.msk [vmem:[%s794_s3 + $0x30] sm:$0xf] %vm366_vm1, %v362_v8  ;;  %v327_v14 = vadd.f32 %v690_v0, %v309_v9  ;;  %v313_v15 = vmul.f32 %v685_v61, %v291_v10 }
  0xd1   :  { %372 = vst.msk [vmem:[%s794_s3 + $0x14] sm:$0xf] %vm366_vm1, %v355_v12  ;;  %v306_v16 = vmul.f32 %v685_v61, %v274_v13 }
  0xd2   :  { %v343_v17 = vmax.f32 %v327_v14, 0.0  ;;  %v331_v18 = vadd.f32 %v690_v0, %v313_v15 }
  0xd3   :  { %v324_v20 = vadd.f32 %v690_v0, %v306_v16 }
  0xd4   :  { %v359_v21 = vpack.c.bf16 %v343_v17, %v343_v17  ;;  %v347_v22 = vmax.f32 %v331_v18, 0.0 }
  0xd5   :  { %v340_v23 = vmax.f32 %v324_v20, 0.0  ;;  %v244_v24 = vpop.f32.mrf.mxu2 }
  0xd6   :  { %376 = vst.msk [vmem:[%s794_s3 + $0x24] sm:$0xf] %vm366_vm1, %v359_v21  ;;  %v363_v25 = vpack.c.bf16 %v347_v22, %v347_v22  ;;  %v294_v26 = vadd.f32 %v293_v19, %v244_v24  ;;  %v226_v27 = vpop.f32.mrf.mxu0 }
  0xd7   :  { %v356_v28 = vpack.c.bf16 %v340_v23, %v340_v23  ;;  %v276_v29 = vadd.f32 %v714_v32, %v226_v27  ;;  %v295_v32 = vpop.f32.mrf.mxu3 }
  0xd8   :  { %380 = vst.msk [vmem:[%s794_s3 + $0x34] sm:$0xf] %vm366_vm1, %v363_v25  ;;  %v314_v30 = vmul.f32 %v685_v61, %v294_v26 }
  0xd9   :  { %373 = vst.msk [vmem:[%s794_s3 + $0x18] sm:$0xf] %vm366_vm1, %v356_v28  ;;  %v307_v31 = vmul.f32 %v685_v61, %v276_v29 }
  0xda   :  { %v332_v33 = vadd.f32 %v690_v0, %v314_v30 }
  0xdb   :  { %v325_v34 = vadd.f32 %v690_v0, %v307_v31 }
  0xdc   :  { %v348_v35 = vmax.f32 %v332_v33, 0.0 }
  0xdd   :  { %v341_v36 = vmax.f32 %v325_v34, 0.0  ;;  %v246_v37 = vpop.f32.mrf.mxu2 }
  0xde   :  { %v364_v38 = vpack.c.bf16 %v348_v35, %v348_v35  ;;  %v296_v39 = vadd.f32 %v295_v32, %v246_v37 }
  0xdf   :  { %v357_v40 = vpack.c.bf16 %v341_v36, %v341_v36 }
  0xe0   :  { %381 = vst.msk [vmem:[%s794_s3 + $0x38] sm:$0xf] %vm366_vm1, %v364_v38  ;;  %v315_v41 = vmul.f32 %v685_v61, %v296_v39 }
  0xe1   :  { %374 = vst.msk [vmem:[%s794_s3 + $0x1c] sm:$0xf] %vm366_vm1, %v357_v40 }
  0xe2   :  { %v333_v42 = vadd.f32 %v690_v0, %v315_v41 }
  0xe4   :  { %v349_v43 = vmax.f32 %v333_v42, 0.0 }
  0xe6   :  { %v365_v44 = vpack.c.bf16 %v349_v43, %v349_v43 }
  0xe8   :  { %382 = vst.msk [vmem:[%s794_s3 + $0x3c] sm:$0xf] %vm366_vm1, %v365_v44 }

// kernel: _lambda_.14
= control target key start
LH: loop header
LB: loop body
LE: loop exit
PB: predicated region body
PF: predicated region fallthrough
CT: control target
= control target key end

     0   :  { %s1343_s12 = smov 0   ;;  %s1345_s13 = smov 0   ;;  %s1635_s0 = inlined_call_operand.vmem [shape: bf16[512,144], index: 0, kind: input, shape index: {}]   ;;  %s1636_s1 = inlined_call_operand.vmem [shape: bf16[144,16], index: 1, kind: input, shape index: {}]   ;;  %s1637_s2 = inlined_call_operand.vmem [shape: f32[2,16], index: 2, kind: input, shape index: {}]   ;;  %s1638_s3 = inlined_call_operand.vmem [shape: bf16[512,16], index: 3, kind: output, shape index: {}]  }
   0x1   :  { %s1347_s14 = smov 0  }
   0x2 LB: > { %s32_s15 = sadd.s32 1, %s1317_s13  ;;  %p1034_p0 = scmp.ge.s32.totalorder %s1321_s14, 1  ;;  %s1321_s14 = sphi %s1347_s14, %s13_s14   ;;  %s1317_s13 = sphi %s1345_s13, %s1640_s13   ;;  %s1313_s12 = sphi %s1343_s12, %s1639_s12  }
   0x3   : > { %p34_p1 = scmp.ge.s32.totalorder %s32_s15, 2  ;;  %p192_p2 = scmp.lt.s32.totalorder %s1321_s14, 3 }
   0x5   : > { %s1642_s15 = smov (%p34_p1, %s32_s15), 0  ;;  %p193_p3 = pnand %p1034_p0, %p192_p2 }
   0x6   : > { %s1035_s20 = sshll.u32 (!%p193_p3), %s1313_s12, 5 }
   0x7   : > { %196 = sbr.rel (%p193_p3) target bundleno = 307 (0x133), region = 32  ;;  %p238_p4 = scmp.lt.s32.totalorder (!%p193_p3), %s1035_s20, 63 }
   0xc   : > { %v1262_v0 = vld [vmem:[%s1636_s1 + $0x38] sm:$0xff]  ;;  %v1263_v1 = vld [vmem:[%s1636_s1 + $0x40] sm:$0xff]  ;;  %v1261_v2 = vld [vmem:[%s1636_s1 + $0x30] sm:$0xff]  ;;  %s1644_s20 = smov (!%p238_p4, %s1035_s20), 63  ;;  %vm519_vm0 = vcmask 130048   ;;  %vm878_vm1 = vcmask 125952  }
   0xd   : > { %568 = vmatpush.bf16.msra.mxu0 %v1262_v0  ;;  %1264 = vmatpush.bf16.msra.mxu2 %v1262_v0  ;;  %s1222_s23 = sshll.u32 %s1644_s20, 3  ;;  %v1260_v3 = vld [vmem:[%s1636_s1 + $0x28] sm:$0xff]  ;;  %v1259_v7 = vld [vmem:[%s1636_s1 + $0x20] sm:$0xff]  ;;  %v1258_v11 = vld [vmem:[%s1636_s1 + $0x18] sm:$0xff]  ;;  %s1039_s19 = sshll.u32 %s1644_s20, 2 }
   0xe   : > { %664 = vmatpush.bf16.msra.mxu1 %v1263_v1  ;;  %1272 = vmatpush.bf16.msra.mxu3 %v1263_v1  ;;  %s1376_s26 = scalar_lea.vmem %s1635_s0, %s1222_s23  ;;  %v1257_v12 = vld [vmem:[%s1636_s1 + $0x10] sm:$0xff]  ;;  %v1256_v16 = vld [vmem:[%s1636_s1 + $0x8] sm:$0xff]  ;;  %v1255_v20 = vld [vmem:[%s1636_s1] sm:$0xff]  ;;  %s1494_s23 = scalar_lea.vmem %s1638_s3, %s1039_s19 }
   0xf   : > { %v1223_v4 = vld [vmem:[%s1376_s26 + $0x4] sm:$0xf]  ;;  %v1044_v5 = vld [vmem:[%s1376_s26 + $0x8] sm:$0xf0]  ;;  %v1241_v8 = vld [vmem:[%s1376_s26 + $0x94] sm:$0xf] }
  0x10   : > { %v1047_v6 = vor.u32 %v1223_v4, %v1044_v5  ;;  %v1116_v9 = vld [vmem:[%s1376_s26 + $0x98] sm:$0xf0]  ;;  %v1225_v13 = vld [vmem:[%s1376_s26 + $0x14] sm:$0xf]  ;;  %v1243_v17 = vld [vmem:[%s1376_s26 + $0xa4] sm:$0xf] }
  0x11   : > { %569 = vmatpush.bf16.msra.mxu0 %v1261_v2  ;;  %1265 = vmatpush.bf16.msra.mxu2 %v1261_v2  ;;  %v1119_v10 = vor.u32 %v1241_v8, %v1116_v9  ;;  %v1052_v14 = vld [vmem:[%s1376_s26 + $0x18] sm:$0xf0]  ;;  %v1124_v18 = vld [vmem:[%s1376_s26 + $0xa8] sm:$0xf0]  ;;  %v1042_v21 = vld [vmem:[%s1376_s26] sm:$0xf] }
  0x12   : > { %1204 = vmatmul.msk.bf16.vlgmr.msra.gmra.mxu1 %vm519_vm0, %v1047_v6  ;;  %v1055_v15 = vor.u32 %v1225_v13, %v1052_v14  ;;  %v1127_v19 = vor.u32 %v1243_v17, %v1124_v18  ;;  %v1224_v22 = vld [vmem:[%s1376_s26 + $0x4] sm:$0xf0]  ;;  %v1106_v23 = vld [vmem:[%s1376_s26 + $0x80] sm:$0xf]  ;;  %v1227_v27 = vld [vmem:[%s1376_s26 + $0x24] sm:$0xf] }
  0x13   : > { %1213 = vmatmul.msk.bf16.vlgmr.msra.gmra.mxu3 %vm519_vm0, %v1119_v10  ;;  %v1240_v24 = vld [vmem:[%s1376_s26 + $0x84] sm:$0xf0]  ;;  %v1043_v25 = vor.u32 %v1224_v22, %v1042_v21  ;;  %v1060_v28 = vld [vmem:[%s1376_s26 + $0x28] sm:$0xf0]  ;;  %v1245_v30 = vld [vmem:[%s1376_s26 + $0xb4] sm:$0xf] }
  0x14   : > { %v1107_v26 = vor.u32 %v1240_v24, %v1106_v23  ;;  %v1063_v29 = vor.u32 %v1227_v27, %v1060_v28  ;;  %v1132_v31 = vld [vmem:[%s1376_s26 + $0xb8] sm:$0xf0]  ;;  %v1050_v33 = vld [vmem:[%s1376_s26 + $0x10] sm:$0xf]  ;;  %v1226_v34 = vld [vmem:[%s1376_s26 + $0x14] sm:$0xf0] }
  0x15   : > { %570 = vmatpush.bf16.msra.mxu0 %v1260_v3  ;;  %1266 = vmatpush.bf16.msra.mxu2 %v1260_v3  ;;  %v1135_v32 = vor.u32 %v1245_v30, %v1132_v31  ;;  %v1114_v35 = vld [vmem:[%s1376_s26 + $0x90] sm:$0xf]  ;;  %v1242_v36 = vld [vmem:[%s1376_s26 + $0x94] sm:$0xf0]  ;;  %v1051_v37 = vor.u32 %v1226_v34, %v1050_v33  ;;  %v1229_v39 = vld [vmem:[%s1376_s26 + $0x34] sm:$0xf] }
  0x16   : > { %v1115_v38 = vor.u32 %v1242_v36, %v1114_v35  ;;  %v1068_v40 = vld [vmem:[%s1376_s26 + $0x38] sm:$0xf0]  ;;  %v1247_v42 = vld [vmem:[%s1376_s26 + $0xc4] sm:$0xf]  ;;  %v1140_v43 = vld [vmem:[%s1376_s26 + $0xc8] sm:$0xf0] }
  0x17   : > { %v1071_v41 = vor.u32 %v1229_v39, %v1068_v40  ;;  %v1143_v44 = vor.u32 %v1247_v42, %v1140_v43  ;;  %v1058_v45 = vld [vmem:[%s1376_s26 + $0x20] sm:$0xf]  ;;  %v1228_v46 = vld [vmem:[%s1376_s26 + $0x24] sm:$0xf0]  ;;  %v1231_v51 = vld [vmem:[%s1376_s26 + $0x44] sm:$0xf] }
  0x18   : > { %v1122_v47 = vld [vmem:[%s1376_s26 + $0xa0] sm:$0xf]  ;;  %v1244_v48 = vld [vmem:[%s1376_s26 + $0xa4] sm:$0xf0]  ;;  %v1059_v49 = vor.u32 %v1228_v46, %v1058_v45  ;;  %v1076_v52 = vld [vmem:[%s1376_s26 + $0x48] sm:$0xf0] }
  0x19   : > { %571 = vmatpush.bf16.msra.mxu0 %v1259_v7  ;;  %1267 = vmatpush.bf16.msra.mxu2 %v1259_v7  ;;  %v1123_v50 = vor.u32 %v1244_v48, %v1122_v47  ;;  %v1079_v53 = vor.u32 %v1231_v51, %v1076_v52  ;;  %v1249_v54 = vld [vmem:[%s1376_s26 + $0xd4] sm:$0xf]  ;;  %v1148_v55 = vld [vmem:[%s1376_s26 + $0xd8] sm:$0xf0]  ;;  %v1066_v57 = vld [vmem:[%s1376_s26 + $0x30] sm:$0xf] }
  0x1a   : > { %v1151_v56 = vor.u32 %v1249_v54, %v1148_v55  ;;  %v1230_v58 = vld [vmem:[%s1376_s26 + $0x34] sm:$0xf0]  ;;  %v1130_v59 = vld [vmem:[%s1376_s26 + $0xb0] sm:$0xf]  ;;  %v1233_v63 = vld [vmem:[%s1376_s26 + $0x54] sm:$0xf] }
  0x1b   : > { %v1246_v60 = vld [vmem:[%s1376_s26 + $0xb4] sm:$0xf0]  ;;  %v1067_v61 = vor.u32 %v1230_v58, %v1066_v57  ;;  %v1084_v0 = vld [vmem:[%s1376_s26 + $0x58] sm:$0xf0]  ;;  %v1251_v2 = vld [vmem:[%s1376_s26 + $0xe4] sm:$0xf] }
  0x1c   : > { %v1131_v62 = vor.u32 %v1246_v60, %v1130_v59  ;;  %v1087_v1 = vor.u32 %v1233_v63, %v1084_v0  ;;  %v1156_v3 = vld [vmem:[%s1376_s26 + $0xe8] sm:$0xf0]  ;;  %v1074_v5 = vld [vmem:[%s1376_s26 + $0x40] sm:$0xf]  ;;  %v1232_v6 = vld [vmem:[%s1376_s26 + $0x44] sm:$0xf0] }
  0x1d   : > { %572 = vmatpush.bf16.msra.mxu0 %v1258_v11  ;;  %1268 = vmatpush.bf16.msra.mxu2 %v1258_v11  ;;  %v1159_v4 = vor.u32 %v1251_v2, %v1156_v3  ;;  %v1138_v7 = vld [vmem:[%s1376_s26 + $0xc0] sm:$0xf]  ;;  %v1248_v8 = vld [vmem:[%s1376_s26 + $0xc4] sm:$0xf0]  ;;  %v1075_v9 = vor.u32 %v1232_v6, %v1074_v5  ;;  %v1235_v11 = vld [vmem:[%s1376_s26 + $0x64] sm:$0xf] }
  0x1e   : > { %v1139_v10 = vor.u32 %v1248_v8, %v1138_v7  ;;  %v1253_v14 = vld [vmem:[%s1376_s26 + $0xf4] sm:$0xf]  ;;  %v1082_v17 = vld [vmem:[%s1376_s26 + $0x50] sm:$0xf]  ;;  %v1234_v18 = vld [vmem:[%s1376_s26 + $0x54] sm:$0xf0] }
  0x1f   : > { %v1083_v21 = vor.u32 %v1234_v18, %v1082_v17  ;;  %v1237_v23 = vld [vmem:[%s1376_s26 + $0x74] sm:$0xf]  ;;  %v1100_v24 = vld [vmem:[%s1376_s26 + $0x78] sm:$0xf0]  ;;  %v1236_v27 = vld [vmem:[%s1376_s26 + $0x64] sm:$0xf0] }
  0x20   : > { %v1154_v28 = vld [vmem:[%s1376_s26 + $0xe0] sm:$0xf]  ;;  %v1108_v33 = vld [vmem:[%s1376_s26 + $0x88] sm:$0xf0]  ;;  %v1098_v36 = vld [vmem:[%s1376_s26 + $0x70] sm:$0xf] }
  0x21   : > { %573 = vmatpush.bf16.msra.mxu0 %v1257_v12  ;;  %1269 = vmatpush.bf16.msra.mxu2 %v1257_v12  ;;  %v1092_v12 = vld [vmem:[%s1376_s26 + $0x68] sm:$0xf0]  ;;  %v1254_v39 = vld [vmem:[%s1376_s26 + $0xf4] sm:$0xf0]  ;;  %v1479_v45 = vld [vmem:[%s1637_s2] ss:$0 sm:$0xff] }
  0x22   : > { %1205 = vmatmul.msk.bf16.gmra.mxu1 %vm519_vm0, %v1055_v15  ;;  %v1095_v13 = vor.u32 %v1235_v11, %v1092_v12  ;;  %v1164_v15 = vld [vmem:[%s1376_s26 + $0xf8] sm:$0xf0]  ;;  %v1484_v48 = vld [vmem:[%s1637_s2 + $0x1] ss:$0 sm:$0xff] }
  0x23   : > { %1214 = vmatmul.msk.bf16.gmra.mxu3 %vm519_vm0, %v1127_v19  ;;  %v1146_v19 = vld [vmem:[%s1376_s26 + $0xd0] sm:$0xf] }
  0x25   : > { %574 = vmatpush.bf16.msra.mxu0 %v1256_v16  ;;  %1270 = vmatpush.bf16.msra.mxu2 %v1256_v16  ;;  %v1167_v16 = vor.u32 %v1253_v14, %v1164_v15 }
  0x29   : > { %575 = vmatpush.bf16.msra.mxu0 %v1255_v20  ;;  %1271 = vmatpush.bf16.msra.mxu2 %v1255_v20  ;;  %v1250_v20 = vld [vmem:[%s1376_s26 + $0xd4] sm:$0xf0] }
  0x2a   : > { %v1147_v22 = vor.u32 %v1250_v20, %v1146_v19 }
  0x2c   : > { %576 = vmatmul.bf16.vlgmr.msra.gmra.mxu0 %v1043_v25  ;;  %616 = vmatmul.bf16.vlgmr.msra.gmra.mxu2 %v1107_v26  ;;  %v1103_v25 = vor.u32 %v1237_v23, %v1100_v24  ;;  %v1090_v26 = vld [vmem:[%s1376_s26 + $0x60] sm:$0xf] }
  0x2d   : > { %v1091_v30 = vor.u32 %v1236_v27, %v1090_v26 }
  0x32   : > { %1206 = vmatmul.msk.bf16.gmra.mxu1 %vm519_vm0, %v1063_v29  ;;  %v1252_v29 = vld [vmem:[%s1376_s26 + $0xe4] sm:$0xf0] }
  0x33   : > { %1215 = vmatmul.msk.bf16.gmra.mxu3 %vm519_vm0, %v1135_v32  ;;  %v1155_v31 = vor.u32 %v1252_v29, %v1154_v28  ;;  %v1239_v32 = vld [vmem:[%s1376_s26 + $0x84] sm:$0xf] }
  0x34   : > { %v1111_v34 = vor.u32 %v1239_v32, %v1108_v33 }
  0x3c   : > { %581 = vmatmul.bf16.gmra.mxu0 %v1051_v37  ;;  %621 = vmatmul.bf16.gmra.mxu2 %v1115_v38  ;;  %v1238_v37 = vld [vmem:[%s1376_s26 + $0x74] sm:$0xf0]  ;;  %v1162_v38 = vld [vmem:[%s1376_s26 + $0xf0] sm:$0xf] }
  0x3d   : > { %v1099_v40 = vor.u32 %v1238_v37, %v1098_v36 }
  0x42   : > { %1207 = vmatmul.msk.bf16.gmra.mxu1 %vm519_vm0, %v1071_v41  ;;  %v1163_v41 = vor.u32 %v1254_v39, %v1162_v38 }
  0x43   : > { %1216 = vmatmul.msk.bf16.gmra.mxu3 %vm519_vm0, %v1143_v44 }
  0x4c   : > { %586 = vmatmul.bf16.gmra.mxu0 %v1059_v49  ;;  %626 = vmatmul.bf16.gmra.mxu2 %v1123_v50 }
  0x52   : > { %1208 = vmatmul.msk.bf16.gmra.mxu1 %vm519_vm0, %v1079_v53 }
  0x53   : > { %1217 = vmatmul.msk.bf16.gmra.mxu3 %vm519_vm0, %v1151_v56 }
  0x5c   : > { %591 = vmatmul.bf16.gmra.mxu0 %v1067_v61  ;;  %631 = vmatmul.bf16.gmra.mxu2 %v1131_v62 }
  0x62   : > { %1209 = vmatmul.msk.bf16.gmra.mxu1 %vm519_vm0, %v1087_v1 }
  0x63   : > { %1218 = vmatmul.msk.bf16.gmra.mxu3 %vm519_vm0, %v1159_v4 }
  0x6c   : > { %596 = vmatmul.bf16.gmra.mxu0 %v1075_v9  ;;  %636 = vmatmul.bf16.gmra.mxu2 %v1139_v10 }
  0x72   : > { %1210 = vmatmul.msk.bf16.gmra.mxu1 %vm519_vm0, %v1095_v13 }
  0x73   : > { %1219 = vmatmul.msk.bf16.gmra.mxu3 %vm519_vm0, %v1167_v16 }
  0x7c   : > { %601 = vmatmul.bf16.gmra.mxu0 %v1083_v21  ;;  %641 = vmatmul.bf16.gmra.mxu2 %v1147_v22 }
  0x82   : > { %1211 = vmatmul.msk.bf16.gmra.mxu1 %vm519_vm0, %v1103_v25 }
  0x8c   : > { %606 = vmatmul.bf16.gmra.mxu0 %v1091_v30  ;;  %646 = vmatmul.bf16.gmra.mxu2 %v1155_v31 }
  0x8f   : > { %v666_v35 = vpop.f32.mrf.mxu1 }
  0x92   : > { %1212 = vmatmul.msk.bf16.gmra.mxu1 %vm519_vm0, %v1111_v34 }
  0x96   : > { %v711_v44 = vpop.f32.mrf.mxu3 }
  0x97   : > { %v668_v42 = vpop.f32.mrf.mxu1 }
  0x9c   : > { %611 = vmatmul.bf16.gmra.mxu0 %v1099_v40  ;;  %651 = vmatmul.bf16.gmra.mxu2 %v1163_v41 }
  0x9e   : > { %v713_v54 = vpop.f32.mrf.mxu3 }
  0x9f   : > { %v671_v43 = vpop.f32.mrf.mxu1 }
  0xa6   : > { %v716_v3 = vpop.f32.mrf.mxu3 }
  0xa7   : > { %v673_v49 = vpop.f32.mrf.mxu1 }
  0xa9   : > { %v577_v46 = vpop.f32.mrf.mxu0 }
  0xaa   : > { %v667_v47 = vadd.f32 %v666_v35, %v577_v46 }
  0xac   : > { %v748_v50 = vmul.f32 %v1479_v45, %v667_v47 }
  0xae   : > { %v782_v51 = vadd.f32 %v1484_v48, %v748_v50  ;;  %v718_v15 = vpop.f32.mrf.mxu3 }
  0xaf   : > { %v1489_v53 = vpop.f32.mrf.mxu2  ;;  %v676_v58 = vpop.f32.mrf.mxu1 }
  0xb0   : > { %v814_v52 = vmax.f32 %v782_v51, 0.0 }
  0xb1   : > { %v579_v55 = vpop.f32.mrf.mxu0 }
  0xb2   : > { %v846_v56 = vpack.c.bf16 %v814_v52, %v814_v52  ;;  %v669_v57 = vadd.f32 %v668_v42, %v579_v55 }
  0xb4   : > { %879 = vst.msk [vmem:[%s1494_s23] sm:$0xf] %vm878_vm1, %v846_v56  ;;  %v749_v59 = vmul.f32 %v1479_v45, %v669_v57 }
  0xb6   : > { %v783_v60 = vadd.f32 %v1484_v48, %v749_v59  ;;  %v721_v31 = vpop.f32.mrf.mxu3 }
  0xb7   : > { %v1500_v62 = vpop.f32.mrf.mxu2  ;;  %v678_v2 = vpop.f32.mrf.mxu1 }
  0xb8   : > { %v815_v61 = vmax.f32 %v783_v60, 0.0 }
  0xb9   : > { %v582_v63 = vpop.f32.mrf.mxu0 }
  0xba   : > { %v847_v0 = vpack.c.bf16 %v815_v61, %v815_v61  ;;  %v672_v1 = vadd.f32 %v671_v43, %v582_v63 }
  0xbc   : > { %880 = vst.msk [vmem:[%s1494_s23 + $0x4] sm:$0xf] %vm878_vm1, %v847_v0  ;;  %v750_v4 = vmul.f32 %v1479_v45, %v672_v1 }
  0xbe   : > { %v784_v5 = vadd.f32 %v1484_v48, %v750_v4  ;;  %v723_v50 = vpop.f32.mrf.mxu3 }
  0xbf   : > { %v622_v7 = vpop.f32.mrf.mxu2  ;;  %v681_v12 = vpop.f32.mrf.mxu1 }
  0xc0   : > { %v816_v6 = vmax.f32 %v784_v5, 0.0  ;;  %v712_v8 = vadd.f32 %v711_v44, %v622_v7 }
  0xc1   : > { %v584_v9 = vpop.f32.mrf.mxu0 }
  0xc2   : > { %v848_v10 = vpack.c.bf16 %v816_v6, %v816_v6  ;;  %v674_v11 = vadd.f32 %v673_v49, %v584_v9  ;;  %v766_v13 = vmul.f32 %v1479_v45, %v712_v8 }
  0xc4   : > { %881 = vst.msk [vmem:[%s1494_s23 + $0x8] sm:$0xf] %vm878_vm1, %v848_v10  ;;  %v751_v14 = vmul.f32 %v1479_v45, %v674_v11  ;;  %v800_v16 = vadd.f32 %v1484_v48, %v766_v13 }
  0xc6   : > { %v785_v17 = vadd.f32 %v1484_v48, %v751_v14  ;;  %v832_v18 = vmax.f32 %v800_v16, 0.0  ;;  %v726_v8 = vpop.f32.mrf.mxu3 }
  0xc7   : > { %v624_v20 = vpop.f32.mrf.mxu2  ;;  %v683_v26 = vpop.f32.mrf.mxu1 }
  0xc8   : > { %v817_v19 = vmax.f32 %v785_v17, 0.0  ;;  %v864_v21 = vpack.c.bf16 %v832_v18, %v832_v18  ;;  %v714_v22 = vadd.f32 %v713_v54, %v624_v20 }
  0xc9   : > { %v587_v23 = vpop.f32.mrf.mxu0 }
  0xca   : > { %v849_v24 = vpack.c.bf16 %v817_v19, %v817_v19  ;;  %v677_v25 = vadd.f32 %v676_v58, %v587_v23  ;;  %897 = vst.msk [vmem:[%s1494_s23 + $0x48] sm:$0xf] %vm878_vm1, %v864_v21  ;;  %v767_v27 = vmul.f32 %v1479_v45, %v714_v22 }
  0xcc   : > { %882 = vst.msk [vmem:[%s1494_s23 + $0xc] sm:$0xf] %vm878_vm1, %v849_v24  ;;  %v752_v28 = vmul.f32 %v1479_v45, %v677_v25  ;;  %v801_v29 = vadd.f32 %v1484_v48, %v767_v27 }
  0xce   : > { %v786_v30 = vadd.f32 %v1484_v48, %v752_v28  ;;  %v833_v32 = vmax.f32 %v801_v29, 0.0  ;;  %v728_v24 = vpop.f32.mrf.mxu3 }
  0xcf   : > { %v627_v34 = vpop.f32.mrf.mxu2  ;;  %v686_v40 = vpop.f32.mrf.mxu1 }
  0xd0   : > { %v818_v33 = vmax.f32 %v786_v30, 0.0  ;;  %v865_v35 = vpack.c.bf16 %v833_v32, %v833_v32  ;;  %v717_v36 = vadd.f32 %v716_v3, %v627_v34 }
  0xd1   : > { %v589_v37 = vpop.f32.mrf.mxu0 }
  0xd2   : > { %v850_v38 = vpack.c.bf16 %v818_v33, %v818_v33  ;;  %v679_v39 = vadd.f32 %v678_v2, %v589_v37  ;;  %898 = vst.msk [vmem:[%s1494_s23 + $0x4c] sm:$0xf] %vm878_vm1, %v865_v35  ;;  %v768_v41 = vmul.f32 %v1479_v45, %v717_v36 }
  0xd4   : > { %883 = vst.msk [vmem:[%s1494_s23 + $0x10] sm:$0xf] %vm878_vm1, %v850_v38  ;;  %v753_v42 = vmul.f32 %v1479_v45, %v679_v39  ;;  %v802_v43 = vadd.f32 %v1484_v48, %v768_v41 }
  0xd6   : > { %v787_v44 = vadd.f32 %v1484_v48, %v753_v42  ;;  %v834_v46 = vmax.f32 %v802_v43, 0.0 }
  0xd7   : > { %v629_v49 = vpop.f32.mrf.mxu2  ;;  %v688_v57 = vpop.f32.mrf.mxu1 }
  0xd8   : > { %v819_v47 = vmax.f32 %v787_v44, 0.0  ;;  %v866_v51 = vpack.c.bf16 %v834_v46, %v834_v46  ;;  %v719_v52 = vadd.f32 %v718_v15, %v629_v49 }
  0xd9   : > { %v592_v54 = vpop.f32.mrf.mxu0 }
  0xda   : > { %v851_v55 = vpack.c.bf16 %v819_v47, %v819_v47  ;;  %v682_v56 = vadd.f32 %v681_v12, %v592_v54  ;;  %899 = vst.msk [vmem:[%s1494_s23 + $0x50] sm:$0xf] %vm878_vm1, %v866_v51  ;;  %v769_v58 = vmul.f32 %v1479_v45, %v719_v52 }
  0xdc   : > { %884 = vst.msk [vmem:[%s1494_s23 + $0x14] sm:$0xf] %vm878_vm1, %v851_v55  ;;  %v754_v59 = vmul.f32 %v1479_v45, %v682_v56  ;;  %v803_v60 = vadd.f32 %v1484_v48, %v769_v58 }
  0xde   : > { %v788_v61 = vadd.f32 %v1484_v48, %v754_v59  ;;  %v835_v63 = vmax.f32 %v803_v60, 0.0 }
  0xdf   : > { %v632_v1 = vpop.f32.mrf.mxu2  ;;  %v691_v7 = vpop.f32.mrf.mxu1 }
  0xe0   : > { %v820_v0 = vmax.f32 %v788_v61, 0.0  ;;  %v867_v2 = vpack.c.bf16 %v835_v63, %v835_v63  ;;  %v722_v3 = vadd.f32 %v721_v31, %v632_v1 }
  0xe1   : > { %v594_v4 = vpop.f32.mrf.mxu0 }
  0xe2   : > { %v852_v5 = vpack.c.bf16 %v820_v0, %v820_v0  ;;  %v684_v6 = vadd.f32 %v683_v26, %v594_v4  ;;  %900 = vst.msk [vmem:[%s1494_s23 + $0x54] sm:$0xf] %vm878_vm1, %v867_v2  ;;  %v770_v9 = vmul.f32 %v1479_v45, %v722_v3 }
  0xe4   : > { %885 = vst.msk [vmem:[%s1494_s23 + $0x18] sm:$0xf] %vm878_vm1, %v852_v5  ;;  %v755_v10 = vmul.f32 %v1479_v45, %v684_v6  ;;  %v804_v11 = vadd.f32 %v1484_v48, %v770_v9 }
  0xe6   : > { %v789_v12 = vadd.f32 %v1484_v48, %v755_v10  ;;  %v836_v13 = vmax.f32 %v804_v11, 0.0 }
  0xe7   : > { %v634_v15 = vpop.f32.mrf.mxu2  ;;  %v693_v21 = vpop.f32.mrf.mxu1 }
  0xe8   : > { %v821_v14 = vmax.f32 %v789_v12, 0.0  ;;  %v868_v16 = vpack.c.bf16 %v836_v13, %v836_v13  ;;  %v724_v17 = vadd.f32 %v723_v50, %v634_v15 }
  0xe9   : > { %v597_v18 = vpop.f32.mrf.mxu0 }
  0xea   : > { %v853_v19 = vpack.c.bf16 %v821_v14, %v821_v14  ;;  %v687_v20 = vadd.f32 %v686_v40, %v597_v18  ;;  %901 = vst.msk [vmem:[%s1494_s23 + $0x58] sm:$0xf] %vm878_vm1, %v868_v16  ;;  %v771_v22 = vmul.f32 %v1479_v45, %v724_v17  ;;  %v731_v40 = vpop.f32.mrf.mxu3 }
  0xec   : > { %886 = vst.msk [vmem:[%s1494_s23 + $0x1c] sm:$0xf] %vm878_vm1, %v853_v19  ;;  %v756_v23 = vmul.f32 %v1479_v45, %v687_v20  ;;  %v805_v25 = vadd.f32 %v1484_v48, %v771_v22 }
  0xee   : > { %v790_v26 = vadd.f32 %v1484_v48, %v756_v23  ;;  %v837_v27 = vmax.f32 %v805_v25, 0.0 }
  0xef   : > { %v637_v29 = vpop.f32.mrf.mxu2  ;;  %v696_v35 = vpop.f32.mrf.mxu1 }
  0xf0   : > { %v822_v28 = vmax.f32 %v790_v26, 0.0  ;;  %v869_v30 = vpack.c.bf16 %v837_v27, %v837_v27  ;;  %v727_v31 = vadd.f32 %v726_v8, %v637_v29 }
  0xf1   : > { %v599_v32 = vpop.f32.mrf.mxu0 }
  0xf2   : > { %v854_v33 = vpack.c.bf16 %v822_v28, %v822_v28  ;;  %v689_v34 = vadd.f32 %v688_v57, %v599_v32  ;;  %902 = vst.msk [vmem:[%s1494_s23 + $0x5c] sm:$0xf] %vm878_vm1, %v869_v30  ;;  %v772_v36 = vmul.f32 %v1479_v45, %v727_v31  ;;  %v733_v60 = vpop.f32.mrf.mxu3 }
  0xf4   : > { %887 = vst.msk [vmem:[%s1494_s23 + $0x20] sm:$0xf] %vm878_vm1, %v854_v33  ;;  %v757_v37 = vmul.f32 %v1479_v45, %v689_v34  ;;  %v806_v38 = vadd.f32 %v1484_v48, %v772_v36 }
  0xf6   : > { %v791_v39 = vadd.f32 %v1484_v48, %v757_v37  ;;  %v838_v41 = vmax.f32 %v806_v38, 0.0 }
  0xf7   : > { %v639_v43 = vpop.f32.mrf.mxu2  ;;  %v698_v51 = vpop.f32.mrf.mxu1 }
  0xf8   : > { %v823_v42 = vmax.f32 %v791_v39, 0.0  ;;  %v870_v44 = vpack.c.bf16 %v838_v41, %v838_v41  ;;  %v729_v46 = vadd.f32 %v728_v24, %v639_v43 }
  0xf9   : > { %v602_v47 = vpop.f32.mrf.mxu0 }
  0xfa   : > { %v855_v49 = vpack.c.bf16 %v823_v42, %v823_v42  ;;  %v692_v50 = vadd.f32 %v691_v7, %v602_v47  ;;  %903 = vst.msk [vmem:[%s1494_s23 + $0x60] sm:$0xf] %vm878_vm1, %v870_v44  ;;  %v773_v52 = vmul.f32 %v1479_v45, %v729_v46  ;;  %v736_v15 = vpop.f32.mrf.mxu3 }
  0xfc   : > { %888 = vst.msk [vmem:[%s1494_s23 + $0x24] sm:$0xf] %vm878_vm1, %v855_v49  ;;  %v758_v54 = vmul.f32 %v1479_v45, %v692_v50  ;;  %v807_v55 = vadd.f32 %v1484_v48, %v773_v52 }
  0xfe   : > { %v792_v56 = vadd.f32 %v1484_v48, %v758_v54  ;;  %v839_v57 = vmax.f32 %v807_v55, 0.0 }
  0xff   : > { %v642_v59 = vpop.f32.mrf.mxu2  ;;  %v701_v3 = vpop.f32.mrf.mxu1 }
 0x100   : > { %v824_v58 = vmax.f32 %v792_v56, 0.0  ;;  %v871_v61 = vpack.c.bf16 %v839_v57, %v839_v57  ;;  %v732_v63 = vadd.f32 %v731_v40, %v642_v59 }
 0x101   : > { %v604_v0 = vpop.f32.mrf.mxu0 }
 0x102   : > { %v856_v1 = vpack.c.bf16 %v824_v58, %v824_v58  ;;  %v694_v2 = vadd.f32 %v693_v21, %v604_v0  ;;  %904 = vst.msk [vmem:[%s1494_s23 + $0x64] sm:$0xf] %vm878_vm1, %v871_v61  ;;  %v774_v4 = vmul.f32 %v1479_v45, %v732_v63  ;;  %v738_v33 = vpop.f32.mrf.mxu3 }
 0x104   : > { %889 = vst.msk [vmem:[%s1494_s23 + $0x28] sm:$0xf] %vm878_vm1, %v856_v1  ;;  %v759_v5 = vmul.f32 %v1479_v45, %v694_v2  ;;  %v808_v6 = vadd.f32 %v1484_v48, %v774_v4 }
 0x106   : > { %v793_v7 = vadd.f32 %v1484_v48, %v759_v5  ;;  %v840_v8 = vmax.f32 %v808_v6, 0.0 }
 0x107   : > { %v644_v10 = vpop.f32.mrf.mxu2  ;;  %v703_v17 = vpop.f32.mrf.mxu1 }
 0x108   : > { %v825_v9 = vmax.f32 %v793_v7, 0.0  ;;  %v872_v11 = vpack.c.bf16 %v840_v8, %v840_v8  ;;  %v734_v12 = vadd.f32 %v733_v60, %v644_v10 }
 0x109   : > { %v607_v13 = vpop.f32.mrf.mxu0 }
 0x10a   : > { %v857_v14 = vpack.c.bf16 %v825_v9, %v825_v9  ;;  %v697_v16 = vadd.f32 %v696_v35, %v607_v13  ;;  %905 = vst.msk [vmem:[%s1494_s23 + $0x68] sm:$0xf] %vm878_vm1, %v872_v11  ;;  %v775_v18 = vmul.f32 %v1479_v45, %v734_v12  ;;  %v741_v57 = vpop.f32.mrf.mxu3 }
 0x10c   : > { %890 = vst.msk [vmem:[%s1494_s23 + $0x2c] sm:$0xf] %vm878_vm1, %v857_v14  ;;  %v760_v19 = vmul.f32 %v1479_v45, %v697_v16  ;;  %v809_v20 = vadd.f32 %v1484_v48, %v775_v18 }
 0x10e   : > { %v794_v21 = vadd.f32 %v1484_v48, %v760_v19  ;;  %v841_v22 = vmax.f32 %v809_v20, 0.0 }
 0x10f   : > { %v647_v24 = vpop.f32.mrf.mxu2  ;;  %v706_v30 = vpop.f32.mrf.mxu1 }
 0x110   : > { %v826_v23 = vmax.f32 %v794_v21, 0.0  ;;  %v873_v25 = vpack.c.bf16 %v841_v22, %v841_v22  ;;  %v737_v26 = vadd.f32 %v736_v15, %v647_v24  ;;  %v707_v32 = vadd.f32 %v706_v30, %v1489_v53 }
 0x111   : > { %v609_v27 = vpop.f32.mrf.mxu0 }
 0x112   : > { %v858_v28 = vpack.c.bf16 %v826_v23, %v826_v23  ;;  %v699_v29 = vadd.f32 %v698_v51, %v609_v27  ;;  %906 = vst.msk [vmem:[%s1494_s23 + $0x6c] sm:$0xf] %vm878_vm1, %v873_v25  ;;  %v776_v31 = vmul.f32 %v1479_v45, %v737_v26  ;;  %v764_v36 = vmul.f32 %v1479_v45, %v707_v32  ;;  %v743_v11 = vpop.f32.mrf.mxu3 }
 0x114   : > { %891 = vst.msk [vmem:[%s1494_s23 + $0x30] sm:$0xf] %vm878_vm1, %v858_v28  ;;  %v761_v34 = vmul.f32 %v1479_v45, %v699_v29  ;;  %v810_v35 = vadd.f32 %v1484_v48, %v776_v31  ;;  %v798_v39 = vadd.f32 %v1484_v48, %v764_v36 }
 0x116   : > { %v795_v37 = vadd.f32 %v1484_v48, %v761_v34  ;;  %v842_v38 = vmax.f32 %v810_v35, 0.0  ;;  %v830_v42 = vmax.f32 %v798_v39, 0.0 }
 0x117   : > { %v649_v41 = vpop.f32.mrf.mxu2  ;;  %v708_v49 = vpop.f32.mrf.mxu1 }
 0x118   : > { %v827_v40 = vmax.f32 %v795_v37, 0.0  ;;  %v874_v53 = vpack.c.bf16 %v842_v38, %v842_v38  ;;  %v739_v43 = vadd.f32 %v738_v33, %v649_v41  ;;  %v862_v50 = vpack.c.bf16 %v830_v42, %v830_v42 }
 0x119   : > { %v612_v44 = vpop.f32.mrf.mxu0  ;;  %v709_v52 = vadd.f32 %v708_v49, %v1500_v62 }
 0x11a   : > { %v859_v46 = vpack.c.bf16 %v827_v40, %v827_v40  ;;  %v702_v47 = vadd.f32 %v701_v3, %v612_v44  ;;  %907 = vst.msk [vmem:[%s1494_s23 + $0x70] sm:$0xf] %vm878_vm1, %v874_v53  ;;  %v777_v51 = vmul.f32 %v1479_v45, %v739_v43 }
 0x11b   : > { %895 = vst.msk [vmem:[%s1494_s23 + $0x40] sm:$0xf] %vm878_vm1, %v862_v50  ;;  %v765_v56 = vmul.f32 %v1479_v45, %v709_v52 }
 0x11c   : > { %892 = vst.msk [vmem:[%s1494_s23 + $0x34] sm:$0xf] %vm878_vm1, %v859_v46  ;;  %v762_v54 = vmul.f32 %v1479_v45, %v702_v47  ;;  %v811_v55 = vadd.f32 %v1484_v48, %v777_v51 }
 0x11d   : > { %v799_v60 = vadd.f32 %v1484_v48, %v765_v56 }
 0x11e   : > { %v796_v58 = vadd.f32 %v1484_v48, %v762_v54  ;;  %v843_v59 = vmax.f32 %v811_v55, 0.0 }
 0x11f   : > { %v652_v61 = vpop.f32.mrf.mxu2  ;;  %v831_v0 = vmax.f32 %v799_v60, 0.0 }
 0x120   : > { %v828_v62 = vmax.f32 %v796_v58, 0.0  ;;  %v875_v63 = vpack.c.bf16 %v843_v59, %v843_v59  ;;  %v742_v1 = vadd.f32 %v741_v57, %v652_v61 }
 0x121   : > { %v614_v2 = vpop.f32.mrf.mxu0  ;;  %v863_v5 = vpack.c.bf16 %v831_v0, %v831_v0 }
 0x122   : > { %v860_v3 = vpack.c.bf16 %v828_v62, %v828_v62  ;;  %v704_v4 = vadd.f32 %v703_v17, %v614_v2  ;;  %908 = vst.msk [vmem:[%s1494_s23 + $0x74] sm:$0xf] %vm878_vm1, %v875_v63  ;;  %v778_v6 = vmul.f32 %v1479_v45, %v742_v1 }
 0x123   : > { %896 = vst.msk [vmem:[%s1494_s23 + $0x44] sm:$0xf] %vm878_vm1, %v863_v5 }
 0x124   : > { %893 = vst.msk [vmem:[%s1494_s23 + $0x38] sm:$0xf] %vm878_vm1, %v860_v3  ;;  %v763_v7 = vmul.f32 %v1479_v45, %v704_v4  ;;  %v812_v8 = vadd.f32 %v1484_v48, %v778_v6 }
 0x126   : > { %v797_v9 = vadd.f32 %v1484_v48, %v763_v7  ;;  %v844_v10 = vmax.f32 %v812_v8, 0.0 }
 0x127   : > { %v654_v13 = vpop.f32.mrf.mxu2 }
 0x128   : > { %v829_v12 = vmax.f32 %v797_v9, 0.0  ;;  %v876_v14 = vpack.c.bf16 %v844_v10, %v844_v10  ;;  %v744_v15 = vadd.f32 %v743_v11, %v654_v13 }
 0x12a   : > { %v861_v16 = vpack.c.bf16 %v829_v12, %v829_v12  ;;  %909 = vst.msk [vmem:[%s1494_s23 + $0x78] sm:$0xf] %vm878_vm1, %v876_v14  ;;  %v779_v17 = vmul.f32 %v1479_v45, %v744_v15 }
 0x12c   : > { %894 = vst.msk [vmem:[%s1494_s23 + $0x3c] sm:$0xf] %vm878_vm1, %v861_v16  ;;  %v813_v18 = vadd.f32 %v1484_v48, %v779_v17 }
 0x12e   : > { %v845_v19 = vmax.f32 %v813_v18, 0.0 }
 0x130   : > { %v877_v20 = vpack.c.bf16 %v845_v19, %v845_v19 }
 0x132   : > { %910 = vst.msk [vmem:[%s1494_s23 + $0x7c] sm:$0xf] %vm878_vm1, %v877_v20 }
 0x133 PF: > { %s13_s14 = sadd.s32 1, %s1321_s14   ;;  %s1639_s12 = smov %s1317_s13 }
 0x134   : > { %p10_p5 = scmp.ge.s32.totalorder %s13_s14, 4   ;;  %s1640_s13 = smov %s1642_s15 }
 0x136   :  { %12 = sbr.rel (!%p10_p5) target bundleno = 2 (0x2), region = 68 }

// kernel: _lambda_.17
= control target key start
LH: loop header
LB: loop body
LE: loop exit
PB: predicated region body
PF: predicated region fallthrough
CT: control target
= control target key end

     0   :  { %vm79_vm0 = vcmask 130048   ;;  %vm205_vm1 = vcmask 257024   ;;  %s445_s1 = inlined_call_operand.vmem [shape: bf16[16,32], index: 1, kind: input, shape index: {}]   ;;  %s446_s0 = inlined_call_operand.vmem [shape: bf16[128,16], index: 0, kind: input, shape index: {}]   ;;  %s447_s2 = inlined_call_operand.vmem [shape: f32[2,32], index: 2, kind: input, shape index: {}]   ;;  %s448_s3 = inlined_call_operand.vmem [shape: bf16[128,32], index: 3, kind: output, shape index: {}]  }
   0x1   :  { %v278_v0 = vld [vmem:[%s445_s1] sm:$0xff]  ;;  %v272_v2 = vld [vmem:[%s446_s0 + $0x10] sm:$0xff]  ;;  %v271_v5 = vld [vmem:[%s446_s0 + $0x8] sm:$0xff] }
   0x2   :  { %v270_v1 = vld [vmem:[%s446_s0] sm:$0xff]  ;;  %111 = vmatpush.bf16.msra.mxu0 %v278_v0  ;;  %279 = vmatpush.bf16.msra.mxu1 %v278_v0  ;;  %v276_v4 = vld [vmem:[%s446_s0 + $0x30] sm:$0xff]  ;;  %v273_v6 = vld [vmem:[%s446_s0 + $0x18] sm:$0xff] }
   0x3   :  { %v274_v3 = vld [vmem:[%s446_s0 + $0x20] sm:$0xff]  ;;  %280 = vmatpush.bf16.msra.mxu2 %v278_v0  ;;  %281 = vmatpush.bf16.msra.mxu3 %v278_v0  ;;  %v275_v7 = vld [vmem:[%s446_s0 + $0x28] sm:$0xff]  ;;  %v277_v8 = vld [vmem:[%s446_s0 + $0x38] sm:$0xff] }
   0x4   :  { %v342_v9 = vld [vmem:[%s447_s2] ss:$0 sm:$0xff]  ;;  %v347_v10 = vld [vmem:[%s447_s2 + $0x1] ss:$0 sm:$0xff] }
   0x5   :  { %262 = vmatmul.msk.bf16.vlgmr.msra.gmra.mxu0 %vm79_vm0, %v270_v1  ;;  %264 = vmatmul.msk.bf16.vlgmr.msra.gmra.mxu1 %vm79_vm0, %v272_v2 }
   0x6   :  { %266 = vmatmul.msk.bf16.vlgmr.msra.gmra.mxu2 %vm79_vm0, %v274_v3  ;;  %268 = vmatmul.msk.bf16.vlgmr.msra.gmra.mxu3 %vm79_vm0, %v276_v4 }
  0x15   :  { %263 = vmatmul.msk.bf16.gmra.mxu0 %vm79_vm0, %v271_v5  ;;  %265 = vmatmul.msk.bf16.gmra.mxu1 %vm79_vm0, %v273_v6 }
  0x16   :  { %267 = vmatmul.msk.bf16.gmra.mxu2 %vm79_vm0, %v275_v7  ;;  %269 = vmatmul.msk.bf16.gmra.mxu3 %vm79_vm0, %v277_v8 }
  0x82   :  { %v113_v11 = vpop.f32.mrf.mxu0  ;;  %v123_v12 = vpop.f32.mrf.mxu1 }
  0x83   :  { %v155_v13 = vmul.f32 %v342_v9, %v113_v11  ;;  %v159_v14 = vmul.f32 %v342_v9, %v123_v12 }
  0x85   :  { %v173_v15 = vadd.f32 %v347_v10, %v155_v13  ;;  %v177_v16 = vadd.f32 %v347_v10, %v159_v14 }
  0x87   :  { %v189_v17 = vpack.c.bf16 %v173_v15, %v173_v15  ;;  %v193_v18 = vpack.c.bf16 %v177_v16, %v177_v16 }
  0x89   :  { %206 = vst.msk [vmem:[%s448_s3] sm:$0xf] %vm205_vm1, %v189_v17  ;;  %v133_v19 = vpop.f32.mrf.mxu2  ;;  %v143_v20 = vpop.f32.mrf.mxu3 }
  0x8a   :  { %210 = vst.msk [vmem:[%s448_s3 + $0x10] sm:$0xf] %vm205_vm1, %v193_v18  ;;  %v163_v21 = vmul.f32 %v342_v9, %v133_v19  ;;  %v167_v22 = vmul.f32 %v342_v9, %v143_v20  ;;  %v115_v23 = vpop.f32.mrf.mxu0  ;;  %v125_v24 = vpop.f32.mrf.mxu1 }
  0x8b   :  { %v156_v25 = vmul.f32 %v342_v9, %v115_v23  ;;  %v160_v26 = vmul.f32 %v342_v9, %v125_v24 }
  0x8c   :  { %v181_v27 = vadd.f32 %v347_v10, %v163_v21  ;;  %v185_v28 = vadd.f32 %v347_v10, %v167_v22 }
  0x8d   :  { %v174_v29 = vadd.f32 %v347_v10, %v156_v25  ;;  %v178_v30 = vadd.f32 %v347_v10, %v160_v26 }
  0x8e   :  { %v197_v31 = vpack.c.bf16 %v181_v27, %v181_v27  ;;  %v201_v32 = vpack.c.bf16 %v185_v28, %v185_v28 }
  0x8f   :  { %v190_v33 = vpack.c.bf16 %v174_v29, %v174_v29  ;;  %v194_v34 = vpack.c.bf16 %v178_v30, %v178_v30 }
  0x90   :  { %214 = vst.msk [vmem:[%s448_s3 + $0x20] sm:$0xf] %vm205_vm1, %v197_v31 }
  0x91   :  { %218 = vst.msk [vmem:[%s448_s3 + $0x30] sm:$0xf] %vm205_vm1, %v201_v32  ;;  %v135_v35 = vpop.f32.mrf.mxu2  ;;  %v145_v36 = vpop.f32.mrf.mxu3 }
  0x92   :  { %207 = vst.msk [vmem:[%s448_s3 + $0x4] sm:$0xf] %vm205_vm1, %v190_v33  ;;  %v164_v37 = vmul.f32 %v342_v9, %v135_v35  ;;  %v168_v38 = vmul.f32 %v342_v9, %v145_v36  ;;  %v118_v39 = vpop.f32.mrf.mxu0  ;;  %v128_v40 = vpop.f32.mrf.mxu1 }
  0x93   :  { %211 = vst.msk [vmem:[%s448_s3 + $0x14] sm:$0xf] %vm205_vm1, %v194_v34  ;;  %v157_v41 = vmul.f32 %v342_v9, %v118_v39  ;;  %v161_v42 = vmul.f32 %v342_v9, %v128_v40 }
  0x94   :  { %v182_v43 = vadd.f32 %v347_v10, %v164_v37  ;;  %v186_v44 = vadd.f32 %v347_v10, %v168_v38 }
  0x95   :  { %v175_v45 = vadd.f32 %v347_v10, %v157_v41  ;;  %v179_v46 = vadd.f32 %v347_v10, %v161_v42 }
  0x96   :  { %v198_v47 = vpack.c.bf16 %v182_v43, %v182_v43  ;;  %v202_v48 = vpack.c.bf16 %v186_v44, %v186_v44 }
  0x97   :  { %v191_v49 = vpack.c.bf16 %v175_v45, %v175_v45  ;;  %v195_v50 = vpack.c.bf16 %v179_v46, %v179_v46 }
  0x98   :  { %215 = vst.msk [vmem:[%s448_s3 + $0x24] sm:$0xf] %vm205_vm1, %v198_v47 }
  0x99   :  { %219 = vst.msk [vmem:[%s448_s3 + $0x34] sm:$0xf] %vm205_vm1, %v202_v48  ;;  %v138_v51 = vpop.f32.mrf.mxu2  ;;  %v148_v52 = vpop.f32.mrf.mxu3 }
  0x9a   :  { %208 = vst.msk [vmem:[%s448_s3 + $0x8] sm:$0xf] %vm205_vm1, %v191_v49  ;;  %v165_v53 = vmul.f32 %v342_v9, %v138_v51  ;;  %v169_v54 = vmul.f32 %v342_v9, %v148_v52  ;;  %v120_v55 = vpop.f32.mrf.mxu0  ;;  %v130_v56 = vpop.f32.mrf.mxu1 }
  0x9b   :  { %212 = vst.msk [vmem:[%s448_s3 + $0x18] sm:$0xf] %vm205_vm1, %v195_v50  ;;  %v158_v57 = vmul.f32 %v342_v9, %v120_v55  ;;  %v162_v58 = vmul.f32 %v342_v9, %v130_v56 }
  0x9c   :  { %v183_v59 = vadd.f32 %v347_v10, %v165_v53  ;;  %v187_v60 = vadd.f32 %v347_v10, %v169_v54 }
  0x9d   :  { %v176_v61 = vadd.f32 %v347_v10, %v158_v57  ;;  %v180_v62 = vadd.f32 %v347_v10, %v162_v58 }
  0x9e   :  { %v199_v63 = vpack.c.bf16 %v183_v59, %v183_v59  ;;  %v203_v0 = vpack.c.bf16 %v187_v60, %v187_v60 }
  0x9f   :  { %v192_v1 = vpack.c.bf16 %v176_v61, %v176_v61  ;;  %v196_v2 = vpack.c.bf16 %v180_v62, %v180_v62 }
  0xa0   :  { %216 = vst.msk [vmem:[%s448_s3 + $0x28] sm:$0xf] %vm205_vm1, %v199_v63 }
  0xa1   :  { %220 = vst.msk [vmem:[%s448_s3 + $0x38] sm:$0xf] %vm205_vm1, %v203_v0  ;;  %v140_v3 = vpop.f32.mrf.mxu2  ;;  %v150_v4 = vpop.f32.mrf.mxu3 }
  0xa2   :  { %209 = vst.msk [vmem:[%s448_s3 + $0xc] sm:$0xf] %vm205_vm1, %v192_v1  ;;  %v166_v5 = vmul.f32 %v342_v9, %v140_v3  ;;  %v170_v6 = vmul.f32 %v342_v9, %v150_v4 }
  0xa3   :  { %213 = vst.msk [vmem:[%s448_s3 + $0x1c] sm:$0xf] %vm205_vm1, %v196_v2 }
  0xa4   :  { %v184_v7 = vadd.f32 %v347_v10, %v166_v5  ;;  %v188_v8 = vadd.f32 %v347_v10, %v170_v6 }
  0xa6   :  { %v200_v11 = vpack.c.bf16 %v184_v7, %v184_v7  ;;  %v204_v12 = vpack.c.bf16 %v188_v8, %v188_v8 }
  0xa8   :  { %217 = vst.msk [vmem:[%s448_s3 + $0x2c] sm:$0xf] %vm205_vm1, %v200_v11 }
  0xa9   :  { %221 = vst.msk [vmem:[%s448_s3 + $0x3c] sm:$0xf] %vm205_vm1, %v204_v12 }

// kernel: _lambda_.18
= control target key start
LH: loop header
LB: loop body
LE: loop exit
PB: predicated region body
PF: predicated region fallthrough
CT: control target
= control target key end

     0   :  { %vm314_vm0 = vcmask 261120   ;;  %vm602_vm1 = vcmask 257024   ;;  %s1271_s1 = inlined_call_operand.vmem [shape: bf16[288,32], index: 1, kind: input, shape index: {}]   ;;  %s1272_s0 = inlined_call_operand.vmem [shape: bf16[128,288], index: 0, kind: input, shape index: {}]   ;;  %s1273_s2 = inlined_call_operand.vmem [shape: f32[2,32], index: 2, kind: input, shape index: {}]   ;;  %s1274_s3 = inlined_call_operand.vmem [shape: bf16[128,32], index: 3, kind: input, shape index: {}]   ;;  %s1275_s4 = inlined_call_operand.vmem [shape: bf16[128,32], index: 4, kind: output, shape index: {}]  }
   0x1   :  { %v830_v0 = vld [vmem:[%s1271_s1 + $0x38] sm:$0xff]  ;;  %v840_v2 = vld [vmem:[%s1271_s1 + $0x88] sm:$0xff]  ;;  %v829_v3 = vld [vmem:[%s1271_s1 + $0x30] sm:$0xff] }
   0x2   :  { %v838_v1 = vld [vmem:[%s1271_s1 + $0x78] sm:$0xff]  ;;  %339 = vmatpush.bf16.msra.mxu0 %v830_v0  ;;  %880 = vmatpush.bf16.msra.mxu3 %v830_v0  ;;  %v837_v4 = vld [vmem:[%s1271_s1 + $0x70] sm:$0xff]  ;;  %v839_v5 = vld [vmem:[%s1271_s1 + $0x80] sm:$0xff] }
   0x3   :  { %388 = vmatpush.bf16.msra.mxu1 %v838_v1  ;;  %443 = vmatpush.bf16.msra.mxu2 %v840_v2  ;;  %v633_v6 = vld [vmem:[%s1272_s0 + $0x8] sm:$0xf]  ;;  %v801_v7 = vld [vmem:[%s1272_s0 + $0x10] sm:$0xf0]  ;;  %v827_v11 = vld [vmem:[%s1271_s1 + $0x20] sm:$0xff] }
   0x4   :  { %v634_v8 = vor.u32 %v801_v7, %v633_v6  ;;  %v828_v9 = vld [vmem:[%s1271_s1 + $0x28] sm:$0xff]  ;;  %v835_v12 = vld [vmem:[%s1271_s1 + $0x60] sm:$0xff]  ;;  %v826_v13 = vld [vmem:[%s1271_s1 + $0x18] sm:$0xff] }
   0x5   :  { %v836_v10 = vld [vmem:[%s1271_s1 + $0x68] sm:$0xff]  ;;  %v834_v14 = vld [vmem:[%s1271_s1 + $0x58] sm:$0xff]  ;;  %v825_v15 = vld [vmem:[%s1271_s1 + $0x10] sm:$0xff] }
   0x6   :  { %340 = vmatpush.bf16.msra.mxu0 %v829_v3  ;;  %881 = vmatpush.bf16.msra.mxu3 %v829_v3  ;;  %v833_v16 = vld [vmem:[%s1271_s1 + $0x50] sm:$0xff]  ;;  %v645_v17 = vld [vmem:[%s1272_s0 + $0x20] sm:$0xf]  ;;  %v804_v18 = vld [vmem:[%s1272_s0 + $0x28] sm:$0xf0] }
   0x7   :  { %389 = vmatpush.bf16.msra.mxu1 %v837_v4  ;;  %444 = vmatpush.bf16.msra.mxu2 %v839_v5  ;;  %v646_v19 = vor.u32 %v804_v18, %v645_v17  ;;  %v824_v20 = vld [vmem:[%s1271_s1 + $0x8] sm:$0xff]  ;;  %v823_v22 = vld [vmem:[%s1271_s1] sm:$0xff]  ;;  %v697_v26 = vld [vmem:[%s1272_s0 + $0x90] sm:$0xf] }
   0x8   :  { %v832_v21 = vld [vmem:[%s1271_s1 + $0x48] sm:$0xff]  ;;  %v831_v23 = vld [vmem:[%s1271_s1 + $0x40] sm:$0xff]  ;;  %v818_v27 = vld [vmem:[%s1272_s0 + $0x98] sm:$0xf0] }
   0x9   :  { %v625_v24 = vld [vmem:[%s1272_s0] sm:$0xf]  ;;  %v800_v25 = vld [vmem:[%s1272_s0 + $0x8] sm:$0xf0]  ;;  %v799_v28 = vld [vmem:[%s1272_s0 + $0x4] sm:$0xf]  ;;  %v698_v31 = vor.u32 %v818_v27, %v697_v26 }
   0xa   :  { %791 = vmatmul.msk.bf16.vlgmr.msra.gmra.mxu2 %vm314_vm0, %v634_v8  ;;  %341 = vmatpush.bf16.msra.mxu0 %v828_v9  ;;  %v627_v29 = vld [vmem:[%s1272_s0 + $0xc] sm:$0xf0]  ;;  %v626_v30 = vor.u32 %v800_v25, %v625_v24  ;;  %v657_v33 = vld [vmem:[%s1272_s0 + $0x38] sm:$0xf]  ;;  %v807_v34 = vld [vmem:[%s1272_s0 + $0x40] sm:$0xf0] }
   0xb   :  { %882 = vmatpush.bf16.msra.mxu3 %v828_v9  ;;  %390 = vmatpush.bf16.msra.mxu1 %v836_v10  ;;  %v630_v32 = vor.u32 %v799_v28, %v627_v29  ;;  %v658_v35 = vor.u32 %v807_v34, %v657_v33  ;;  %v637_v36 = vld [vmem:[%s1272_s0 + $0x18] sm:$0xf]  ;;  %v803_v37 = vld [vmem:[%s1272_s0 + $0x20] sm:$0xf0]  ;;  %v709_v38 = vld [vmem:[%s1272_s0 + $0xa8] sm:$0xf] }
   0xc   :  { %v821_v39 = vld [vmem:[%s1272_s0 + $0xb0] sm:$0xf0]  ;;  %v802_v40 = vld [vmem:[%s1272_s0 + $0x1c] sm:$0xf]  ;;  %v639_v41 = vld [vmem:[%s1272_s0 + $0x24] sm:$0xf0]  ;;  %v638_v42 = vor.u32 %v803_v37, %v637_v36 }
   0xd   :  { %v710_v43 = vor.u32 %v821_v39, %v709_v38  ;;  %v642_v44 = vor.u32 %v802_v40, %v639_v41  ;;  %v669_v45 = vld [vmem:[%s1272_s0 + $0x50] sm:$0xf]  ;;  %v810_v46 = vld [vmem:[%s1272_s0 + $0x58] sm:$0xf0]  ;;  %v805_v50 = vld [vmem:[%s1272_s0 + $0x34] sm:$0xf] }
   0xe   :  { %342 = vmatpush.bf16.msra.mxu0 %v827_v11  ;;  %v670_v47 = vor.u32 %v810_v46, %v669_v45  ;;  %v649_v48 = vld [vmem:[%s1272_s0 + $0x30] sm:$0xf]  ;;  %v806_v49 = vld [vmem:[%s1272_s0 + $0x38] sm:$0xf0]  ;;  %v651_v51 = vld [vmem:[%s1272_s0 + $0x3c] sm:$0xf0] }
   0xf   :  { %883 = vmatpush.bf16.msra.mxu3 %v827_v11  ;;  %391 = vmatpush.bf16.msra.mxu1 %v835_v12  ;;  %v817_v52 = vld [vmem:[%s1272_s0 + $0x94] sm:$0xf]  ;;  %v699_v53 = vld [vmem:[%s1272_s0 + $0x9c] sm:$0xf0]  ;;  %v650_v54 = vor.u32 %v806_v49, %v649_v48  ;;  %v654_v55 = vor.u32 %v805_v50, %v651_v51  ;;  %v681_v57 = vld [vmem:[%s1272_s0 + $0x68] sm:$0xf] }
  0x10   :  { %v702_v56 = vor.u32 %v817_v52, %v699_v53  ;;  %v813_v58 = vld [vmem:[%s1272_s0 + $0x70] sm:$0xf0]  ;;  %v661_v60 = vld [vmem:[%s1272_s0 + $0x48] sm:$0xf]  ;;  %v808_v62 = vld [vmem:[%s1272_s0 + $0x4c] sm:$0xf] }
  0x11   :  { %v682_v59 = vor.u32 %v813_v58, %v681_v57  ;;  %v809_v61 = vld [vmem:[%s1272_s0 + $0x50] sm:$0xf0]  ;;  %v663_v63 = vld [vmem:[%s1272_s0 + $0x54] sm:$0xf0]  ;;  %v820_v0 = vld [vmem:[%s1272_s0 + $0xac] sm:$0xf] }
  0x12   :  { %343 = vmatpush.bf16.msra.mxu0 %v826_v13  ;;  %v662_v2 = vor.u32 %v809_v61, %v661_v60  ;;  %v666_v3 = vor.u32 %v808_v62, %v663_v63  ;;  %v693_v5 = vld [vmem:[%s1272_s0 + $0x80] sm:$0xf]  ;;  %v816_v6 = vld [vmem:[%s1272_s0 + $0x88] sm:$0xf0]  ;;  %v675_v11 = vld [vmem:[%s1272_s0 + $0x6c] sm:$0xf0] }
  0x13   :  { %884 = vmatpush.bf16.msra.mxu3 %v826_v13  ;;  %392 = vmatpush.bf16.msra.mxu1 %v834_v14  ;;  %v694_v7 = vor.u32 %v816_v6, %v693_v5  ;;  %v673_v8 = vld [vmem:[%s1272_s0 + $0x60] sm:$0xf]  ;;  %v812_v9 = vld [vmem:[%s1272_s0 + $0x68] sm:$0xf0]  ;;  %v685_v17 = vld [vmem:[%s1272_s0 + $0x78] sm:$0xf] }
  0x14   :  { %v815_v18 = vld [vmem:[%s1272_s0 + $0x80] sm:$0xf0]  ;;  %v822_v24 = vld [vmem:[%s1272_s0 + $0xb8] sm:$0xf0] }
  0x15   :  { %v842_v33 = vld [vmem:[%s1274_s3] sm:$0xff]  }
  0x16   :  { %344 = vmatpush.bf16.msra.mxu0 %v825_v15  ;;  %v843_v37 = vunpack.c.l.bf16 %v842_v33  ;;  %v844_v48 = vunpack.c.h.bf16 %v842_v33 }
  0x17   :  { %885 = vmatpush.bf16.msra.mxu3 %v825_v15  ;;  %393 = vmatpush.bf16.msra.mxu1 %v833_v16  ;;  %v819_v15 = vld [vmem:[%s1272_s0 + $0xa0] sm:$0xf0] }
  0x1a   :  { %792 = vmatmul.msk.bf16.gmra.mxu2 %vm314_vm0, %v646_v19  ;;  %345 = vmatpush.bf16.msra.mxu0 %v824_v20  ;;  %v814_v19 = vld [vmem:[%s1272_s0 + $0x7c] sm:$0xf] }
  0x1b   :  { %886 = vmatpush.bf16.msra.mxu3 %v824_v20  ;;  %394 = vmatpush.bf16.msra.mxu1 %v832_v21  ;;  %v687_v20 = vld [vmem:[%s1272_s0 + $0x84] sm:$0xf0] }
  0x1e   :  { %346 = vmatpush.bf16.msra.mxu0 %v823_v22 }
  0x1f   :  { %887 = vmatpush.bf16.msra.mxu3 %v823_v22  ;;  %395 = vmatpush.bf16.msra.mxu1 %v831_v23  ;;  %v690_v22 = vor.u32 %v814_v19, %v687_v20 }
  0x21   :  { %347 = vmatmul.bf16.vlgmr.msra.gmra.mxu0 %v626_v30 }
  0x22   :  { %377 = vmatmul.bf16.vlgmr.msra.gmra.mxu3 %v698_v31  ;;  %396 = vmatmul.bf16.vlgmr.msra.gmra.mxu1 %v630_v32  ;;  %v1132_v32 = vld [vmem:[%s1273_s2] ss:$0 sm:$0xff] }
  0x23   :  { %888 = vmatpush.bf16.msrb.mxu3 %v838_v1  ;;  %v711_v1 = vld [vmem:[%s1272_s0 + $0xb4] sm:$0xf0] }
  0x27   :  { %889 = vmatpush.bf16.msrb.mxu3 %v837_v4  ;;  %v714_v4 = vor.u32 %v820_v0, %v711_v1 }
  0x2a   :  { %793 = vmatmul.msk.bf16.gmra.mxu2 %vm314_vm0, %v658_v35  ;;  %v1140_v35 = vld [vmem:[%s1273_s2 + $0x1] ss:$0 sm:$0xff] }
  0x2b   :  { %890 = vmatpush.bf16.msrb.mxu3 %v836_v10  ;;  %v811_v10 = vld [vmem:[%s1272_s0 + $0x64] sm:$0xf] }
  0x2c   :  { %v678_v13 = vor.u32 %v811_v10, %v675_v11 }
  0x2f   :  { %891 = vmatpush.bf16.msrb.mxu3 %v835_v12  ;;  %v674_v12 = vor.u32 %v812_v9, %v673_v8 }
  0x31   :  { %352 = vmatmul.bf16.gmra.mxu0 %v638_v42 }
  0x32   :  { %382 = vmatmul.bf16.gmra.mxu3 %v710_v43  ;;  %401 = vmatmul.bf16.gmra.mxu1 %v642_v44 }
  0x33   :  { %892 = vmatpush.bf16.msrb.mxu3 %v834_v14  ;;  %v705_v14 = vld [vmem:[%s1272_s0 + $0x98] sm:$0xf] }
  0x37   :  { %893 = vmatpush.bf16.msrb.mxu3 %v833_v16  ;;  %v706_v16 = vor.u32 %v819_v15, %v705_v14  ;;  %v874_v15 = vld [vmem:[%s1274_s3 + $0x10] sm:$0xff]  }
  0x38   :  { %v851_v20 = vunpack.c.l.bf16 %v874_v15  ;;  %v852_v33 = vunpack.c.h.bf16 %v874_v15 }
  0x3a   :  { %794 = vmatmul.msk.bf16.gmra.mxu2 %vm314_vm0, %v670_v47 }
  0x3b   :  { %894 = vmatpush.bf16.msrb.mxu3 %v832_v21  ;;  %v686_v21 = vor.u32 %v815_v18, %v685_v17 }
  0x3f   :  { %895 = vmatpush.bf16.msrb.mxu3 %v831_v23  ;;  %v717_v23 = vld [vmem:[%s1272_s0 + $0xb0] sm:$0xf] }
  0x40   :  { %v718_v25 = vor.u32 %v822_v24, %v717_v23 }
  0x41   :  { %357 = vmatmul.bf16.gmra.mxu0 %v650_v54 }
  0x42   :  { %406 = vmatmul.bf16.gmra.mxu1 %v654_v55  ;;  %426 = vmatmul.bf16.vlgmr.msrb.gmra.mxu3 %v702_v56  ;;  %v873_v55 = vld [vmem:[%s1274_s3 + $0x8] sm:$0xff]  }
  0x43   :  { %v847_v60 = vunpack.c.l.bf16 %v873_v55  ;;  %v848_v8 = vunpack.c.h.bf16 %v873_v55 }
  0x4a   :  { %795 = vmatmul.msk.bf16.gmra.mxu2 %vm314_vm0, %v682_v59 }
  0x51   :  { %362 = vmatmul.bf16.gmra.mxu0 %v662_v2 }
  0x52   :  { %411 = vmatmul.bf16.gmra.mxu1 %v666_v3  ;;  %431 = vmatmul.bf16.gmra.mxu3 %v714_v4 }
  0x5a   :  { %796 = vmatmul.msk.bf16.gmra.mxu2 %vm314_vm0, %v694_v7 }
  0x61   :  { %367 = vmatmul.bf16.gmra.mxu0 %v674_v12 }
  0x62   :  { %416 = vmatmul.bf16.gmra.mxu1 %v678_v13 }
  0x6a   :  { %797 = vmatmul.msk.bf16.gmra.mxu2 %vm314_vm0, %v706_v16 }
  0x71   :  { %372 = vmatmul.bf16.gmra.mxu0 %v686_v21 }
  0x72   :  { %421 = vmatmul.bf16.gmra.mxu1 %v690_v22 }
  0x7a   :  { %798 = vmatmul.msk.bf16.gmra.mxu2 %vm314_vm0, %v718_v25 }
  0x8d   :  { %v446_v26 = vpop.f32.mrf.mxu2 }
  0x95   :  { %v448_v27 = vpop.f32.mrf.mxu2 }
  0x9d   :  { %v451_v28 = vpop.f32.mrf.mxu2 }
  0x9e   :  { %v348_v29 = vpop.f32.mrf.mxu0 }
  0x9f   :  { %v397_v30 = vpop.f32.mrf.mxu1 }
  0xa0   :  { %v398_v31 = vadd.f32 %v397_v30, %v348_v29 }
  0xa2   :  { %v447_v34 = vadd.f32 %v446_v26, %v398_v31 }
  0xa4   :  { %v488_v36 = vmul.f32 %v1132_v32, %v447_v34 }
  0xa5   :  { %v453_v38 = vpop.f32.mrf.mxu2  ;;  %v1159_v5 = vpop.f32.mrf.mxu3 }
  0xa6   :  { %v506_v39 = vadd.f32 %v1140_v35, %v488_v36  ;;  %v350_v40 = vpop.f32.mrf.mxu0 }
  0xa7   :  { %v399_v41 = vpop.f32.mrf.mxu1 }
  0xa8   :  { %v554_v42 = vadd.f32 %v843_v37, %v506_v39  ;;  %v400_v43 = vadd.f32 %v399_v41, %v350_v40 }
  0xaa   :  { %v570_v44 = vmax.f32 %v554_v42, 0.0  ;;  %v449_v45 = vadd.f32 %v448_v27, %v400_v43  ;;  %v875_v42 = vld [vmem:[%s1274_s3 + $0x18] sm:$0xff]  }
  0xac   :  { %v586_v46 = vpack.c.bf16 %v570_v44, %v570_v44  ;;  %v489_v47 = vmul.f32 %v1132_v32, %v449_v45 }
  0xad   :  { %v456_v49 = vpop.f32.mrf.mxu2  ;;  %v1171_v21 = vpop.f32.mrf.mxu3 }
  0xae   :  { %603 = vst.msk [vmem:[%s1275_s4] sm:$0xf] %vm602_vm1, %v586_v46  ;;  %v507_v50 = vadd.f32 %v1140_v35, %v489_v47  ;;  %v353_v51 = vpop.f32.mrf.mxu0  ;;  %v855_v47 = vunpack.c.l.bf16 %v875_v42 }
  0xaf   :  { %v402_v52 = vpop.f32.mrf.mxu1 }
  0xb0   :  { %v555_v53 = vadd.f32 %v844_v48, %v507_v50  ;;  %v403_v54 = vadd.f32 %v402_v52, %v353_v51 }
  0xb2   :  { %v571_v56 = vmax.f32 %v555_v53, 0.0  ;;  %v452_v57 = vadd.f32 %v451_v28, %v403_v54 }
  0xb4   :  { %v587_v58 = vpack.c.bf16 %v571_v56, %v571_v56  ;;  %v490_v59 = vmul.f32 %v1132_v32, %v452_v57 }
  0xb5   :  { %v458_v61 = vpop.f32.mrf.mxu2 }
  0xb6   :  { %604 = vst.msk [vmem:[%s1275_s4 + $0x4] sm:$0xf] %vm602_vm1, %v587_v58  ;;  %v508_v62 = vadd.f32 %v1140_v35, %v490_v59  ;;  %v355_v63 = vpop.f32.mrf.mxu0  ;;  %v856_v59 = vunpack.c.h.bf16 %v875_v42 }
  0xb7   :  { %v404_v0 = vpop.f32.mrf.mxu1 }
  0xb8   :  { %v556_v1 = vadd.f32 %v847_v60, %v508_v62  ;;  %v405_v2 = vadd.f32 %v404_v0, %v355_v63 }
  0xba   :  { %v572_v3 = vmax.f32 %v556_v1, 0.0  ;;  %v454_v4 = vadd.f32 %v453_v38, %v405_v2  ;;  %v1184_v38 = vpop.f32.mrf.mxu3  ;;  %v876_v2 = vld [vmem:[%s1274_s3 + $0x20] sm:$0xff]  }
  0xbc   :  { %v588_v6 = vpack.c.bf16 %v572_v3, %v572_v3  ;;  %v491_v7 = vmul.f32 %v1132_v32, %v454_v4 }
  0xbd   :  { %v461_v9 = vpop.f32.mrf.mxu2 }
  0xbe   :  { %605 = vst.msk [vmem:[%s1275_s4 + $0x8] sm:$0xf] %vm602_vm1, %v588_v6  ;;  %v509_v10 = vadd.f32 %v1140_v35, %v491_v7  ;;  %v358_v11 = vpop.f32.mrf.mxu0 }
  0xbf   :  { %v407_v12 = vpop.f32.mrf.mxu1 }
  0xc0   :  { %v557_v13 = vadd.f32 %v848_v8, %v509_v10  ;;  %v408_v14 = vadd.f32 %v407_v12, %v358_v11 }
  0xc2   :  { %v573_v16 = vmax.f32 %v557_v13, 0.0  ;;  %v457_v17 = vadd.f32 %v456_v49, %v408_v14  ;;  %v1195_v54 = vpop.f32.mrf.mxu3 }
  0xc4   :  { %v589_v18 = vpack.c.bf16 %v573_v16, %v573_v16  ;;  %v492_v19 = vmul.f32 %v1132_v32, %v457_v17 }
  0xc5   :  { %v463_v22 = vpop.f32.mrf.mxu2 }
  0xc6   :  { %606 = vst.msk [vmem:[%s1275_s4 + $0xc] sm:$0xf] %vm602_vm1, %v589_v18  ;;  %v510_v23 = vadd.f32 %v1140_v35, %v492_v19  ;;  %v360_v24 = vpop.f32.mrf.mxu0 }
  0xc7   :  { %v409_v25 = vpop.f32.mrf.mxu1 }
  0xc8   :  { %v558_v26 = vadd.f32 %v851_v20, %v510_v23  ;;  %v410_v27 = vadd.f32 %v409_v25, %v360_v24  ;;  %v878_v25 = vld [vmem:[%s1274_s3 + $0x30] sm:$0xff]  }
  0xca   :  { %v574_v28 = vmax.f32 %v558_v26, 0.0  ;;  %v459_v29 = vadd.f32 %v458_v61, %v410_v27  ;;  %v427_v6 = vpop.f32.mrf.mxu3 }
  0xcb   :  { %v428_v18 = vadd.f32 %v427_v6, %v1159_v5 }
  0xcc   :  { %v590_v30 = vpack.c.bf16 %v574_v28, %v574_v28  ;;  %v493_v31 = vmul.f32 %v1132_v32, %v459_v29 }
  0xcd   :  { %v466_v34 = vpop.f32.mrf.mxu2 }
  0xce   :  { %607 = vst.msk [vmem:[%s1275_s4 + $0x10] sm:$0xf] %vm602_vm1, %v590_v30  ;;  %v511_v36 = vadd.f32 %v1140_v35, %v493_v31  ;;  %v363_v37 = vpop.f32.mrf.mxu0  ;;  %v867_v31 = vunpack.c.l.bf16 %v878_v25 }
  0xcf   :  { %v412_v39 = vpop.f32.mrf.mxu1 }
  0xd0   :  { %v559_v40 = vadd.f32 %v852_v33, %v511_v36  ;;  %v413_v41 = vadd.f32 %v412_v39, %v363_v37 }
  0xd2   :  { %v575_v43 = vmax.f32 %v559_v40, 0.0  ;;  %v462_v44 = vadd.f32 %v461_v9, %v413_v41  ;;  %v859_v9 = vunpack.c.l.bf16 %v876_v2  ;;  %v429_v23 = vpop.f32.mrf.mxu3 }
  0xd3   :  { %v430_v40 = vadd.f32 %v429_v23, %v1171_v21 }
  0xd4   :  { %v591_v45 = vpack.c.bf16 %v575_v43, %v575_v43  ;;  %v494_v46 = vmul.f32 %v1132_v32, %v462_v44 }
  0xd5   :  { %v468_v48 = vpop.f32.mrf.mxu2 }
  0xd6   :  { %608 = vst.msk [vmem:[%s1275_s4 + $0x14] sm:$0xf] %vm602_vm1, %v591_v45  ;;  %v512_v49 = vadd.f32 %v1140_v35, %v494_v46  ;;  %v365_v50 = vpop.f32.mrf.mxu0 }
  0xd7   :  { %v414_v51 = vpop.f32.mrf.mxu1 }
  0xd8   :  { %v560_v52 = vadd.f32 %v855_v47, %v512_v49  ;;  %v415_v53 = vadd.f32 %v414_v51, %v365_v50  ;;  %v868_v51 = vunpack.c.h.bf16 %v878_v25 }
  0xda   :  { %v576_v55 = vmax.f32 %v560_v52, 0.0  ;;  %v464_v56 = vadd.f32 %v463_v22, %v415_v53  ;;  %v860_v22 = vunpack.c.h.bf16 %v876_v2  ;;  %v432_v50 = vpop.f32.mrf.mxu3  ;;  %v879_v2 = vld [vmem:[%s1274_s3 + $0x38] sm:$0xff]  }
  0xdc   :  { %v592_v57 = vpack.c.bf16 %v576_v55, %v576_v55  ;;  %v495_v58 = vmul.f32 %v1132_v32, %v464_v56 }
  0xdd   :  { %v471_v60 = vpop.f32.mrf.mxu2 }
  0xde   :  { %609 = vst.msk [vmem:[%s1275_s4 + $0x18] sm:$0xf] %vm602_vm1, %v592_v57  ;;  %v513_v61 = vadd.f32 %v1140_v35, %v495_v58  ;;  %v368_v62 = vpop.f32.mrf.mxu0 }
  0xdf   :  { %v417_v63 = vpop.f32.mrf.mxu1 }
  0xe0   :  { %v561_v0 = vadd.f32 %v856_v59, %v513_v61  ;;  %v418_v1 = vadd.f32 %v417_v63, %v368_v62 }
  0xe2   :  { %v577_v3 = vmax.f32 %v561_v0, 0.0  ;;  %v467_v4 = vadd.f32 %v466_v34, %v418_v1  ;;  %v877_v34 = vld [vmem:[%s1274_s3 + $0x28] sm:$0xff]  }
  0xe3   :  { %v863_v44 = vunpack.c.l.bf16 %v877_v34  ;;  %v864_v0 = vunpack.c.h.bf16 %v877_v34 }
  0xe4   :  { %v593_v7 = vpack.c.bf16 %v577_v3, %v577_v3  ;;  %v496_v8 = vmul.f32 %v1132_v32, %v467_v4 }
  0xe5   :  { %v473_v10 = vpop.f32.mrf.mxu2 }
  0xe6   :  { %610 = vst.msk [vmem:[%s1275_s4 + $0x1c] sm:$0xf] %vm602_vm1, %v593_v7  ;;  %v514_v11 = vadd.f32 %v1140_v35, %v496_v8  ;;  %v370_v12 = vpop.f32.mrf.mxu0 }
  0xe7   :  { %v419_v13 = vpop.f32.mrf.mxu1 }
  0xe8   :  { %v562_v14 = vadd.f32 %v859_v9, %v514_v11  ;;  %v420_v15 = vadd.f32 %v419_v13, %v370_v12  ;;  %v871_v9 = vunpack.c.l.bf16 %v879_v2 }
  0xea   :  { %v578_v16 = vmax.f32 %v562_v14, 0.0  ;;  %v469_v17 = vadd.f32 %v468_v48, %v420_v15 }
  0xec   :  { %v594_v19 = vpack.c.bf16 %v578_v16, %v578_v16  ;;  %v497_v20 = vmul.f32 %v1132_v32, %v469_v17 }
  0xed   :  { %v476_v24 = vpop.f32.mrf.mxu2 }
  0xee   :  { %611 = vst.msk [vmem:[%s1275_s4 + $0x20] sm:$0xf] %vm602_vm1, %v594_v19  ;;  %v515_v26 = vadd.f32 %v1140_v35, %v497_v20  ;;  %v477_v27 = vadd.f32 %v476_v24, %v428_v18  ;;  %v373_v28 = vpop.f32.mrf.mxu0 }
  0xef   :  { %v422_v5 = vpop.f32.mrf.mxu1 }
  0xf0   :  { %v563_v29 = vadd.f32 %v860_v22, %v515_v26  ;;  %v500_v30 = vmul.f32 %v1132_v32, %v477_v27  ;;  %v423_v33 = vadd.f32 %v422_v5, %v373_v28  ;;  %v872_v22 = vunpack.c.h.bf16 %v879_v2 }
  0xf2   :  { %v579_v36 = vmax.f32 %v563_v29, 0.0  ;;  %v518_v37 = vadd.f32 %v1140_v35, %v500_v30  ;;  %v472_v39 = vadd.f32 %v471_v60, %v423_v33  ;;  %v433_v60 = vadd.f32 %v432_v50, %v1184_v38 }
  0xf4   :  { %v595_v41 = vpack.c.bf16 %v579_v36, %v579_v36  ;;  %v566_v42 = vadd.f32 %v867_v31, %v518_v37  ;;  %v498_v43 = vmul.f32 %v1132_v32, %v472_v39 }
  0xf5   :  { %v478_v45 = vpop.f32.mrf.mxu2 }
  0xf6   :  { %612 = vst.msk [vmem:[%s1275_s4 + $0x24] sm:$0xf] %vm602_vm1, %v595_v41  ;;  %v582_v46 = vmax.f32 %v566_v42, 0.0  ;;  %v516_v47 = vadd.f32 %v1140_v35, %v498_v43  ;;  %v479_v48 = vadd.f32 %v478_v45, %v430_v40  ;;  %v375_v49 = vpop.f32.mrf.mxu0 }
  0xf7   :  { %v424_v52 = vpop.f32.mrf.mxu1 }
  0xf8   :  { %v598_v21 = vpack.c.bf16 %v582_v46, %v582_v46  ;;  %v564_v53 = vadd.f32 %v863_v44, %v516_v47  ;;  %v501_v55 = vmul.f32 %v1132_v32, %v479_v48  ;;  %v425_v56 = vadd.f32 %v424_v52, %v375_v49 }
  0xfa   :  { %615 = vst.msk [vmem:[%s1275_s4 + $0x30] sm:$0xf] %vm602_vm1, %v598_v21  ;;  %v580_v57 = vmax.f32 %v564_v53, 0.0  ;;  %v519_v58 = vadd.f32 %v1140_v35, %v501_v55  ;;  %v474_v59 = vadd.f32 %v473_v10, %v425_v56  ;;  %v434_v10 = vpop.f32.mrf.mxu3 }
  0xfb   :  { %v435_v13 = vadd.f32 %v434_v10, %v1195_v54 }
  0xfc   :  { %v596_v61 = vpack.c.bf16 %v580_v57, %v580_v57  ;;  %v567_v62 = vadd.f32 %v868_v51, %v519_v58  ;;  %v499_v63 = vmul.f32 %v1132_v32, %v474_v59 }
  0xfd   :  { %v481_v1 = vpop.f32.mrf.mxu2 }
  0xfe   :  { %613 = vst.msk [vmem:[%s1275_s4 + $0x28] sm:$0xf] %vm602_vm1, %v596_v61  ;;  %v583_v3 = vmax.f32 %v567_v62, 0.0  ;;  %v517_v4 = vadd.f32 %v1140_v35, %v499_v63  ;;  %v482_v6 = vadd.f32 %v481_v1, %v433_v60 }
 0x100   :  { %v599_v38 = vpack.c.bf16 %v583_v3, %v583_v3  ;;  %v565_v7 = vadd.f32 %v864_v0, %v517_v4  ;;  %v502_v8 = vmul.f32 %v1132_v32, %v482_v6 }
 0x102   :  { %616 = vst.msk [vmem:[%s1275_s4 + $0x34] sm:$0xf] %vm602_vm1, %v599_v38  ;;  %v581_v11 = vmax.f32 %v565_v7, 0.0  ;;  %v520_v12 = vadd.f32 %v1140_v35, %v502_v8 }
 0x104   :  { %v597_v14 = vpack.c.bf16 %v581_v11, %v581_v11  ;;  %v568_v15 = vadd.f32 %v871_v9, %v520_v12 }
 0x105   :  { %v483_v16 = vpop.f32.mrf.mxu2 }
 0x106   :  { %614 = vst.msk [vmem:[%s1275_s4 + $0x2c] sm:$0xf] %vm602_vm1, %v597_v14  ;;  %v584_v17 = vmax.f32 %v568_v15, 0.0  ;;  %v484_v18 = vadd.f32 %v483_v16, %v435_v13 }
 0x108   :  { %v600_v19 = vpack.c.bf16 %v584_v17, %v584_v17  ;;  %v503_v20 = vmul.f32 %v1132_v32, %v484_v18 }
 0x10a   :  { %617 = vst.msk [vmem:[%s1275_s4 + $0x38] sm:$0xf] %vm602_vm1, %v600_v19  ;;  %v521_v54 = vadd.f32 %v1140_v35, %v503_v20 }
 0x10c   :  { %v569_v23 = vadd.f32 %v872_v22, %v521_v54 }
 0x10e   :  { %v585_v24 = vmax.f32 %v569_v23, 0.0 }
 0x110   :  { %v601_v25 = vpack.c.bf16 %v585_v24, %v585_v24 }
 0x112   :  { %618 = vst.msk [vmem:[%s1275_s4 + $0x3c] sm:$0xf] %vm602_vm1, %v601_v25 }

// kernel: _lambda_.19
= control target key start
LH: loop header
LB: loop body
LE: loop exit
PB: predicated region body
PF: predicated region fallthrough
CT: control target
= control target key end

     0   :  { %vm197_vm0 = vcmask 261120   ;;  %vm281_vm1 = vcmask 519168   ;;  %s556_s1 = inlined_call_operand.vmem [shape: bf16[288,64], index: 1, kind: input, shape index: {}]   ;;  %s557_s0 = inlined_call_operand.vmem [shape: bf16[32,288], index: 0, kind: input, shape index: {}]   ;;  %s558_s2 = inlined_call_operand.vmem [shape: f32[2,64], index: 2, kind: input, shape index: {}]   ;;  %s559_s3 = inlined_call_operand.vmem [shape: bf16[32,64], index: 3, kind: output, shape index: {}]  }
   0x1   :  { %v401_v0 = vld [vmem:[%s556_s1 + $0x38] sm:$0xff]  ;;  %v400_v2 = vld [vmem:[%s556_s1 + $0x30] sm:$0xff]  ;;  %v411_v4 = vld [vmem:[%s556_s1 + $0x88] sm:$0xff] }
   0x2   :  { %v409_v1 = vld [vmem:[%s556_s1 + $0x78] sm:$0xff]  ;;  %204 = vmatpush.bf16.msra.mxu0 %v401_v0  ;;  %v408_v3 = vld [vmem:[%s556_s1 + $0x70] sm:$0xff]  ;;  %412 = vmatpush.bf16.msra.mxu3 %v401_v0  ;;  %v410_v5 = vld [vmem:[%s556_s1 + $0x80] sm:$0xff] }
   0x3   :  { %223 = vmatpush.bf16.msra.mxu1 %v409_v1  ;;  %248 = vmatpush.bf16.msra.mxu2 %v411_v4  ;;  %v300_v6 = vld [vmem:[%s557_s0 + $0x8] sm:$0xf]  ;;  %v390_v7 = vld [vmem:[%s557_s0 + $0x10] sm:$0xf0]  ;;  %v398_v11 = vld [vmem:[%s556_s1 + $0x20] sm:$0xff] }
   0x4   :  { %v399_v8 = vld [vmem:[%s556_s1 + $0x28] sm:$0xff]  ;;  %v301_v10 = vor.u32 %v390_v7, %v300_v6  ;;  %v406_v12 = vld [vmem:[%s556_s1 + $0x60] sm:$0xff]  ;;  %v397_v13 = vld [vmem:[%s556_s1 + $0x18] sm:$0xff] }
   0x5   :  { %v407_v9 = vld [vmem:[%s556_s1 + $0x68] sm:$0xff]  ;;  %v405_v14 = vld [vmem:[%s556_s1 + $0x58] sm:$0xff]  ;;  %v396_v15 = vld [vmem:[%s556_s1 + $0x10] sm:$0xff] }
   0x6   :  { %205 = vmatpush.bf16.msra.mxu0 %v400_v2  ;;  %413 = vmatpush.bf16.msra.mxu3 %v400_v2  ;;  %v404_v16 = vld [vmem:[%s556_s1 + $0x50] sm:$0xff]  ;;  %v312_v17 = vld [vmem:[%s557_s0 + $0x20] sm:$0xf]  ;;  %v393_v18 = vld [vmem:[%s557_s0 + $0x28] sm:$0xf0] }
   0x7   :  { %224 = vmatpush.bf16.msra.mxu1 %v408_v3  ;;  %249 = vmatpush.bf16.msra.mxu2 %v410_v5  ;;  %v395_v19 = vld [vmem:[%s556_s1 + $0x8] sm:$0xff]  ;;  %v313_v21 = vor.u32 %v393_v18, %v312_v17  ;;  %v394_v22 = vld [vmem:[%s556_s1] sm:$0xff]  ;;  %v294_v27 = vld [vmem:[%s557_s0 + $0xc] sm:$0xf0] }
   0x8   :  { %v403_v20 = vld [vmem:[%s556_s1 + $0x48] sm:$0xff]  ;;  %v402_v23 = vld [vmem:[%s556_s1 + $0x40] sm:$0xff]  ;;  %v304_v28 = vld [vmem:[%s557_s0 + $0x18] sm:$0xf] }
   0x9   :  { %v292_v24 = vld [vmem:[%s557_s0] sm:$0xf]  ;;  %v389_v25 = vld [vmem:[%s557_s0 + $0x8] sm:$0xf0]  ;;  %v388_v26 = vld [vmem:[%s557_s0 + $0x4] sm:$0xf] }
   0xa   :  { %206 = vmatpush.bf16.msra.mxu0 %v399_v8  ;;  %414 = vmatpush.bf16.msra.mxu3 %v399_v8  ;;  %v392_v29 = vld [vmem:[%s557_s0 + $0x20] sm:$0xf0]  ;;  %v293_v30 = vor.u32 %v389_v25, %v292_v24  ;;  %v297_v31 = vor.u32 %v388_v26, %v294_v27  ;;  %v391_v33 = vld [vmem:[%s557_s0 + $0x1c] sm:$0xf]  ;;  %v306_v34 = vld [vmem:[%s557_s0 + $0x24] sm:$0xf0] }
   0xb   :  { %225 = vmatpush.bf16.msra.mxu1 %v407_v9  ;;  %386 = vmatmul.msk.bf16.vlgmr.msra.gmra.mxu2 %vm197_vm0, %v301_v10  ;;  %v305_v32 = vor.u32 %v392_v29, %v304_v28  ;;  %v309_v35 = vor.u32 %v391_v33, %v306_v34  ;;  %v420_v40 = vld [vmem:[%s558_s2] ss:$0 sm:$0xff]  ;;  %v421_v42 = vld [vmem:[%s558_s2 + $0x1] ss:$0 sm:$0xff] }
   0xe   :  { %207 = vmatpush.bf16.msra.mxu0 %v398_v11  ;;  %415 = vmatpush.bf16.msra.mxu3 %v398_v11 }
   0xf   :  { %226 = vmatpush.bf16.msra.mxu1 %v406_v12 }
  0x12   :  { %208 = vmatpush.bf16.msra.mxu0 %v397_v13  ;;  %416 = vmatpush.bf16.msra.mxu3 %v397_v13 }
  0x13   :  { %227 = vmatpush.bf16.msra.mxu1 %v405_v14 }
  0x16   :  { %209 = vmatpush.bf16.msra.mxu0 %v396_v15  ;;  %417 = vmatpush.bf16.msra.mxu3 %v396_v15 }
  0x17   :  { %228 = vmatpush.bf16.msra.mxu1 %v404_v16 }
  0x1a   :  { %210 = vmatpush.bf16.msra.mxu0 %v395_v19  ;;  %418 = vmatpush.bf16.msra.mxu3 %v395_v19 }
  0x1b   :  { %229 = vmatpush.bf16.msra.mxu1 %v403_v20  ;;  %387 = vmatmul.msk.bf16.gmra.mxu2 %vm197_vm0, %v313_v21 }
  0x1e   :  { %211 = vmatpush.bf16.msra.mxu0 %v394_v22  ;;  %419 = vmatpush.bf16.msra.mxu3 %v394_v22 }
  0x1f   :  { %230 = vmatpush.bf16.msra.mxu1 %v402_v23 }
  0x21   :  { %212 = vmatmul.bf16.vlgmr.msra.gmra.mxu0 %v293_v30  ;;  %217 = vmatmul.bf16.vlgmr.msra.gmra.mxu3 %v305_v32 }
  0x22   :  { %231 = vmatmul.bf16.vlgmr.msra.gmra.mxu1 %v297_v31 }
  0x32   :  { %236 = vmatmul.bf16.gmra.mxu1 %v309_v35 }
  0x8e   :  { %v251_v36 = vpop.f32.mrf.mxu2 }
  0x96   :  { %v253_v44 = vpop.f32.mrf.mxu2 }
  0x9e   :  { %v213_v37 = vpop.f32.mrf.mxu0  ;;  %v256_v55 = vpop.f32.mrf.mxu2 }
  0x9f   :  { %v232_v38 = vpop.f32.mrf.mxu1 }
  0xa0   :  { %v233_v39 = vadd.f32 %v232_v38, %v213_v37 }
  0xa2   :  { %v252_v41 = vadd.f32 %v251_v36, %v233_v39 }
  0xa4   :  { %v263_v43 = vmul.f32 %v420_v40, %v252_v41  ;;  %v218_v53 = vpop.f32.mrf.mxu3 }
  0xa6   :  { %v269_v45 = vadd.f32 %v421_v42, %v263_v43  ;;  %v215_v46 = vpop.f32.mrf.mxu0  ;;  %v258_v3 = vpop.f32.mrf.mxu2 }
  0xa7   :  { %v234_v47 = vpop.f32.mrf.mxu1 }
  0xa8   :  { %v273_v48 = vmax.f32 %v269_v45, 0.0  ;;  %v235_v49 = vadd.f32 %v234_v47, %v215_v46 }
  0xaa   :  { %v277_v50 = vpack.c.bf16 %v273_v48, %v273_v48  ;;  %v254_v51 = vadd.f32 %v253_v44, %v235_v49 }
  0xac   :  { %282 = vst.msk [vmem:[%s559_s3] sm:$0xf] %vm281_vm1, %v277_v50  ;;  %v264_v52 = vmul.f32 %v420_v40, %v254_v51  ;;  %v220_v63 = vpop.f32.mrf.mxu3 }
  0xae   :  { %v270_v54 = vadd.f32 %v421_v42, %v264_v52 }
  0xaf   :  { %v237_v56 = vpop.f32.mrf.mxu1 }
  0xb0   :  { %v274_v57 = vmax.f32 %v270_v54, 0.0  ;;  %v238_v58 = vadd.f32 %v237_v56, %v218_v53 }
  0xb2   :  { %v278_v59 = vpack.c.bf16 %v274_v57, %v274_v57  ;;  %v257_v60 = vadd.f32 %v256_v55, %v238_v58 }
  0xb4   :  { %283 = vst.msk [vmem:[%s559_s3 + $0x4] sm:$0xf] %vm281_vm1, %v278_v59  ;;  %v265_v61 = vmul.f32 %v420_v40, %v257_v60 }
  0xb6   :  { %v271_v62 = vadd.f32 %v421_v42, %v265_v61 }
  0xb7   :  { %v239_v0 = vpop.f32.mrf.mxu1 }
  0xb8   :  { %v275_v1 = vmax.f32 %v271_v62, 0.0  ;;  %v240_v2 = vadd.f32 %v239_v0, %v220_v63 }
  0xba   :  { %v279_v4 = vpack.c.bf16 %v275_v1, %v275_v1  ;;  %v259_v5 = vadd.f32 %v258_v3, %v240_v2 }
  0xbc   :  { %284 = vst.msk [vmem:[%s559_s3 + $0x8] sm:$0xf] %vm281_vm1, %v279_v4  ;;  %v266_v6 = vmul.f32 %v420_v40, %v259_v5 }
  0xbe   :  { %v272_v7 = vadd.f32 %v421_v42, %v266_v6 }
  0xc0   :  { %v276_v8 = vmax.f32 %v272_v7, 0.0 }
  0xc2   :  { %v280_v9 = vpack.c.bf16 %v276_v8, %v276_v8 }
  0xc4   :  { %285 = vst.msk [vmem:[%s559_s3 + $0xc] sm:$0xf] %vm281_vm1, %v280_v9 }

// kernel: _lambda_.20
= control target key start
LH: loop header
LB: loop body
LE: loop exit
PB: predicated region body
PF: predicated region fallthrough
CT: control target
= control target key end

     0   :  { %vm45_vm0 = vcmask 261120   ;;  %vm87_vm1 = vcmask 519168   ;;  %s172_s1 = inlined_call_operand.vmem [shape: bf16[32,64], index: 1, kind: input, shape index: {}]   ;;  %s173_s2 = inlined_call_operand.vmem [shape: f32[2,64], index: 2, kind: input, shape index: {}]   ;;  %s174_s0 = inlined_call_operand.vmem [shape: bf16[32,32], index: 0, kind: input, shape index: {}]   ;;  %s175_s3 = inlined_call_operand.vmem [shape: bf16[32,64], index: 3, kind: output, shape index: {}]  }
   0x1   :  { %v117_v0 = vld [vmem:[%s172_s1 + $0x8] sm:$0xff]  ;;  %v116_v1 = vld [vmem:[%s172_s1] sm:$0xff] }
   0x2   :  { %58 = vmatpush.bf16.msra.mxu0 %v117_v0  ;;  %118 = vmatpush.bf16.msra.mxu1 %v117_v0  ;;  %v114_v2 = vld [vmem:[%s174_s0] sm:$0xff]  ;;  %v115_v3 = vld [vmem:[%s174_s0 + $0x8] sm:$0xff] }
   0x3   :  { %v120_v4 = vld [vmem:[%s173_s2] ss:$0 sm:$0xff]  ;;  %v121_v5 = vld [vmem:[%s173_s2 + $0x1] ss:$0 sm:$0xff] }
   0x6   :  { %59 = vmatpush.bf16.msra.mxu0 %v116_v1  ;;  %119 = vmatpush.bf16.msra.mxu1 %v116_v1 }
   0x9   :  { %112 = vmatmul.msk.bf16.vlgmr.msra.gmra.mxu0 %vm45_vm0, %v114_v2  ;;  %113 = vmatmul.msk.bf16.vlgmr.msra.gmra.mxu1 %vm45_vm0, %v115_v3 }
  0x86   :  { %v61_v6 = vpop.f32.mrf.mxu0  ;;  %v66_v7 = vpop.f32.mrf.mxu1 }
  0x87   :  { %v73_v8 = vmul.f32 %v120_v4, %v61_v6  ;;  %v75_v9 = vmul.f32 %v120_v4, %v66_v7 }
  0x89   :  { %v79_v10 = vadd.f32 %v121_v5, %v73_v8  ;;  %v81_v11 = vadd.f32 %v121_v5, %v75_v9 }
  0x8b   :  { %v83_v12 = vpack.c.bf16 %v79_v10, %v79_v10  ;;  %v85_v13 = vpack.c.bf16 %v81_v11, %v81_v11 }
  0x8d   :  { %88 = vst.msk [vmem:[%s175_s3] sm:$0xf] %vm87_vm1, %v83_v12 }
  0x8e   :  { %90 = vst.msk [vmem:[%s175_s3 + $0x8] sm:$0xf] %vm87_vm1, %v85_v13  ;;  %v63_v14 = vpop.f32.mrf.mxu0  ;;  %v68_v15 = vpop.f32.mrf.mxu1 }
  0x8f   :  { %v74_v16 = vmul.f32 %v120_v4, %v63_v14  ;;  %v76_v17 = vmul.f32 %v120_v4, %v68_v15 }
  0x91   :  { %v80_v18 = vadd.f32 %v121_v5, %v74_v16  ;;  %v82_v19 = vadd.f32 %v121_v5, %v76_v17 }
  0x93   :  { %v84_v20 = vpack.c.bf16 %v80_v18, %v80_v18  ;;  %v86_v21 = vpack.c.bf16 %v82_v19, %v82_v19 }
  0x95   :  { %89 = vst.msk [vmem:[%s175_s3 + $0x4] sm:$0xf] %vm87_vm1, %v84_v20 }
  0x96   :  { %91 = vst.msk [vmem:[%s175_s3 + $0xc] sm:$0xf] %vm87_vm1, %v86_v21 }

// kernel: _lambda_.22
= control target key start
LH: loop header
LB: loop body
LE: loop exit
PB: predicated region body
PF: predicated region fallthrough
CT: control target
= control target key end

     0   :  { %vm323_vm0 = vcmask 523264   ;;  %s734_s1 = inlined_call_operand.vmem [shape: bf16[576,128], index: 1, kind: input, shape index: {}]   ;;  %s735_s0 = inlined_call_operand.vmem [shape: bf16[8,576], index: 0, kind: input, shape index: {}]   ;;  %s736_s2 = inlined_call_operand.vmem [shape: f32[2,128], index: 2, kind: input, shape index: {}]   ;;  %s737_s3 = inlined_call_operand.vmem [shape: bf16[8,128], index: 3, kind: output, shape index: {}]  }
   0x1   :  { %v557_v0 = vld [vmem:[%s734_s1 + $0x38] sm:$0xff]  ;;  %v556_v4 = vld [vmem:[%s734_s1 + $0x30] sm:$0xff]  ;;  %v555_v8 = vld [vmem:[%s734_s1 + $0x28] sm:$0xff] }
   0x2   :  { %v565_v1 = vld [vmem:[%s734_s1 + $0x78] sm:$0xff]  ;;  %327 = vmatpush.bf16.msra.mxu0 %v557_v0  ;;  %v564_v5 = vld [vmem:[%s734_s1 + $0x70] sm:$0xff]  ;;  %v563_v9 = vld [vmem:[%s734_s1 + $0x68] sm:$0xff] }
   0x3   :  { %v573_v2 = vld [vmem:[%s734_s1 + $0xb8] sm:$0xff]  ;;  %340 = vmatpush.bf16.msra.mxu1 %v565_v1  ;;  %v572_v6 = vld [vmem:[%s734_s1 + $0xb0] sm:$0xff]  ;;  %v571_v10 = vld [vmem:[%s734_s1 + $0xa8] sm:$0xff] }
   0x4   :  { %v581_v3 = vld [vmem:[%s734_s1 + $0xf8] sm:$0xff]  ;;  %353 = vmatpush.bf16.msra.mxu2 %v573_v2  ;;  %v580_v7 = vld [vmem:[%s734_s1 + $0xf0] sm:$0xff]  ;;  %v579_v11 = vld [vmem:[%s734_s1 + $0xe8] sm:$0xff] }
   0x5   :  { %366 = vmatpush.bf16.msra.mxu3 %v581_v3  ;;  %v554_v12 = vld [vmem:[%s734_s1 + $0x20] sm:$0xff]  ;;  %v553_v16 = vld [vmem:[%s734_s1 + $0x18] sm:$0xff]  ;;  %v552_v20 = vld [vmem:[%s734_s1 + $0x10] sm:$0xff] }
   0x6   :  { %328 = vmatpush.bf16.msra.mxu0 %v556_v4  ;;  %v562_v13 = vld [vmem:[%s734_s1 + $0x60] sm:$0xff]  ;;  %v561_v17 = vld [vmem:[%s734_s1 + $0x58] sm:$0xff]  ;;  %v560_v21 = vld [vmem:[%s734_s1 + $0x50] sm:$0xff] }
   0x7   :  { %341 = vmatpush.bf16.msra.mxu1 %v564_v5  ;;  %v570_v14 = vld [vmem:[%s734_s1 + $0xa0] sm:$0xff]  ;;  %v569_v18 = vld [vmem:[%s734_s1 + $0x98] sm:$0xff]  ;;  %v568_v22 = vld [vmem:[%s734_s1 + $0x90] sm:$0xff] }
   0x8   :  { %354 = vmatpush.bf16.msra.mxu2 %v572_v6  ;;  %v578_v15 = vld [vmem:[%s734_s1 + $0xe0] sm:$0xff]  ;;  %v577_v19 = vld [vmem:[%s734_s1 + $0xd8] sm:$0xff]  ;;  %v576_v23 = vld [vmem:[%s734_s1 + $0xd0] sm:$0xff] }
   0x9   :  { %367 = vmatpush.bf16.msra.mxu3 %v580_v7  ;;  %v551_v24 = vld [vmem:[%s734_s1 + $0x8] sm:$0xff]  ;;  %v15_v26 = vld [vmem:[%s735_s0] sm:$0xff]  ;;  %v585_v38 = vld [vmem:[%s734_s1 + $0x118] sm:$0xff] }
   0xa   :  { %329 = vmatpush.bf16.msra.mxu0 %v555_v8  ;;  %v559_v25 = vld [vmem:[%s734_s1 + $0x48] sm:$0xff]  ;;  %v93_v30 = vunpack.c.l.b16 %v15_v26  ;;  %v94_v31 = vunpack.c.h.b16 %v15_v26  ;;  %v550_v32 = vld [vmem:[%s734_s1] sm:$0xff]  ;;  %v584_v43 = vld [vmem:[%s734_s1 + $0x110] sm:$0xff] }
   0xb   :  { %342 = vmatpush.bf16.msra.mxu1 %v563_v9  ;;  %v567_v27 = vld [vmem:[%s734_s1 + $0x88] sm:$0xff]  ;;  %v558_v33 = vld [vmem:[%s734_s1 + $0x40] sm:$0xff]  ;;  %v17_v45 = vld [vmem:[%s735_s0 + $0x10] sm:$0xf] }
   0xc   :  { %355 = vmatpush.bf16.msra.mxu2 %v571_v10  ;;  %v575_v28 = vld [vmem:[%s734_s1 + $0xc8] sm:$0xff]  ;;  %v566_v36 = vld [vmem:[%s734_s1 + $0x80] sm:$0xff]  ;;  %v98_v39 = vpack.c.b16 %v93_v30, %v93_v30  ;;  %v99_v40 = vpack.c.b16 %v94_v31, %v94_v31  ;;  %v97_v47 = vunpack.c.l.b16 %v17_v45 }
   0xd   :  { %368 = vmatpush.bf16.msra.mxu3 %v579_v11  ;;  %v16_v29 = vld [vmem:[%s735_s0 + $0x8] sm:$0xff]  ;;  %v574_v37 = vld [vmem:[%s734_s1 + $0xc0] sm:$0xff] }
   0xe   :  { %330 = vmatpush.bf16.msra.mxu0 %v554_v12  ;;  %v95_v34 = vunpack.c.l.b16 %v16_v29  ;;  %v96_v35 = vunpack.c.h.b16 %v16_v29  ;;  %v583_v44 = vld [vmem:[%s734_s1 + $0x108] sm:$0xff]  ;;  %v582_v46 = vld [vmem:[%s734_s1 + $0x100] sm:$0xff]  ;;  %v102_v48 = vpack.c.b16 %v97_v47, %v97_v47 }
   0xf   :  { %343 = vmatpush.bf16.msra.mxu1 %v562_v13  ;;  %v586_v60 = vld [vmem:[%s736_s2] ss:$0 sm:$0xff]  ;;  %v587_v63 = vld [vmem:[%s736_s2 + $0x1] ss:$0 sm:$0xff] }
  0x10   :  { %356 = vmatpush.bf16.msra.mxu2 %v570_v14  ;;  %v100_v41 = vpack.c.b16 %v95_v34, %v95_v34  ;;  %v101_v42 = vpack.c.b16 %v96_v35, %v96_v35 }
  0x11   :  { %369 = vmatpush.bf16.msra.mxu3 %v578_v15 }
  0x12   :  { %331 = vmatpush.bf16.msra.mxu0 %v553_v16 }
  0x13   :  { %344 = vmatpush.bf16.msra.mxu1 %v561_v17 }
  0x14   :  { %357 = vmatpush.bf16.msra.mxu2 %v569_v18 }
  0x15   :  { %370 = vmatpush.bf16.msra.mxu3 %v577_v19 }
  0x16   :  { %332 = vmatpush.bf16.msra.mxu0 %v552_v20 }
  0x17   :  { %345 = vmatpush.bf16.msra.mxu1 %v560_v21 }
  0x18   :  { %358 = vmatpush.bf16.msra.mxu2 %v568_v22 }
  0x19   :  { %371 = vmatpush.bf16.msra.mxu3 %v576_v23 }
  0x1a   :  { %333 = vmatpush.bf16.msra.mxu0 %v551_v24 }
  0x1b   :  { %346 = vmatpush.bf16.msra.mxu1 %v559_v25 }
  0x1c   :  { %359 = vmatpush.bf16.msra.mxu2 %v567_v27 }
  0x1d   :  { %372 = vmatpush.bf16.msra.mxu3 %v575_v28 }
  0x1e   :  { %334 = vmatpush.bf16.msra.mxu0 %v550_v32 }
  0x1f   :  { %347 = vmatpush.bf16.msra.mxu1 %v558_v33 }
  0x20   :  { %360 = vmatpush.bf16.msra.mxu2 %v566_v36 }
  0x21   :  { %373 = vmatpush.bf16.msra.mxu3 %v574_v37  ;;  %335 = vmatmul.bf16.vlgmr.msra.gmra.mxu0 %v98_v39 }
  0x22   :  { %383 = vmatpush.bf16.msrb.mxu0 %v585_v38  ;;  %348 = vmatmul.bf16.vlgmr.msra.gmra.mxu1 %v99_v40 }
  0x23   :  { %361 = vmatmul.bf16.vlgmr.msra.gmra.mxu2 %v100_v41 }
  0x24   :  { %374 = vmatmul.bf16.vlgmr.msra.gmra.mxu3 %v101_v42 }
  0x26   :  { %384 = vmatpush.bf16.msrb.mxu0 %v584_v43 }
  0x2a   :  { %385 = vmatpush.bf16.msrb.mxu0 %v583_v44 }
  0x2e   :  { %386 = vmatpush.bf16.msrb.mxu0 %v582_v46 }
  0x31   :  { %549 = vmatmul.msk.bf16.vlgmr.msrb.gmra.mxu0 %vm323_vm0, %v102_v48 }
  0x9e   :  { %v336_v49 = vpop.f32.mrf.mxu0 }
  0x9f   :  { %v349_v50 = vpop.f32.mrf.mxu1 }
  0xa0   :  { %v350_v55 = vadd.f32 %v349_v50, %v336_v49 }
  0xa6   :  { %v362_v51 = vpop.f32.mrf.mxu2  ;;  %v338_v53 = vpop.f32.mrf.mxu0 }
  0xa7   :  { %v375_v52 = vpop.f32.mrf.mxu3  ;;  %v351_v54 = vpop.f32.mrf.mxu1  ;;  %v363_v56 = vadd.f32 %v362_v51, %v350_v55 }
  0xa9   :  { %v376_v57 = vadd.f32 %v375_v52, %v363_v56 }
  0xae   :  { %v364_v58 = vpop.f32.mrf.mxu2  ;;  %v388_v61 = vpop.f32.mrf.mxu0 }
  0xaf   :  { %v377_v59 = vpop.f32.mrf.mxu3  ;;  %v389_v62 = vadd.f32 %v388_v61, %v376_v57 }
  0xb1   :  { %v394_v0 = vmul.f32 %v586_v60, %v389_v62 }
  0xb3   :  { %v397_v1 = vadd.f32 %v587_v63, %v394_v0 }
  0xb5   :  { %v398_v2 = vmax.f32 %v397_v1, 0.0 }
  0xb6   :  { %v390_v3 = vpop.f32.mrf.mxu0 }
  0xb7   :  { %v399_v4 = vpack.c.bf16 %v398_v2, %v398_v2 }
  0xb9   :  { %400 = vst [vmem:[%s737_s3] sm:$0xf] %v399_v4 }

// kernel: _lambda_.21
= control target key start
LH: loop header
LB: loop body
LE: loop exit
PB: predicated region body
PF: predicated region fallthrough
CT: control target
= control target key end

     0   :  { %vm368_vm0 = vcmask 523264   ;;  %vm502_vm1 = vcmask 519168   ;;  %s979_s1 = inlined_call_operand.vmem [shape: bf16[576,64], index: 1, kind: input, shape index: {}]   ;;  %s980_s0 = inlined_call_operand.vmem [shape: bf16[32,576], index: 0, kind: input, shape index: {}]   ;;  %s981_s2 = inlined_call_operand.vmem [shape: f32[2,64], index: 2, kind: input, shape index: {}]   ;;  %s982_s3 = inlined_call_operand.vmem [shape: bf16[32,64], index: 3, kind: input, shape index: {}]   ;;  %s983_s4 = inlined_call_operand.vmem [shape: bf16[32,64], index: 4, kind: output, shape index: {}]  }
   0x1   :  { %v714_v0 = vld [vmem:[%s979_s1 + $0x38] sm:$0xff]  ;;  %v713_v4 = vld [vmem:[%s979_s1 + $0x30] sm:$0xff]  ;;  %v712_v8 = vld [vmem:[%s979_s1 + $0x28] sm:$0xff] }
   0x2   :  { %v722_v1 = vld [vmem:[%s979_s1 + $0x78] sm:$0xff]  ;;  %375 = vmatpush.bf16.msra.mxu0 %v714_v0  ;;  %v721_v5 = vld [vmem:[%s979_s1 + $0x70] sm:$0xff]  ;;  %v720_v9 = vld [vmem:[%s979_s1 + $0x68] sm:$0xff] }
   0x3   :  { %v730_v2 = vld [vmem:[%s979_s1 + $0xb8] sm:$0xff]  ;;  %394 = vmatpush.bf16.msra.mxu1 %v722_v1  ;;  %v729_v6 = vld [vmem:[%s979_s1 + $0xb0] sm:$0xff]  ;;  %v728_v10 = vld [vmem:[%s979_s1 + $0xa8] sm:$0xff] }
   0x4   :  { %v738_v3 = vld [vmem:[%s979_s1 + $0xf8] sm:$0xff]  ;;  %413 = vmatpush.bf16.msra.mxu2 %v730_v2  ;;  %v737_v7 = vld [vmem:[%s979_s1 + $0xf0] sm:$0xff]  ;;  %v736_v11 = vld [vmem:[%s979_s1 + $0xe8] sm:$0xff] }
   0x5   :  { %432 = vmatpush.bf16.msra.mxu3 %v738_v3  ;;  %v711_v12 = vld [vmem:[%s979_s1 + $0x20] sm:$0xff]  ;;  %v710_v16 = vld [vmem:[%s979_s1 + $0x18] sm:$0xff]  ;;  %v709_v20 = vld [vmem:[%s979_s1 + $0x10] sm:$0xff] }
   0x6   :  { %376 = vmatpush.bf16.msra.mxu0 %v713_v4  ;;  %v719_v13 = vld [vmem:[%s979_s1 + $0x60] sm:$0xff]  ;;  %v718_v17 = vld [vmem:[%s979_s1 + $0x58] sm:$0xff]  ;;  %v717_v21 = vld [vmem:[%s979_s1 + $0x50] sm:$0xff] }
   0x7   :  { %395 = vmatpush.bf16.msra.mxu1 %v721_v5  ;;  %v727_v14 = vld [vmem:[%s979_s1 + $0xa0] sm:$0xff]  ;;  %v726_v18 = vld [vmem:[%s979_s1 + $0x98] sm:$0xff]  ;;  %v725_v22 = vld [vmem:[%s979_s1 + $0x90] sm:$0xff] }
   0x8   :  { %414 = vmatpush.bf16.msra.mxu2 %v729_v6  ;;  %v735_v15 = vld [vmem:[%s979_s1 + $0xe0] sm:$0xff]  ;;  %v734_v19 = vld [vmem:[%s979_s1 + $0xd8] sm:$0xff]  ;;  %v733_v23 = vld [vmem:[%s979_s1 + $0xd0] sm:$0xff] }
   0x9   :  { %433 = vmatpush.bf16.msra.mxu3 %v737_v7  ;;  %v708_v24 = vld [vmem:[%s979_s1 + $0x8] sm:$0xff]  ;;  %v707_v28 = vld [vmem:[%s979_s1] sm:$0xff]  ;;  %v699_v33 = vld [vmem:[%s980_s0 + $0x10] sm:$0xf0] }
   0xa   :  { %377 = vmatpush.bf16.msra.mxu0 %v712_v8  ;;  %v716_v25 = vld [vmem:[%s979_s1 + $0x48] sm:$0xff]  ;;  %v715_v29 = vld [vmem:[%s979_s1 + $0x40] sm:$0xff]  ;;  %v515_v35 = vld [vmem:[%s980_s0 + $0x14] sm:$0xf0] }
   0xb   :  { %396 = vmatpush.bf16.msra.mxu1 %v720_v9  ;;  %v724_v26 = vld [vmem:[%s979_s1 + $0x88] sm:$0xff]  ;;  %v723_v30 = vld [vmem:[%s979_s1 + $0x80] sm:$0xff]  ;;  %v700_v37 = vld [vmem:[%s980_s0 + $0x18] sm:$0xf0] }
   0xc   :  { %415 = vmatpush.bf16.msra.mxu2 %v728_v10  ;;  %v732_v27 = vld [vmem:[%s979_s1 + $0xc8] sm:$0xff]  ;;  %v731_v31 = vld [vmem:[%s979_s1 + $0xc0] sm:$0xff]  ;;  %v742_v40 = vld [vmem:[%s979_s1 + $0x118] sm:$0xff] }
   0xd   :  { %434 = vmatpush.bf16.msra.mxu3 %v736_v11  ;;  %v513_v32 = vld [vmem:[%s980_s0] sm:$0xf]  ;;  %v697_v34 = vld [vmem:[%s980_s0 + $0x4] sm:$0xf]  ;;  %v521_v36 = vld [vmem:[%s980_s0 + $0x8] sm:$0xf] }
   0xe   :  { %378 = vmatpush.bf16.msra.mxu0 %v711_v12  ;;  %v698_v38 = vld [vmem:[%s980_s0 + $0xc] sm:$0xf]  ;;  %v523_v39 = vld [vmem:[%s980_s0 + $0x1c] sm:$0xf0]  ;;  %v514_v41 = vor.u32 %v699_v33, %v513_v32  ;;  %v518_v42 = vor.u32 %v697_v34, %v515_v35  ;;  %v522_v43 = vor.u32 %v700_v37, %v521_v36  ;;  %v741_v45 = vld [vmem:[%s979_s1 + $0x110] sm:$0xff] }
   0xf   :  { %397 = vmatpush.bf16.msra.mxu1 %v719_v13  ;;  %v526_v44 = vor.u32 %v698_v38, %v523_v39  ;;  %v740_v46 = vld [vmem:[%s979_s1 + $0x108] sm:$0xff]  ;;  %v739_v47 = vld [vmem:[%s979_s1 + $0x100] sm:$0xff]  ;;  %v704_v49 = vld [vmem:[%s980_s0 + $0x38] sm:$0xf0] }
  0x10   :  { %416 = vmatpush.bf16.msra.mxu2 %v727_v14  ;;  %v533_v48 = vld [vmem:[%s980_s0 + $0x28] sm:$0xf]  ;;  %v702_v50 = vld [vmem:[%s980_s0 + $0x2c] sm:$0xf]  ;;  %v535_v51 = vld [vmem:[%s980_s0 + $0x3c] sm:$0xf0] }
  0x11   :  { %435 = vmatpush.bf16.msra.mxu3 %v735_v15  ;;  %v541_v52 = vld [vmem:[%s980_s0 + $0x30] sm:$0xf]  ;;  %v705_v53 = vld [vmem:[%s980_s0 + $0x40] sm:$0xf0]  ;;  %v703_v54 = vld [vmem:[%s980_s0 + $0x34] sm:$0xf]  ;;  %v534_v56 = vor.u32 %v704_v49, %v533_v48  ;;  %v538_v57 = vor.u32 %v702_v50, %v535_v51 }
  0x12   :  { %379 = vmatpush.bf16.msra.mxu0 %v710_v16  ;;  %v543_v55 = vld [vmem:[%s980_s0 + $0x44] sm:$0xf0]  ;;  %v542_v58 = vor.u32 %v705_v53, %v541_v52  ;;  %v529_v60 = vld [vmem:[%s980_s0 + $0x10] sm:$0xf]  ;;  %v701_v61 = vld [vmem:[%s980_s0 + $0x20] sm:$0xf0] }
  0x13   :  { %398 = vmatpush.bf16.msra.mxu1 %v718_v17  ;;  %v546_v59 = vor.u32 %v703_v54, %v543_v55  ;;  %v549_v62 = vld [vmem:[%s980_s0 + $0x38] sm:$0xf]  ;;  %v706_v63 = vld [vmem:[%s980_s0 + $0x48] sm:$0xf0]  ;;  %v530_v0 = vor.u32 %v701_v61, %v529_v60 }
  0x14   :  { %417 = vmatpush.bf16.msra.mxu2 %v726_v18  ;;  %v550_v1 = vor.u32 %v706_v63, %v549_v62 }
  0x15   :  { %436 = vmatpush.bf16.msra.mxu3 %v734_v19 }
  0x16   :  { %380 = vmatpush.bf16.msra.mxu0 %v709_v20 }
  0x17   :  { %399 = vmatpush.bf16.msra.mxu1 %v717_v21 }
  0x18   :  { %418 = vmatpush.bf16.msra.mxu2 %v725_v22 }
  0x19   :  { %437 = vmatpush.bf16.msra.mxu3 %v733_v23  ;;  %v756_v23 = vld [vmem:[%s981_s2] ss:$0 sm:$0xff] }
  0x1a   :  { %381 = vmatpush.bf16.msra.mxu0 %v708_v24  ;;  %v744_v24 = vld [vmem:[%s982_s3] sm:$0xff]  }
  0x1b   :  { %400 = vmatpush.bf16.msra.mxu1 %v716_v25  ;;  %v751_v25 = vld [vmem:[%s982_s3 + $0x8] sm:$0xff]   ;;  %v745_v33 = vunpack.c.l.bf16 %v744_v24  ;;  %v746_v52 = vunpack.c.h.bf16 %v744_v24 }
  0x1c   :  { %419 = vmatpush.bf16.msra.mxu2 %v724_v26  ;;  %v749_v34 = vunpack.c.l.bf16 %v751_v25  ;;  %v750_v53 = vunpack.c.h.bf16 %v751_v25 }
  0x1d   :  { %438 = vmatpush.bf16.msra.mxu3 %v732_v27 }
  0x1e   :  { %382 = vmatpush.bf16.msra.mxu0 %v707_v28 }
  0x1f   :  { %401 = vmatpush.bf16.msra.mxu1 %v715_v29 }
  0x20   :  { %420 = vmatpush.bf16.msra.mxu2 %v723_v30 }
  0x21   :  { %439 = vmatpush.bf16.msra.mxu3 %v731_v31  ;;  %383 = vmatmul.bf16.vlgmr.msra.gmra.mxu0 %v514_v41  ;;  %v757_v31 = vld [vmem:[%s981_s2 + $0x1] ss:$0 sm:$0xff] }
  0x22   :  { %455 = vmatpush.bf16.msrb.mxu0 %v742_v40  ;;  %402 = vmatmul.bf16.vlgmr.msra.gmra.mxu1 %v518_v42 }
  0x23   :  { %752 = vmatpush.bf16.msrb.mxu1 %v742_v40  ;;  %421 = vmatmul.bf16.vlgmr.msra.gmra.mxu2 %v522_v43 }
  0x24   :  { %440 = vmatmul.bf16.vlgmr.msra.gmra.mxu3 %v526_v44 }
  0x26   :  { %456 = vmatpush.bf16.msrb.mxu0 %v741_v45 }
  0x27   :  { %753 = vmatpush.bf16.msrb.mxu1 %v741_v45 }
  0x2a   :  { %457 = vmatpush.bf16.msrb.mxu0 %v740_v46 }
  0x2b   :  { %754 = vmatpush.bf16.msrb.mxu1 %v740_v46 }
  0x2e   :  { %458 = vmatpush.bf16.msrb.mxu0 %v739_v47 }
  0x2f   :  { %755 = vmatpush.bf16.msrb.mxu1 %v739_v47 }
  0x31   :  { %388 = vmatmul.bf16.gmra.mxu0 %v534_v56 }
  0x32   :  { %407 = vmatmul.bf16.gmra.mxu1 %v538_v57 }
  0x33   :  { %426 = vmatmul.bf16.gmra.mxu2 %v542_v58 }
  0x34   :  { %445 = vmatmul.bf16.gmra.mxu3 %v546_v59 }
  0x41   :  { %695 = vmatmul.msk.bf16.vlgmr.msrb.gmra.mxu0 %vm368_vm0, %v530_v0 }
  0x42   :  { %696 = vmatmul.msk.bf16.vlgmr.msrb.gmra.mxu1 %vm368_vm0, %v550_v1 }
  0x9e   :  { %v384_v2 = vpop.f32.mrf.mxu0 }
  0x9f   :  { %v403_v3 = vpop.f32.mrf.mxu1 }
  0xa0   :  { %v404_v15 = vadd.f32 %v403_v3, %v384_v2 }
  0xa6   :  { %v422_v4 = vpop.f32.mrf.mxu2  ;;  %v386_v6 = vpop.f32.mrf.mxu0 }
  0xa7   :  { %v441_v5 = vpop.f32.mrf.mxu3  ;;  %v405_v7 = vpop.f32.mrf.mxu1  ;;  %v423_v17 = vadd.f32 %v422_v4, %v404_v15 }
  0xa8   :  { %v406_v28 = vadd.f32 %v405_v7, %v386_v6 }
  0xa9   :  { %v442_v20 = vadd.f32 %v441_v5, %v423_v17 }
  0xae   :  { %v424_v8 = vpop.f32.mrf.mxu2  ;;  %v389_v9 = vpop.f32.mrf.mxu0 }
  0xaf   :  { %v408_v10 = vpop.f32.mrf.mxu1  ;;  %v443_v11 = vpop.f32.mrf.mxu3  ;;  %v425_v35 = vadd.f32 %v424_v8, %v406_v28 }
  0xb0   :  { %v409_v16 = vadd.f32 %v408_v10, %v389_v9 }
  0xb1   :  { %v444_v42 = vadd.f32 %v443_v11, %v425_v35 }
  0xb6   :  { %v427_v12 = vpop.f32.mrf.mxu2  ;;  %v391_v13 = vpop.f32.mrf.mxu0 }
  0xb7   :  { %v410_v14 = vpop.f32.mrf.mxu1  ;;  %v428_v18 = vadd.f32 %v427_v12, %v409_v16  ;;  %v446_v19 = vpop.f32.mrf.mxu3 }
  0xb8   :  { %v411_v29 = vadd.f32 %v410_v14, %v391_v13 }
  0xb9   :  { %v447_v21 = vadd.f32 %v446_v19, %v428_v18 }
  0xbe   :  { %v429_v22 = vpop.f32.mrf.mxu2  ;;  %v460_v26 = vpop.f32.mrf.mxu0 }
  0xbf   :  { %v465_v27 = vpop.f32.mrf.mxu1  ;;  %v461_v30 = vadd.f32 %v460_v26, %v442_v20  ;;  %v430_v36 = vadd.f32 %v429_v22, %v411_v29  ;;  %v448_v41 = vpop.f32.mrf.mxu3 }
  0xc0   :  { %v466_v32 = vadd.f32 %v465_v27, %v447_v21 }
  0xc1   :  { %v472_v37 = vmul.f32 %v756_v23, %v461_v30  ;;  %v449_v43 = vadd.f32 %v448_v41, %v430_v36 }
  0xc2   :  { %v474_v38 = vmul.f32 %v756_v23, %v466_v32 }
  0xc3   :  { %v478_v39 = vadd.f32 %v757_v31, %v472_v37 }
  0xc4   :  { %v480_v40 = vadd.f32 %v757_v31, %v474_v38 }
  0xc5   :  { %v490_v44 = vadd.f32 %v745_v33, %v478_v39 }
  0xc6   :  { %v492_v45 = vadd.f32 %v749_v34, %v480_v40  ;;  %v462_v46 = vpop.f32.mrf.mxu0 }
  0xc7   :  { %v467_v47 = vpop.f32.mrf.mxu1  ;;  %v494_v48 = vmax.f32 %v490_v44, 0.0  ;;  %v463_v50 = vadd.f32 %v462_v46, %v444_v42 }
  0xc8   :  { %v496_v49 = vmax.f32 %v492_v45, 0.0  ;;  %v468_v51 = vadd.f32 %v467_v47, %v449_v43 }
  0xc9   :  { %v498_v54 = vpack.c.bf16 %v494_v48, %v494_v48  ;;  %v473_v56 = vmul.f32 %v756_v23, %v463_v50 }
  0xca   :  { %v500_v55 = vpack.c.bf16 %v496_v49, %v496_v49  ;;  %v475_v57 = vmul.f32 %v756_v23, %v468_v51 }
  0xcb   :  { %503 = vst.msk [vmem:[%s983_s4] sm:$0xf] %vm502_vm1, %v498_v54  ;;  %v479_v58 = vadd.f32 %v757_v31, %v473_v56 }
  0xcc   :  { %v481_v59 = vadd.f32 %v757_v31, %v475_v57  ;;  %505 = vst.msk [vmem:[%s983_s4 + $0x8] sm:$0xf] %vm502_vm1, %v500_v55 }
  0xcd   :  { %v491_v60 = vadd.f32 %v746_v52, %v479_v58 }
  0xce   :  { %v493_v61 = vadd.f32 %v750_v53, %v481_v59 }
  0xcf   :  { %v495_v62 = vmax.f32 %v491_v60, 0.0 }
  0xd0   :  { %v497_v63 = vmax.f32 %v493_v61, 0.0 }
  0xd1   :  { %v499_v0 = vpack.c.bf16 %v495_v62, %v495_v62 }
  0xd2   :  { %v501_v1 = vpack.c.bf16 %v497_v63, %v497_v63 }
  0xd3   :  { %504 = vst.msk [vmem:[%s983_s4 + $0x4] sm:$0xf] %vm502_vm1, %v499_v0 }
  0xd4   :  { %506 = vst.msk [vmem:[%s983_s4 + $0xc] sm:$0xf] %vm502_vm1, %v501_v1 }

// kernel: _lambda_.23
= control target key start
LH: loop header
LB: loop body
LE: loop exit
PB: predicated region body
PF: predicated region fallthrough
CT: control target
= control target key end

     0   :  { %vm48_vm0 = vcmask 523264   ;;  %s144_s1 = inlined_call_operand.vmem [shape: bf16[64,128], index: 1, kind: input, shape index: {}]   ;;  %s145_s2 = inlined_call_operand.vmem [shape: f32[2,128], index: 2, kind: input, shape index: {}]   ;;  %s146_s0 = inlined_call_operand.vmem [shape: bf16[8,64], index: 0, kind: input, shape index: {}]   ;;  %s147_s3 = inlined_call_operand.vmem [shape: bf16[8,128], index: 3, kind: output, shape index: {}]  }
   0x1   :  { %v97_v0 = vld [vmem:[%s144_s1 + $0x18] sm:$0xff]  ;;  %v96_v1 = vld [vmem:[%s144_s1 + $0x10] sm:$0xff]  ;;  %v95_v2 = vld [vmem:[%s144_s1 + $0x8] sm:$0xff] }
   0x2   :  { %56 = vmatpush.bf16.msra.mxu0 %v97_v0  ;;  %v94_v3 = vld [vmem:[%s144_s1] sm:$0xff] }
   0x3   :  { %v15_v4 = vld [vmem:[%s146_s0] sm:$0xf] }
   0x4   :  { %v98_v5 = vld [vmem:[%s145_s2] ss:$0 sm:$0xff]  ;;  %v99_v6 = vld [vmem:[%s145_s2 + $0x1] ss:$0 sm:$0xff] }
   0x6   :  { %57 = vmatpush.bf16.msra.mxu0 %v96_v1 }
   0xa   :  { %58 = vmatpush.bf16.msra.mxu0 %v95_v2 }
   0xe   :  { %59 = vmatpush.bf16.msra.mxu0 %v94_v3 }
  0x11   :  { %93 = vmatmul.msk.bf16.vlgmr.msra.gmra.mxu0 %vm48_vm0, %v15_v4 }
  0x8e   :  { %v61_v7 = vpop.f32.mrf.mxu0 }
  0x8f   :  { %v67_v8 = vmul.f32 %v98_v5, %v61_v7 }
  0x91   :  { %v70_v9 = vadd.f32 %v99_v6, %v67_v8 }
  0x93   :  { %v71_v10 = vpack.c.bf16 %v70_v9, %v70_v9 }
  0x95   :  { %72 = vst [vmem:[%s147_s3] sm:$0xf] %v71_v10 }
  0x96   :  { %v63_v11 = vpop.f32.mrf.mxu0 }

// kernel: _lambda_.24
= control target key start
LH: loop header
LB: loop body
LE: loop exit
PB: predicated region body
PF: predicated region fallthrough
CT: control target
= control target key end

     0   :  { %s922_s15 = smov 0   ;;  %s924_s16 = smov 0   ;;  %s1003_s0 = inlined_call_operand.vmem [shape: bf16[8,1152], index: 0, kind: input, shape index: {}]   ;;  %s1004_s1 = inlined_call_operand.vmem [shape: bf16[1152,128], index: 1, kind: input, shape index: {}]   ;;  %s1005_s2 = inlined_call_operand.vmem [shape: f32[2,128], index: 2, kind: input, shape index: {}]   ;;  %s1006_s3 = inlined_call_operand.vmem [shape: bf16[8,128], index: 3, kind: input, shape index: {}]   ;;  %s1007_s4 = inlined_call_operand.vmem [shape: bf16[8,128], index: 4, kind: output, shape index: {}]  }
   0x1   :  { %s926_s17 = smov 0  }
   0x2 LB: > { %s26_s18 = sadd.s32 1, %s890_s16  ;;  %p717_p0 = scmp.ge.s32.totalorder %s894_s17, 1  ;;  %s894_s17 = sphi %s926_s17, %s14_s17   ;;  %s890_s16 = sphi %s924_s16, %s1009_s16   ;;  %s886_s15 = sphi %s922_s15, %s1008_s15  }
   0x3   : > { %p27_p1 = scmp.ge.s32.totalorder %s26_s18, 3  ;;  %p229_p2 = scmp.lt.s32.totalorder %s894_s17, 4 }
   0x5   : > { %s1011_s18 = smov (%p27_p1, %s26_s18), 0  ;;  %p230_p3 = pnand %p717_p0, %p229_p2 }
   0x6   : > { %s280_s19 = smul.u32 (!%p230_p3), 3, %s886_s15  ;;  %p720_p6 = scmp.ne.s32.totalorder (!%p230_p3), %s886_s15, 0 }
   0x7   : > { %233 = sbr.rel (%p230_p3) target bundleno = 211 (0xd3), region = 36 }
   0x8   : > { %s290_s20 = smul.u32 (!%p230_p3), 48, %s886_s15  ;;  %p283_p4 = scmp.lt.s32.totalorder (!%p230_p3), %s280_s19, 8 }
   0xa   : > { %p291_p5 = scmp.lt.s32.totalorder (!%p230_p3), %s290_s20, 143 }
   0xc   : > { %s1013_s19 = smov (!%p283_p4, %s280_s19), 8  ;;  %s1015_s20 = smov (!%p291_p5, %s290_s20), 143 }
   0xd   : > { %s718_s21 = sshll.u32 %s1013_s19, 2  ;;  %s719_s25 = sshll.u32 %s1015_s20, 2 }
   0xe   : > { %s947_s24 = scalar_lea.vmem %s1003_s0, %s718_s21  ;;  %s952_s28 = scalar_lea.vmem %s1004_s1, %s719_s25 }
   0xf   : > { %320 = sbr.rel (%p720_p6) target bundleno = 22 (0x16), region = 40 }
  0x14   : > { %v896_v0 = vmov 0.0  }
  0x15   : > { %321 = vst [vmem:[#allocation2] sm:$0xff] %v896_v0 }
  0x16 PF: > { %v828_v1 = vld [vmem:[%s952_s28 + $0x38] sm:$0xff]  ;;  %v827_v4 = vld [vmem:[%s952_s28 + $0x30] sm:$0xff]  ;;  %v826_v7 = vld [vmem:[%s952_s28 + $0x28] sm:$0xff]  ;;  %p817_p7 = scmp.ne.s32.totalorder %s886_s15, 2 }
  0x17   : > { %v836_v2 = vld [vmem:[%s952_s28 + $0x78] sm:$0xff]  ;;  %528 = vmatpush.bf16.msra.mxu0 %v828_v1  ;;  %v835_v5 = vld [vmem:[%s952_s28 + $0x70] sm:$0xff]  ;;  %v834_v8 = vld [vmem:[%s952_s28 + $0x68] sm:$0xff] }
  0x18   : > { %v844_v3 = vld [vmem:[%s952_s28 + $0xb8] sm:$0xff]  ;;  %541 = vmatpush.bf16.msra.mxu1 %v836_v2  ;;  %v843_v6 = vld [vmem:[%s952_s28 + $0xb0] sm:$0xff]  ;;  %v842_v9 = vld [vmem:[%s952_s28 + $0xa8] sm:$0xff] }
  0x19   : > { %554 = vmatpush.bf16.msra.mxu2 %v844_v3  ;;  %v825_v10 = vld [vmem:[%s952_s28 + $0x20] sm:$0xff]  ;;  %v824_v13 = vld [vmem:[%s952_s28 + $0x18] sm:$0xff]  ;;  %v823_v16 = vld [vmem:[%s952_s28 + $0x10] sm:$0xff] }
  0x1a   : > { %v833_v11 = vld [vmem:[%s952_s28 + $0x60] sm:$0xff]  ;;  %v832_v14 = vld [vmem:[%s952_s28 + $0x58] sm:$0xff]  ;;  %v831_v17 = vld [vmem:[%s952_s28 + $0x50] sm:$0xff] }
  0x1b   : > { %529 = vmatpush.bf16.msra.mxu0 %v827_v4  ;;  %v841_v12 = vld [vmem:[%s952_s28 + $0xa0] sm:$0xff]  ;;  %v840_v15 = vld [vmem:[%s952_s28 + $0x98] sm:$0xff]  ;;  %v839_v18 = vld [vmem:[%s952_s28 + $0x90] sm:$0xff] }
  0x1c   : > { %542 = vmatpush.bf16.msra.mxu1 %v835_v5  ;;  %v822_v19 = vld [vmem:[%s952_s28 + $0x8] sm:$0xff]  ;;  %v323_v21 = vld [vmem:[%s947_s24] sm:$0xff] }
  0x1d   : > { %555 = vmatpush.bf16.msra.mxu2 %v843_v6  ;;  %v830_v20 = vld [vmem:[%s952_s28 + $0x48] sm:$0xff]  ;;  %v375_v24 = vunpack.c.l.b16 %v323_v21  ;;  %v376_v25 = vunpack.c.h.b16 %v323_v21  ;;  %v821_v26 = vld [vmem:[%s952_s28] sm:$0xff] }
  0x1e   : > { %v838_v22 = vld [vmem:[%s952_s28 + $0x88] sm:$0xff]  ;;  %v829_v27 = vld [vmem:[%s952_s28 + $0x40] sm:$0xff] }
  0x1f   : > { %530 = vmatpush.bf16.msra.mxu0 %v826_v7  ;;  %v324_v23 = vld [vmem:[%s947_s24 + $0x8] sm:$0xf]  ;;  %v837_v29 = vld [vmem:[%s952_s28 + $0x80] sm:$0xff]  ;;  %v378_v30 = vpack.c.b16 %v375_v24, %v375_v24  ;;  %v379_v31 = vpack.c.b16 %v376_v25, %v376_v25 }
  0x20   : > { %543 = vmatpush.bf16.msra.mxu1 %v834_v8  ;;  %v377_v28 = vunpack.c.l.b16 %v324_v23  ;;  %v322_v36 = vld [vmem:[#allocation2] sm:$0xff] }
  0x21   : > { %556 = vmatpush.bf16.msra.mxu2 %v842_v9 }
  0x22   : > { %v380_v32 = vpack.c.b16 %v377_v28, %v377_v28 }
  0x23   : > { %531 = vmatpush.bf16.msra.mxu0 %v825_v10 }
  0x24   : > { %544 = vmatpush.bf16.msra.mxu1 %v833_v11 }
  0x25   : > { %557 = vmatpush.bf16.msra.mxu2 %v841_v12 }
  0x27   : > { %532 = vmatpush.bf16.msra.mxu0 %v824_v13 }
  0x28   : > { %545 = vmatpush.bf16.msra.mxu1 %v832_v14 }
  0x29   : > { %558 = vmatpush.bf16.msra.mxu2 %v840_v15 }
  0x2b   : > { %533 = vmatpush.bf16.msra.mxu0 %v823_v16 }
  0x2c   : > { %546 = vmatpush.bf16.msra.mxu1 %v831_v17 }
  0x2d   : > { %559 = vmatpush.bf16.msra.mxu2 %v839_v18 }
  0x2f   : > { %534 = vmatpush.bf16.msra.mxu0 %v822_v19 }
  0x30   : > { %547 = vmatpush.bf16.msra.mxu1 %v830_v20 }
  0x31   : > { %560 = vmatpush.bf16.msra.mxu2 %v838_v22 }
  0x33   : > { %535 = vmatpush.bf16.msra.mxu0 %v821_v26 }
  0x34   : > { %548 = vmatpush.bf16.msra.mxu1 %v829_v27 }
  0x35   : > { %561 = vmatpush.bf16.msra.mxu2 %v837_v29 }
  0x36   : > { %536 = vmatmul.bf16.vlgmr.msra.gmra.mxu0 %v378_v30 }
  0x37   : > { %549 = vmatmul.bf16.vlgmr.msra.gmra.mxu1 %v379_v31 }
  0x38   : > { %562 = vmatmul.bf16.vlgmr.msra.gmra.mxu2 %v380_v32 }
  0xb3   : > { %v537_v33 = vpop.f32.mrf.mxu0 }
  0xb4   : > { %v550_v34 = vpop.f32.mrf.mxu1 }
  0xb5   : > { %v551_v35 = vadd.f32 %v550_v34, %v537_v33 }
  0xbb   : > { %v563_v37 = vpop.f32.mrf.mxu2  ;;  %v539_v39 = vpop.f32.mrf.mxu0 }
  0xbc   : > { %v564_v38 = vadd.f32 %v563_v37, %v551_v35  ;;  %v552_v40 = vpop.f32.mrf.mxu1 }
  0xbe   : > { %v567_v41 = vadd.f32 %v564_v38, %v322_v36 }
  0xbf   : > { %572 = sbr.rel (%p817_p7) target bundleno = 211 (0xd3), region = 44 }
  0xc0   : > { %568 = vst [vmem:[#allocation2] sm:$0xff] %v567_v41 }
  0xc3   : > { %v565_v42 = vpop.f32.mrf.mxu2 }
  0xc4   : > { %v870_v44 = vld [vmem:[%s1005_s2] ss:$0 sm:$0xff]  ;;  %v871_v45 = vld [vmem:[%s1005_s2 + $0x1] ss:$0 sm:$0xff] }
  0xc5   : > { %v580_v46 = vld [vmem:[%s1006_s3] sm:$0xf] }
  0xc6   : > { %v581_v48 = vunpack.c.l.bf16 %v580_v46 }
  0xc7   : > { %v573_v43 = vld [vmem:[#allocation2] sm:$0xff] }
  0xc8   : > { %v576_v47 = vmul.f32 %v870_v44, %v573_v43 }
  0xca   : > { %v579_v49 = vadd.f32 %v871_v45, %v576_v47 }
  0xcc   : > { %v582_v50 = vadd.f32 %v581_v48, %v579_v49 }
  0xce   : > { %v583_v51 = vmax.f32 %v582_v50, 0.0 }
  0xd0   : > { %v584_v52 = vpack.c.bf16 %v583_v51, %v583_v51 }
  0xd2   : > { %585 = vst [vmem:[%s1007_s4] sm:$0xf] %v584_v52 }
  0xd3 PF: > { %s14_s17 = sadd.s32 1, %s894_s17   ;;  %s1008_s15 = smov %s890_s16 }
  0xd4   : > { %p11_p8 = scmp.ge.s32.totalorder %s14_s17, 5   ;;  %s1009_s16 = smov %s1011_s18 }
  0xd6   :  { %13 = sbr.rel (!%p11_p8) target bundleno = 2 (0x2), region = 83 }

// kernel: _lambda_.25
= control target key start
LH: loop header
LB: loop body
LE: loop exit
PB: predicated region body
PF: predicated region fallthrough
CT: control target
= control target key end

     0   :  { %s676_s0 = inlined_call_operand.vmem [shape: bf16[2,512], index: 0, kind: input, shape index: {}]   ;;  %s677_s1 = inlined_call_operand.vmem [shape: bf16[512,10], index: 1, kind: input, shape index: {}]   ;;  %s678_s2 = inlined_call_operand.vmem [shape: f32[2,10], index: 2, kind: input, shape index: {}]   ;;  %s679_s3 = inlined_call_operand.hbm [shape: f32[2,10], index: 3, kind: output, shape index: {}]  }
   0x1   :  { %v493_v0 = vld [vmem:[%s677_s1 + $0x38] sm:$0xff]  ;;  %v492_v4 = vld [vmem:[%s677_s1 + $0x30] sm:$0xff]  ;;  %v491_v8 = vld [vmem:[%s677_s1 + $0x28] sm:$0xff] }
   0x2   :  { %v501_v1 = vld [vmem:[%s677_s1 + $0x78] sm:$0xff]  ;;  %282 = vmatpush.bf16.msra.mxu0 %v493_v0  ;;  %v500_v5 = vld [vmem:[%s677_s1 + $0x70] sm:$0xff]  ;;  %v499_v9 = vld [vmem:[%s677_s1 + $0x68] sm:$0xff] }
   0x3   :  { %v509_v2 = vld [vmem:[%s677_s1 + $0xb8] sm:$0xff]  ;;  %295 = vmatpush.bf16.msra.mxu1 %v501_v1  ;;  %v508_v6 = vld [vmem:[%s677_s1 + $0xb0] sm:$0xff]  ;;  %v507_v10 = vld [vmem:[%s677_s1 + $0xa8] sm:$0xff] }
   0x4   :  { %v517_v3 = vld [vmem:[%s677_s1 + $0xf8] sm:$0xff]  ;;  %308 = vmatpush.bf16.msra.mxu2 %v509_v2  ;;  %v516_v7 = vld [vmem:[%s677_s1 + $0xf0] sm:$0xff]  ;;  %v515_v11 = vld [vmem:[%s677_s1 + $0xe8] sm:$0xff] }
   0x5   :  { %321 = vmatpush.bf16.msra.mxu3 %v517_v3  ;;  %v490_v12 = vld [vmem:[%s677_s1 + $0x20] sm:$0xff] }
   0x6   :  { %283 = vmatpush.bf16.msra.mxu0 %v492_v4  ;;  %v498_v13 = vld [vmem:[%s677_s1 + $0x60] sm:$0xff] }
   0x7   :  { %296 = vmatpush.bf16.msra.mxu1 %v500_v5  ;;  %v506_v14 = vld [vmem:[%s677_s1 + $0xa0] sm:$0xff] }
   0x8   :  { %309 = vmatpush.bf16.msra.mxu2 %v508_v6  ;;  %v514_v15 = vld [vmem:[%s677_s1 + $0xe0] sm:$0xff] }
   0x9   :  { %322 = vmatpush.bf16.msra.mxu3 %v516_v7  ;;  %v15_v16 = vld [vmem:[%s676_s0] sm:$0xf] }
   0xa   :  { %284 = vmatpush.bf16.msra.mxu0 %v491_v8  ;;  %81 = vst [vmem:[#allocation1] ss:$9 sm:$0xff] %v15_v16 }
   0xb   :  { %297 = vmatpush.bf16.msra.mxu1 %v499_v9 }
   0xc   :  { %310 = vmatpush.bf16.msra.mxu2 %v507_v10 }
   0xd   :  { %323 = vmatpush.bf16.msra.mxu3 %v515_v11 }
   0xe   :  { %8 = vsyncpa [#allocation3], 0  ;;  %285 = vmatpush.bf16.msra.mxu0 %v490_v12  ;;  %v489_v17 = vld [vmem:[%s677_s1 + $0x18] sm:$0xff]  ;;  %v488_v21 = vld [vmem:[%s677_s1 + $0x10] sm:$0xff]  ;;  %s547_s25 = smov [#allocation2]   ;;  %s349_s29 = sshll.u32 %s679_s3, 4  ;;  %s350_s29 = int_to_ptr.hbm [resolvable:$true] %s349_s29 }
   0xf   :  { %298 = vmatpush.bf16.msra.mxu1 %v498_v13  ;;  %v497_v18 = vld [vmem:[%s677_s1 + $0x58] sm:$0xff]  ;;  %v496_v22 = vld [vmem:[%s677_s1 + $0x50] sm:$0xff]  ;;  %v487_v25 = vld [vmem:[%s677_s1 + $0x8] sm:$0xff]  ;;  %s347_s26 = sshll.u32 %s547_s25, 4  ;;  %vm340_vm0 = vcmask 74752   ;;  %s348_s26 = int_to_ptr.vmem [resolvable:$true] %s347_s26 }
  0x10   :  { %311 = vmatpush.bf16.msra.mxu2 %v506_v14  ;;  %v505_v19 = vld [vmem:[%s677_s1 + $0x98] sm:$0xff]  ;;  %v504_v23 = vld [vmem:[%s677_s1 + $0x90] sm:$0xff]  ;;  %v495_v26 = vld [vmem:[%s677_s1 + $0x48] sm:$0xff] }
  0x11   :  { %324 = vmatpush.bf16.msra.mxu3 %v514_v15  ;;  %v513_v20 = vld [vmem:[%s677_s1 + $0xd8] sm:$0xff]  ;;  %v512_v24 = vld [vmem:[%s677_s1 + $0xd0] sm:$0xff]  ;;  %v503_v27 = vld [vmem:[%s677_s1 + $0x88] sm:$0xff] }
  0x12   :  { %286 = vmatpush.bf16.msra.mxu0 %v489_v17  ;;  %v511_v28 = vld [vmem:[%s677_s1 + $0xc8] sm:$0xff]  ;;  %v486_v29 = vld [vmem:[%s677_s1] sm:$0xff]  ;;  %v84_v35 = vld [vmem:[#allocation1 + $0x12] sm:$0xff] }
  0x13   :  { %299 = vmatpush.bf16.msra.mxu1 %v497_v18  ;;  %v494_v30 = vld [vmem:[%s677_s1 + $0x40] sm:$0xff]  ;;  %v83_v34 = vld [vmem:[#allocation1 + $0x9] sm:$0xff] }
  0x14   :  { %312 = vmatpush.bf16.msra.mxu2 %v505_v19  ;;  %v502_v31 = vld [vmem:[%s677_s1 + $0x80] sm:$0xff] }
  0x15   :  { %325 = vmatpush.bf16.msra.mxu3 %v513_v20  ;;  %v510_v32 = vld [vmem:[%s677_s1 + $0xc0] sm:$0xff] }
  0x16   :  { %287 = vmatpush.bf16.msra.mxu0 %v488_v21  ;;  %v82_v33 = vld [vmem:[#allocation1] sm:$0xff] }
  0x17   :  { %300 = vmatpush.bf16.msra.mxu1 %v496_v22  ;;  %v85_v36 = vld [vmem:[#allocation1 + $0x1b] sm:$0xff] }
  0x18   :  { %313 = vmatpush.bf16.msra.mxu2 %v504_v23  ;;  %v519_v43 = vld [vmem:[%s678_s2] ss:$0 sm:$0xff]  ;;  %v520_v47 = vld [vmem:[%s678_s2 + $0x1] ss:$0 sm:$0xff] }
  0x19   :  { %326 = vmatpush.bf16.msra.mxu3 %v512_v24 }
  0x1a   :  { %288 = vmatpush.bf16.msra.mxu0 %v487_v25 }
  0x1b   :  { %301 = vmatpush.bf16.msra.mxu1 %v495_v26 }
  0x1c   :  { %314 = vmatpush.bf16.msra.mxu2 %v503_v27 }
  0x1d   :  { %327 = vmatpush.bf16.msra.mxu3 %v511_v28 }
  0x1e   :  { %289 = vmatpush.bf16.msra.mxu0 %v486_v29 }
  0x1f   :  { %302 = vmatpush.bf16.msra.mxu1 %v494_v30 }
  0x20   :  { %315 = vmatpush.bf16.msra.mxu2 %v502_v31 }
  0x21   :  { %328 = vmatpush.bf16.msra.mxu3 %v510_v32  ;;  %290 = vmatmul.bf16.vlgmr.msra.gmra.mxu0 %v82_v33 }
  0x22   :  { %303 = vmatmul.bf16.vlgmr.msra.gmra.mxu1 %v83_v34 }
  0x23   :  { %316 = vmatmul.bf16.vlgmr.msra.gmra.mxu2 %v84_v35 }
  0x24   :  { %329 = vmatmul.bf16.vlgmr.msra.gmra.mxu3 %v85_v36 }
  0x9e   :  { %v291_v37 = vpop.f32.mrf.mxu0 }
  0x9f   :  { %v304_v38 = vpop.f32.mrf.mxu1 }
  0xa0   :  { %v305_v39 = vadd.f32 %v304_v38, %v291_v37 }
  0xa6   :  { %v317_v40 = vpop.f32.mrf.mxu2  ;;  %v293_v44 = vpop.f32.mrf.mxu0 }
  0xa7   :  { %v330_v41 = vpop.f32.mrf.mxu3  ;;  %v318_v42 = vadd.f32 %v317_v40, %v305_v39  ;;  %v306_v45 = vpop.f32.mrf.mxu1 }
  0xa9   :  { %v331_v46 = vadd.f32 %v330_v41, %v318_v42 }
  0xab   :  { %v336_v48 = vmul.f32 %v519_v43, %v331_v46 }
  0xad   :  { %v339_v49 = vadd.f32 %v520_v47, %v336_v48 }
  0xae   :  { %v319_v50 = vpop.f32.mrf.mxu2 }
  0xaf   :  { %v332_v51 = vpop.f32.mrf.mxu3  ;;  %341 = vst.msk [vmem:[#allocation2] sm:$0x3] %vm340_vm0, %v339_v49 }
  0xb0   :  { %352 = dma.vmem_to_hbm [thread:$0]  %s348_s26, 32, %s350_s29, [#allocation3]  }
  0xb1   :  { %545 = dma.done.wait [#allocation3], 32  }
  0xb2   :  { %546 = vsyncadd [#allocation3], 4294967264 }
  0xb3   :  { %357 = vsyncpa [#allocation3], 1 }

</bundles_post_ra>
